<compile_context>
chip_gen: v5e
topology: v5e:2x2
jax: 0.10.0
libtpu: 0.0.40
codegen_flags: <defaults>
</compile_context>

<pallas_src>
import math

import jax
import jax.numpy as jnp
from jax import lax
from jax.experimental import pallas as pl
from jax.experimental.pallas import tpu as pltpu

LN_EPS = 1e-5  # PyTorch nn.LayerNorm default


def _round_up(x, m):
    return ((x + m - 1) // m) * m


def _pick_block_b(batch, max_block=1024, split_threshold=512):
    """Batch tile: as large as possible (cap max_block), multiple of 8.

    If one block would cover the whole batch but the batch is big enough,
    split into 2 blocks so a v7x chip can use both TensorCores.
    """
    full = _round_up(batch, 8)
    n = max(1, -(-full // max_block))
    if n == 1 and full >= split_threshold:
        n = 2
    return _round_up(-(-full // n), 8)


# ----------------------------------------------------------------------------
# Parameter packing (done ONCE, outside the per-call path).
# ----------------------------------------------------------------------------
def pack_params(params, input_dim, n_actions):
    (w1, b1, g1, be1, w2, b2, g2, be2, w3, b3, g3, be3,
     w4, b4, g4, be4, wa, ba, wq, bq) = params

    fc1 = w1.shape[1]
    fc2 = w2.shape[1]
    fc3 = w3.shape[1]
    fc4 = wa.shape[1]
    d_cat = input_dim + n_actions
    k1 = _round_up(d_cat, 16)          # bf16 sublane-packing friendly K
    n1 = fc1 + fc4

    # Fused block-diagonal fc1 / action_value weight: x = [state, action].
    w1a = jnp.zeros((k1, n1), jnp.float32)
    w1a = w1a.at[:input_dim, :fc1].set(w1)
    w1a = w1a.at[input_dim:d_cat, fc1:].set(wa)

    # Weight slab (bf16): 16-row-aligned blocks [w1a | w2 | w3 | w4 | wq].
    lane = _round_up(max(n1, fc2, fc3, fc4, 1), 128)
    mats = [w1a, w2, w3, w4, wq]
    offs, rows = [], 0
    for m in mats:
        offs.append(rows)
        rows += _round_up(m.shape[0], 16)
    wslab = jnp.zeros((rows, lane), jnp.float32)
    for m, off in zip(mats, offs):
        wslab = wslab.at[off:off + m.shape[0], :m.shape[1]].set(m)
    wslab = wslab.astype(jnp.bfloat16)

    # Vector slab (f32): one row per small parameter.
    vecs = [jnp.concatenate([b1, ba], axis=-1),   # 0: fused bias (fc1+fc4,)
            g1, be1,                              # 1, 2
            b2, g2, be2,                          # 3, 4, 5
            b3, g3, be3,                          # 6, 7, 8
            b4, g4, be4,                          # 9, 10, 11
            bq]                                   # 12
    vslab = jnp.zeros((_round_up(len(vecs), 8), lane), jnp.float32)
    for r, v in enumerate(vecs):
        vslab = vslab.at[r, :v.shape[-1]].set(v.reshape(-1))

    return dict(wslab=wslab, vslab=vslab,
                d_cat=d_cat, k1=k1, fc1=fc1, fc2=fc2, fc3=fc3, fc4=fc4,
                woff=tuple(offs))


# ----------------------------------------------------------------------------
# Pallas forward.
# ----------------------------------------------------------------------------
def critic_forward(state, action, packed, *, max_block_b=1024):
    """state: [B, D_in] f32, action: [B, A] f32 -> q: [B, 1] f32."""
    wslab, vslab = packed["wslab"], packed["vslab"]
    d_cat, k1 = packed["d_cat"], packed["k1"]
    fc1, fc2, fc3, fc4 = packed["fc1"], packed["fc2"], packed["fc3"], packed["fc4"]
    o1, o2, o3, o4, oq = packed["woff"]
    n1 = fc1 + fc4

    B = state.shape[0]
    x = jnp.concatenate([state, action], axis=-1).astype(jnp.bfloat16)
    if k1 != d_cat:
        x = jnp.pad(x, ((0, 0), (0, k1 - d_cat)))

    block_b = _pick_block_b(B, max_block_b)
    n_blocks = pl.cdiv(B, block_b)
    b_pad = n_blocks * block_b
    if b_pad != B:
        x = jnp.pad(x, ((0, b_pad - B), (0, 0)))

    def kernel(x_ref, w_ref, v_ref, out_ref):
        def relu(v):
            return jnp.maximum(v, 0.0)

        def layernorm(y, g, b):
            mu = jnp.mean(y, axis=-1, keepdims=True)
            ex2 = jnp.mean(y * y, axis=-1, keepdims=True)
            var = jnp.maximum(ex2 - mu * mu, 0.0)   # guard single-pass cancellation
            return (y - mu) * lax.rsqrt(var + LN_EPS) * g + b

        def mm(a_bf16, w_bf16):
            return jnp.dot(a_bf16, w_bf16, preferred_element_type=jnp.float32)

        xt = x_ref[...]                                              # (TB, k1) bf16

        # Fused fc1(state) & action_value(action): one wider-N MXU pass.
        z = mm(xt, w_ref[o1:o1 + k1, :n1]) + v_ref[0:1, :n1]         # (TB, fc1+fc4) f32
        h = relu(layernorm(z[:, :fc1], v_ref[1:2, :fc1], v_ref[2:3, :fc1]))
        av = relu(z[:, fc1:])                                        # (TB, fc4)

        h = relu(layernorm(mm(h.astype(jnp.bfloat16), w_ref[o2:o2 + fc1, :fc2])
                           + v_ref[3:4, :fc2], v_ref[4:5, :fc2], v_ref[5:6, :fc2]))
        h = relu(layernorm(mm(h.astype(jnp.bfloat16), w_ref[o3:o3 + fc2, :fc3])
                           + v_ref[6:7, :fc3], v_ref[7:8, :fc3], v_ref[8:9, :fc3]))
        sv = layernorm(mm(h.astype(jnp.bfloat16), w_ref[o4:o4 + fc3, :fc4])
                       + v_ref[9:10, :fc4], v_ref[10:11, :fc4], v_ref[11:12, :fc4])

        sa = relu(sv + av).astype(jnp.bfloat16)                      # (TB, fc4)

        # q head: MXU "NN" matmul (no transpose of sa), output (TB, 1).
        q = mm(sa, w_ref[oq:oq + fc4, :1]) + v_ref[12:13, 0:1]
        out_ref[...] = q

    flops = 2 * b_pad * (k1 * n1 + fc1 * fc2 + fc2 * fc3 + fc3 * fc4 + fc4)
    cost = pl.CostEstimate(
        flops=int(flops),
        transcendentals=int(4 * b_pad),                 # one rsqrt per LN per row
        bytes_accessed=int(2 * b_pad * k1 + 4 * b_pad
                           + 2 * wslab.size + 4 * vslab.size),
    )

    out = pl.pallas_call(
        kernel,
        out_shape=jax.ShapeDtypeStruct((b_pad, 1), jnp.float32),
        grid=(n_blocks,),
        in_specs=[
            pl.BlockSpec((block_b, k1), lambda i: (i, 0)),   # batch tile follows grid
            pl.BlockSpec(wslab.shape, lambda i: (0, 0)),     # resident weight slab
            pl.BlockSpec(vslab.shape, lambda i: (0, 0)),     # resident vector slab
        ],
        out_specs=pl.BlockSpec((block_b, 1), lambda i: (i, 0)),
        compiler_params=pltpu.CompilerParams(
            dimension_semantics=("parallel",)),
        cost_estimate=cost,
    )(x, wslab, vslab)

    return out[:B]


# ----------------------------------------------------------------------------
# Parameter init mirroring the PyTorch module, and a pure-JAX f32 reference.
# ----------------------------------------------------------------------------
def make_params(key, input_dim, fc1, fc2, fc3, fc4, n_actions):
    """PyTorch Linear stores weight (out, in); we pre-transpose to (in, out)."""
    ks = jax.random.split(key, 12)

    def uniform(k, shape, bound):
        return jax.random.uniform(k, shape, jnp.float32, -bound, bound)

    def linear_params(kw, kb, d_in, d_out, bound):
        return uniform(kw, (d_in, d_out), bound), uniform(kb, (1, d_out), bound)

    f1 = 1.0 / math.sqrt(fc1)
    f2 = 1.0 / math.sqrt(fc2)
    f3 = 1.0 / math.sqrt(fc3)
    f4 = 1.0 / math.sqrt(fc4)
    fa = 1.0 / math.sqrt(n_actions)
    f5 = 0.003

    w1, b1 = linear_params(ks[0], ks[1], input_dim, fc1, f1)
    w2, b2 = linear_params(ks[2], ks[3], fc1, fc2, f2)
    w3, b3 = linear_params(ks[4], ks[5], fc2, fc3, f3)
    w4, b4 = linear_params(ks[6], ks[7], fc3, fc4, f4)
    wa, ba = linear_params(ks[8], ks[9], n_actions, fc4, fa)
    wq, bq = linear_params(ks[10], ks[11], fc4, 1, f5)

    def ln_params(dim):
        return jnp.ones((1, dim), jnp.float32), jnp.zeros((1, dim), jnp.float32)

    g1, be1 = ln_params(fc1)
    g2, be2 = ln_params(fc2)
    g3, be3 = ln_params(fc3)
    g4, be4 = ln_params(fc4)

    return (w1, b1, g1, be1, w2, b2, g2, be2, w3, b3, g3, be3,
            w4, b4, g4, be4, wa, ba, wq, bq)


def _reference_forward(state, action, params):
    (w1, b1, g1, be1, w2, b2, g2, be2, w3, b3, g3, be3,
     w4, b4, g4, be4, wa, ba, wq, bq) = params

    def ln(x, g, be):
        mu = jnp.mean(x, axis=-1, keepdims=True)
        var = jnp.mean((x - mu) ** 2, axis=-1, keepdims=True)
        return (x - mu) / jnp.sqrt(var + LN_EPS) * g + be

    h = jax.nn.relu(ln(state @ w1 + b1, g1, be1))
    h = jax.nn.relu(ln(h @ w2 + b2, g2, be2))
    h = jax.nn.relu(ln(h @ w3 + b3, g3, be3))
    sv = ln(h @ w4 + b4, g4, be4)
    av = jax.nn.relu(action @ wa + ba)
    return jax.nn.relu(sv + av) @ wq + bq


if __name__ == "__main__":
    INPUT_DIM = 16       # input_dims = (16,)
    FC1, FC2, FC3, FC4 = 64, 64, 32, 32
    N_ACTIONS = 8

    key = jax.random.PRNGKey(0)
    k_param, k_state, k_action = jax.random.split(key, 3)

    params = make_params(k_param, INPUT_DIM, FC1, FC2, FC3, FC4, N_ACTIONS)
    packed = pack_params(params, INPUT_DIM, N_ACTIONS)   # hoisted out of call path

    fwd = jax.jit(lambda s, a: critic_forward(s, a, packed))

    # Case 1: B=200 -> single batch block (pad-free, multiple of 8).
    state = jax.random.normal(k_state, (200, INPUT_DIM), jnp.float32)
    action = jax.random.normal(k_action, (200, N_ACTIONS), jnp.float32)
    q = jax.block_until_ready(fwd(state, action))
    q_ref = _reference_forward(state, action, params)
    assert q.shape == (200, 1)
    # bf16 matmul inputs (f32 accumulate) -> loosened tolerance vs f32 reference.
    assert jnp.allclose(q, q_ref, atol=1e-2, rtol=1e-2), (
        float(jnp.max(jnp.abs(q - q_ref))))

    # Case 2: B=777 -> two parallel grid blocks (v7x dual-TC path) + batch pad.
    ks2, ka2 = jax.random.split(jax.random.PRNGKey(1))
    state2 = jax.random.normal(ks2, (777, INPUT_DIM), jnp.float32)
    action2 = jax.random.normal(ka2, (777, N_ACTIONS), jnp.float32)
    q2 = jax.block_until_ready(fwd(state2, action2))
    q2_ref = _reference_forward(state2, action2, params)
    assert q2.shape == (777, 1)
    assert jnp.allclose(q2, q2_ref, atol=1e-2, rtol=1e-2), (
        float(jnp.max(jnp.abs(q2 - q2_ref))))

    print("KERNEL_OK")
</pallas_src>

<mosaic_0001>
module attributes {stable_mosaic.version = 11 : i64} {
  func.func @kernel(%arg0: i32, %arg1: memref<200x32xbf16, #tpu.memory_space<vmem>>, %arg2: memref<224x128xbf16, #tpu.memory_space<vmem>>, %arg3: memref<16x128xf32, #tpu.memory_space<vmem>>, %arg4: memref<200x1xf32, #tpu.memory_space<vmem>>) attributes {dimension_semantics = [#tpu.dimension_semantics<parallel>], iteration_bounds = array<i64: 1>, scalar_prefetch = 0 : i64, scratch_operands = 0 : i64, tpu.core_type = #tpu.core_type<tc>, window_params = [{transform_indices = @transform_0, window_bounds = array<i64: 200, 32>}, {pipeline_mode = #tpu.pipeline_mode<synchronous>, transform_indices = @transform_1, window_bounds = array<i64: 224, 128>}, {pipeline_mode = #tpu.pipeline_mode<synchronous>, transform_indices = @transform_2, window_bounds = array<i64: 16, 128>}, {transform_indices = @transform_3, window_bounds = array<i64: 200, 1>}]} {
    %c0 = arith.constant 0 : index
    %c0_0 = arith.constant 0 : index
    %0 = vector.load %arg1[%c0, %c0_0] : memref<200x32xbf16, #tpu.memory_space<vmem>>, vector<200x32xbf16>
    %c0_1 = arith.constant 0 : index
    %c0_2 = arith.constant 0 : index
    %1 = vector.load %arg2[%c0_1, %c0_2] : memref<224x128xbf16, #tpu.memory_space<vmem>>, vector<32x96xbf16>
    %cst = arith.constant dense<0.000000e+00> : vector<200x96xf32>
    %2 = tpu.matmul %0, %1, %cst {dimension_numbers = #tpu.dot_dimension_numbers<[1], [0], [0], [1], [0, 0, 1, 1], [], []>} : vector<200x32xbf16>, vector<32x96xbf16>, vector<200x96xf32> -> vector<200x96xf32>
    %c0_3 = arith.constant 0 : index
    %c0_4 = arith.constant 0 : index
    %3 = vector.load %arg3[%c0_3, %c0_4] : memref<16x128xf32, #tpu.memory_space<vmem>>, vector<1x96xf32>
    %4 = vector.broadcast %3 : vector<1x96xf32> to vector<200x96xf32>
    %5 = arith.addf %2, %4 : vector<200x96xf32>
    %6 = vector.extract_strided_slice %5 {offsets = [0, 0], sizes = [200, 64], strides = [1, 1]} : vector<200x96xf32> to vector<200x64xf32>
    %c1 = arith.constant 1 : index
    %c0_5 = arith.constant 0 : index
    %7 = vector.load %arg3[%c1, %c0_5] : memref<16x128xf32, #tpu.memory_space<vmem>>, vector<1x64xf32>
    %c2 = arith.constant 2 : index
    %c0_6 = arith.constant 0 : index
    %8 = vector.load %arg3[%c2, %c0_6] : memref<16x128xf32, #tpu.memory_space<vmem>>, vector<1x64xf32>
    %cst_7 = arith.constant dense<0.000000e+00> : vector<200xf32>
    %9 = vector.multi_reduction <add>, %6, %cst_7 [1] : vector<200x64xf32> to vector<200xf32>
    %10 = vector.shape_cast %9 : vector<200xf32> to vector<200x1xf32>
    %cst_8 = arith.constant 6.400000e+01 : f32
    %11 = vector.broadcast %cst_8 : f32 to vector<200x1xf32>
    %12 = arith.divf %10, %11 : vector<200x1xf32>
    %13 = arith.mulf %6, %6 : vector<200x64xf32>
    %cst_9 = arith.constant dense<0.000000e+00> : vector<200xf32>
    %14 = vector.multi_reduction <add>, %13, %cst_9 [1] : vector<200x64xf32> to vector<200xf32>
    %15 = vector.shape_cast %14 : vector<200xf32> to vector<200x1xf32>
    %cst_10 = arith.constant 6.400000e+01 : f32
    %16 = vector.broadcast %cst_10 : f32 to vector<200x1xf32>
    %17 = arith.divf %15, %16 : vector<200x1xf32>
    %18 = arith.mulf %12, %12 : vector<200x1xf32>
    %19 = arith.subf %17, %18 : vector<200x1xf32>
    %cst_11 = arith.constant 0.000000e+00 : f32
    %20 = vector.broadcast %cst_11 : f32 to vector<200x1xf32>
    %21 = arith.maximumf %19, %20 : vector<200x1xf32>
    %22 = vector.broadcast %12 : vector<200x1xf32> to vector<200x64xf32>
    %23 = arith.subf %6, %22 : vector<200x64xf32>
    %cst_12 = arith.constant 9.99999974E-6 : f32
    %24 = vector.broadcast %cst_12 : f32 to vector<200x1xf32>
    %25 = arith.addf %21, %24 : vector<200x1xf32>
    %26 = math.rsqrt %25 : vector<200x1xf32>
    %27 = vector.broadcast %26 : vector<200x1xf32> to vector<200x64xf32>
    %28 = arith.mulf %23, %27 : vector<200x64xf32>
    %29 = vector.broadcast %7 : vector<1x64xf32> to vector<200x64xf32>
    %30 = arith.mulf %28, %29 : vector<200x64xf32>
    %31 = vector.broadcast %8 : vector<1x64xf32> to vector<200x64xf32>
    %32 = arith.addf %30, %31 : vector<200x64xf32>
    %cst_13 = arith.constant 0.000000e+00 : f32
    %33 = vector.broadcast %cst_13 : f32 to vector<200x64xf32>
    %34 = arith.maximumf %32, %33 : vector<200x64xf32>
    %35 = vector.extract_strided_slice %5 {offsets = [0, 64], sizes = [200, 32], strides = [1, 1]} : vector<200x96xf32> to vector<200x32xf32>
    %cst_14 = arith.constant 0.000000e+00 : f32
    %36 = vector.broadcast %cst_14 : f32 to vector<200x32xf32>
    %37 = arith.maximumf %35, %36 : vector<200x32xf32>
    %38 = arith.truncf %34 : vector<200x64xf32> to vector<200x64xbf16>
    %c32 = arith.constant 32 : index
    %c0_15 = arith.constant 0 : index
    %39 = vector.load %arg2[%c32, %c0_15] : memref<224x128xbf16, #tpu.memory_space<vmem>>, vector<64x64xbf16>
    %cst_16 = arith.constant dense<0.000000e+00> : vector<200x64xf32>
    %40 = tpu.matmul %38, %39, %cst_16 {dimension_numbers = #tpu.dot_dimension_numbers<[1], [0], [0], [1], [0, 0, 1, 1], [], []>} : vector<200x64xbf16>, vector<64x64xbf16>, vector<200x64xf32> -> vector<200x64xf32>
    %c3 = arith.constant 3 : index
    %c0_17 = arith.constant 0 : index
    %41 = vector.load %arg3[%c3, %c0_17] : memref<16x128xf32, #tpu.memory_space<vmem>>, vector<1x64xf32>
    %42 = vector.broadcast %41 : vector<1x64xf32> to vector<200x64xf32>
    %43 = arith.addf %40, %42 : vector<200x64xf32>
    %c4 = arith.constant 4 : index
    %c0_18 = arith.constant 0 : index
    %44 = vector.load %arg3[%c4, %c0_18] : memref<16x128xf32, #tpu.memory_space<vmem>>, vector<1x64xf32>
    %c5 = arith.constant 5 : index
    %c0_19 = arith.constant 0 : index
    %45 = vector.load %arg3[%c5, %c0_19] : memref<16x128xf32, #tpu.memory_space<vmem>>, vector<1x64xf32>
    %cst_20 = arith.constant dense<0.000000e+00> : vector<200xf32>
    %46 = vector.multi_reduction <add>, %43, %cst_20 [1] : vector<200x64xf32> to vector<200xf32>
    %47 = vector.shape_cast %46 : vector<200xf32> to vector<200x1xf32>
    %cst_21 = arith.constant 6.400000e+01 : f32
    %48 = vector.broadcast %cst_21 : f32 to vector<200x1xf32>
    %49 = arith.divf %47, %48 : vector<200x1xf32>
    %50 = arith.mulf %43, %43 : vector<200x64xf32>
    %cst_22 = arith.constant dense<0.000000e+00> : vector<200xf32>
    %51 = vector.multi_reduction <add>, %50, %cst_22 [1] : vector<200x64xf32> to vector<200xf32>
    %52 = vector.shape_cast %51 : vector<200xf32> to vector<200x1xf32>
    %cst_23 = arith.constant 6.400000e+01 : f32
    %53 = vector.broadcast %cst_23 : f32 to vector<200x1xf32>
    %54 = arith.divf %52, %53 : vector<200x1xf32>
    %55 = arith.mulf %49, %49 : vector<200x1xf32>
    %56 = arith.subf %54, %55 : vector<200x1xf32>
    %cst_24 = arith.constant 0.000000e+00 : f32
    %57 = vector.broadcast %cst_24 : f32 to vector<200x1xf32>
    %58 = arith.maximumf %56, %57 : vector<200x1xf32>
    %59 = vector.broadcast %49 : vector<200x1xf32> to vector<200x64xf32>
    %60 = arith.subf %43, %59 : vector<200x64xf32>
    %cst_25 = arith.constant 9.99999974E-6 : f32
    %61 = vector.broadcast %cst_25 : f32 to vector<200x1xf32>
    %62 = arith.addf %58, %61 : vector<200x1xf32>
    %63 = math.rsqrt %62 : vector<200x1xf32>
    %64 = vector.broadcast %63 : vector<200x1xf32> to vector<200x64xf32>
    %65 = arith.mulf %60, %64 : vector<200x64xf32>
    %66 = vector.broadcast %44 : vector<1x64xf32> to vector<200x64xf32>
    %67 = arith.mulf %65, %66 : vector<200x64xf32>
    %68 = vector.broadcast %45 : vector<1x64xf32> to vector<200x64xf32>
    %69 = arith.addf %67, %68 : vector<200x64xf32>
    %cst_26 = arith.constant 0.000000e+00 : f32
    %70 = vector.broadcast %cst_26 : f32 to vector<200x64xf32>
    %71 = arith.maximumf %69, %70 : vector<200x64xf32>
    %72 = arith.truncf %71 : vector<200x64xf32> to vector<200x64xbf16>
    %c96 = arith.constant 96 : index
    %c0_27 = arith.constant 0 : index
    %73 = vector.load %arg2[%c96, %c0_27] : memref<224x128xbf16, #tpu.memory_space<vmem>>, vector<64x32xbf16>
    %cst_28 = arith.constant dense<0.000000e+00> : vector<200x32xf32>
    %74 = tpu.matmul %72, %73, %cst_28 {dimension_numbers = #tpu.dot_dimension_numbers<[1], [0], [0], [1], [0, 0, 1, 1], [], []>} : vector<200x64xbf16>, vector<64x32xbf16>, vector<200x32xf32> -> vector<200x32xf32>
    %c6 = arith.constant 6 : index
    %c0_29 = arith.constant 0 : index
    %75 = vector.load %arg3[%c6, %c0_29] : memref<16x128xf32, #tpu.memory_space<vmem>>, vector<1x32xf32>
    %76 = vector.broadcast %75 : vector<1x32xf32> to vector<200x32xf32>
    %77 = arith.addf %74, %76 : vector<200x32xf32>
    %c7 = arith.constant 7 : index
    %c0_30 = arith.constant 0 : index
    %78 = vector.load %arg3[%c7, %c0_30] : memref<16x128xf32, #tpu.memory_space<vmem>>, vector<1x32xf32>
    %c8 = arith.constant 8 : index
    %c0_31 = arith.constant 0 : index
    %79 = vector.load %arg3[%c8, %c0_31] : memref<16x128xf32, #tpu.memory_space<vmem>>, vector<1x32xf32>
    %cst_32 = arith.constant dense<0.000000e+00> : vector<200xf32>
    %80 = vector.multi_reduction <add>, %77, %cst_32 [1] : vector<200x32xf32> to vector<200xf32>
    %81 = vector.shape_cast %80 : vector<200xf32> to vector<200x1xf32>
    %cst_33 = arith.constant 3.200000e+01 : f32
    %82 = vector.broadcast %cst_33 : f32 to vector<200x1xf32>
    %83 = arith.divf %81, %82 : vector<200x1xf32>
    %84 = arith.mulf %77, %77 : vector<200x32xf32>
    %cst_34 = arith.constant dense<0.000000e+00> : vector<200xf32>
    %85 = vector.multi_reduction <add>, %84, %cst_34 [1] : vector<200x32xf32> to vector<200xf32>
    %86 = vector.shape_cast %85 : vector<200xf32> to vector<200x1xf32>
    %cst_35 = arith.constant 3.200000e+01 : f32
    %87 = vector.broadcast %cst_35 : f32 to vector<200x1xf32>
    %88 = arith.divf %86, %87 : vector<200x1xf32>
    %89 = arith.mulf %83, %83 : vector<200x1xf32>
    %90 = arith.subf %88, %89 : vector<200x1xf32>
    %cst_36 = arith.constant 0.000000e+00 : f32
    %91 = vector.broadcast %cst_36 : f32 to vector<200x1xf32>
    %92 = arith.maximumf %90, %91 : vector<200x1xf32>
    %93 = vector.broadcast %83 : vector<200x1xf32> to vector<200x32xf32>
    %94 = arith.subf %77, %93 : vector<200x32xf32>
    %cst_37 = arith.constant 9.99999974E-6 : f32
    %95 = vector.broadcast %cst_37 : f32 to vector<200x1xf32>
    %96 = arith.addf %92, %95 : vector<200x1xf32>
    %97 = math.rsqrt %96 : vector<200x1xf32>
    %98 = vector.broadcast %97 : vector<200x1xf32> to vector<200x32xf32>
    %99 = arith.mulf %94, %98 : vector<200x32xf32>
    %100 = vector.broadcast %78 : vector<1x32xf32> to vector<200x32xf32>
    %101 = arith.mulf %99, %100 : vector<200x32xf32>
    %102 = vector.broadcast %79 : vector<1x32xf32> to vector<200x32xf32>
    %103 = arith.addf %101, %102 : vector<200x32xf32>
    %cst_38 = arith.constant 0.000000e+00 : f32
    %104 = vector.broadcast %cst_38 : f32 to vector<200x32xf32>
    %105 = arith.maximumf %103, %104 : vector<200x32xf32>
    %106 = arith.truncf %105 : vector<200x32xf32> to vector<200x32xbf16>
    %c160 = arith.constant 160 : index
    %c0_39 = arith.constant 0 : index
    %107 = vector.load %arg2[%c160, %c0_39] : memref<224x128xbf16, #tpu.memory_space<vmem>>, vector<32x32xbf16>
    %cst_40 = arith.constant dense<0.000000e+00> : vector<200x32xf32>
    %108 = tpu.matmul %106, %107, %cst_40 {dimension_numbers = #tpu.dot_dimension_numbers<[1], [0], [0], [1], [0, 0, 1, 1], [], []>} : vector<200x32xbf16>, vector<32x32xbf16>, vector<200x32xf32> -> vector<200x32xf32>
    %c9 = arith.constant 9 : index
    %c0_41 = arith.constant 0 : index
    %109 = vector.load %arg3[%c9, %c0_41] : memref<16x128xf32, #tpu.memory_space<vmem>>, vector<1x32xf32>
    %110 = vector.broadcast %109 : vector<1x32xf32> to vector<200x32xf32>
    %111 = arith.addf %108, %110 : vector<200x32xf32>
    %c10 = arith.constant 10 : index
    %c0_42 = arith.constant 0 : index
    %112 = vector.load %arg3[%c10, %c0_42] : memref<16x128xf32, #tpu.memory_space<vmem>>, vector<1x32xf32>
    %c11 = arith.constant 11 : index
    %c0_43 = arith.constant 0 : index
    %113 = vector.load %arg3[%c11, %c0_43] : memref<16x128xf32, #tpu.memory_space<vmem>>, vector<1x32xf32>
    %cst_44 = arith.constant dense<0.000000e+00> : vector<200xf32>
    %114 = vector.multi_reduction <add>, %111, %cst_44 [1] : vector<200x32xf32> to vector<200xf32>
    %115 = vector.shape_cast %114 : vector<200xf32> to vector<200x1xf32>
    %cst_45 = arith.constant 3.200000e+01 : f32
    %116 = vector.broadcast %cst_45 : f32 to vector<200x1xf32>
    %117 = arith.divf %115, %116 : vector<200x1xf32>
    %118 = arith.mulf %111, %111 : vector<200x32xf32>
    %cst_46 = arith.constant dense<0.000000e+00> : vector<200xf32>
    %119 = vector.multi_reduction <add>, %118, %cst_46 [1] : vector<200x32xf32> to vector<200xf32>
    %120 = vector.shape_cast %119 : vector<200xf32> to vector<200x1xf32>
    %cst_47 = arith.constant 3.200000e+01 : f32
    %121 = vector.broadcast %cst_47 : f32 to vector<200x1xf32>
    %122 = arith.divf %120, %121 : vector<200x1xf32>
    %123 = arith.mulf %117, %117 : vector<200x1xf32>
    %124 = arith.subf %122, %123 : vector<200x1xf32>
    %cst_48 = arith.constant 0.000000e+00 : f32
    %125 = vector.broadcast %cst_48 : f32 to vector<200x1xf32>
    %126 = arith.maximumf %124, %125 : vector<200x1xf32>
    %127 = vector.broadcast %117 : vector<200x1xf32> to vector<200x32xf32>
    %128 = arith.subf %111, %127 : vector<200x32xf32>
    %cst_49 = arith.constant 9.99999974E-6 : f32
    %129 = vector.broadcast %cst_49 : f32 to vector<200x1xf32>
    %130 = arith.addf %126, %129 : vector<200x1xf32>
    %131 = math.rsqrt %130 : vector<200x1xf32>
    %132 = vector.broadcast %131 : vector<200x1xf32> to vector<200x32xf32>
    %133 = arith.mulf %128, %132 : vector<200x32xf32>
    %134 = vector.broadcast %112 : vector<1x32xf32> to vector<200x32xf32>
    %135 = arith.mulf %133, %134 : vector<200x32xf32>
    %136 = vector.broadcast %113 : vector<1x32xf32> to vector<200x32xf32>
    %137 = arith.addf %135, %136 : vector<200x32xf32>
    %138 = arith.addf %137, %37 : vector<200x32xf32>
    %cst_50 = arith.constant 0.000000e+00 : f32
    %139 = vector.broadcast %cst_50 : f32 to vector<200x32xf32>
    %140 = arith.maximumf %138, %139 : vector<200x32xf32>
    %141 = arith.truncf %140 : vector<200x32xf32> to vector<200x32xbf16>
    %c192 = arith.constant 192 : index
    %c0_51 = arith.constant 0 : index
    %142 = vector.load %arg2[%c192, %c0_51] : memref<224x128xbf16, #tpu.memory_space<vmem>>, vector<32x1xbf16>
    %cst_52 = arith.constant dense<0.000000e+00> : vector<200x1xf32>
    %143 = tpu.matmul %141, %142, %cst_52 {dimension_numbers = #tpu.dot_dimension_numbers<[1], [0], [0], [1], [0, 0, 1, 1], [], []>} : vector<200x32xbf16>, vector<32x1xbf16>, vector<200x1xf32> -> vector<200x1xf32>
    %c12 = arith.constant 12 : index
    %c0_53 = arith.constant 0 : index
    %144 = vector.load %arg3[%c12, %c0_53] : memref<16x128xf32, #tpu.memory_space<vmem>>, vector<1x1xf32>
    %145 = vector.broadcast %144 : vector<1x1xf32> to vector<200x1xf32>
    %146 = arith.addf %143, %145 : vector<200x1xf32>
    %c0_54 = arith.constant 0 : index
    %c0_55 = arith.constant 0 : index
    %147 = vector.load %arg4[%c0_54, %c0_55] : memref<200x1xf32, #tpu.memory_space<vmem>>, vector<200x1xf32>
    tpu.vector_store %arg4[%c0_54, %c0_55], %146 {strides = array<i32>} : memref<200x1xf32, #tpu.memory_space<vmem>>, vector<200x1xf32>,
    return
  }
  func.func @transform_0(%arg0: i32) -> (i32, i32) {
    %c0_i32 = arith.constant 0 : i32
    %c0_i32_0 = arith.constant 0 : i32
    return %arg0, %c0_i32 : i32, i32
  }
  func.func @transform_1(%arg0: i32) -> (i32, i32) {
    %c0_i32 = arith.constant 0 : i32
    %c0_i32_0 = arith.constant 0 : i32
    %c0_i32_1 = arith.constant 0 : i32
    return %c0_i32, %c0_i32_0 : i32, i32
  }
  func.func @transform_2(%arg0: i32) -> (i32, i32) {
    %c0_i32 = arith.constant 0 : i32
    %c0_i32_0 = arith.constant 0 : i32
    %c0_i32_1 = arith.constant 0 : i32
    return %c0_i32, %c0_i32_0 : i32, i32
  }
  func.func @transform_3(%arg0: i32) -> (i32, i32) {
    %c0_i32 = arith.constant 0 : i32
    %c0_i32_0 = arith.constant 0 : i32
    return %arg0, %c0_i32 : i32, i32
  }
}

</mosaic_0001>

<bundles_post_ra>
// kernel: _lambda_.1
= control target key start
LH: loop header
LB: loop body
LE: loop exit
PB: predicated region body
PF: predicated region fallthrough
CT: control target
= control target key end

     0   :  { %vm121_vm0 = vcmask 261120   ;;  %vm236_vm1 = vcmask 523264   ;;  %s4282_s24 = smov 64   ;;  %s7546_s1 = inlined_call_operand.vmem [shape: bf16[224,128], index: 1, kind: input, shape index: {}]   ;;  %s7547_s0 = inlined_call_operand.vmem [shape: bf16[200,32], index: 0, kind: input, shape index: {}]   ;;  %s7548_s2 = inlined_call_operand.vmem [shape: f32[16,128], index: 2, kind: input, shape index: {}]   ;;  %s7549_s3 = inlined_call_operand.vmem [shape: f32[200,1], index: 3, kind: output, shape index: {}]  }
   0x1   :  { %v4031_v0 = vld [vmem:[%s7546_s1 + $0x8] sm:$0xff]  ;;  %v4030_v1 = vld [vmem:[%s7546_s1] sm:$0xff]  ;;  %v4024_v6 = vld [vmem:[%s7547_s0 + $0x30] sm:$0xff] }
   0x2   :  { %167 = vmatpush.bf16.msra.mxu0 %v4031_v0  ;;  %4044 = vmatpush.bf16.msra.mxu1 %v4031_v0  ;;  %v4018_v2 = vld [vmem:[%s7547_s0] sm:$0xff]  ;;  %v4023_v4 = vld [vmem:[%s7547_s0 + $0x28] sm:$0xff]  ;;  %v4020_v8 = vld [vmem:[%s7547_s0 + $0x10] sm:$0xff] }
   0x3   :  { %v4022_v3 = vld [vmem:[%s7547_s0 + $0x20] sm:$0xff]  ;;  %4045 = vmatpush.bf16.msra.mxu2 %v4031_v0  ;;  %4046 = vmatpush.bf16.msra.mxu3 %v4031_v0  ;;  %v4019_v5 = vld [vmem:[%s7547_s0 + $0x8] sm:$0xff]  ;;  %v4025_v9 = vld [vmem:[%s7547_s0 + $0x38] sm:$0xff] }
   0x4   :  { %v4027_v7 = vld [vmem:[%s7547_s0 + $0x48] sm:$0xff]  ;;  %v4028_v10 = vld [vmem:[%s7547_s0 + $0x50] sm:$0xff]  ;;  %v4021_v11 = vld [vmem:[%s7547_s0 + $0x18] sm:$0xff] }
   0x5   :  { %v4026_v12 = vld [vmem:[%s7547_s0 + $0x40] sm:$0xff]  ;;  %v4029_v13 = vld [vmem:[%s7547_s0 + $0x58] sm:$0xff] }
   0x6   :  { %168 = vmatpush.bf16.msra.mxu0 %v4030_v1  ;;  %4047 = vmatpush.bf16.msra.mxu1 %v4030_v1  ;;  %v39_v14 = vld [vmem:[%s7547_s0 + $0x60] sm:$0xf] }
   0x7   :  { %4048 = vmatpush.bf16.msra.mxu2 %v4030_v1  ;;  %4049 = vmatpush.bf16.msra.mxu3 %v4030_v1  ;;  %v95_v15 = vunpack.c.l.b16 %v39_v14  ;;  %v4365_v17 = vld [vmem:[%s7548_s2] ss:$0 sm:$0xff] }
   0x9   :  { %3905 = vmatmul.msk.bf16.vlgmr.msra.gmra.mxu0 %vm121_vm0, %v4018_v2  ;;  %3909 = vmatmul.msk.bf16.vlgmr.msra.gmra.mxu1 %vm121_vm0, %v4022_v3  ;;  %v108_v16 = vpack.c.b16 %v95_v15, %v95_v15 }
   0xa   :  { %3910 = vmatmul.msk.bf16.vlgmr.msra.gmra.mxu2 %vm121_vm0, %v4023_v4  ;;  %3914 = vmatmul.msk.bf16.vlgmr.msra.gmra.mxu3 %vm121_vm0, %v4027_v7 }
  0x19   :  { %3906 = vmatmul.msk.bf16.gmra.mxu0 %vm121_vm0, %v4019_v5 }
  0x1a   :  { %3911 = vmatmul.msk.bf16.gmra.mxu2 %vm121_vm0, %v4024_v6  ;;  %3915 = vmatmul.msk.bf16.gmra.mxu3 %vm121_vm0, %v4028_v10 }
  0x29   :  { %3907 = vmatmul.msk.bf16.gmra.mxu0 %vm121_vm0, %v4020_v8 }
  0x2a   :  { %3912 = vmatmul.msk.bf16.gmra.mxu2 %vm121_vm0, %v4025_v9  ;;  %3916 = vmatmul.msk.bf16.gmra.mxu3 %vm121_vm0, %v4029_v13 }
  0x39   :  { %3908 = vmatmul.msk.bf16.gmra.mxu0 %vm121_vm0, %v4021_v11 }
  0x3a   :  { %3913 = vmatmul.msk.bf16.gmra.mxu2 %vm121_vm0, %v4026_v12  ;;  %3917 = vmatmul.msk.bf16.gmra.mxu3 %vm121_vm0, %v108_v16 }
  0x86   :  { %v170_v18 = vpop.f32.mrf.mxu0  ;;  %v190_v19 = vpop.f32.mrf.mxu1 }
  0x87   :  { %v4368_v20 = vadd.f32 %v4365_v17, %v170_v18  ;;  %v4382_v28 = vadd.f32 %v4365_v17, %v190_v19 }
  0x89   :  { %v237_v21 = vsel %vm236_vm1, %v4368_v20, 0.0  ;;  %v344_v22 = vmul.f32 %v4368_v20, %v4368_v20  ;;  %v352_v33 = vmul.f32 %v4382_v28, %v4382_v28  ;;  %v261_v39 = vsel %vm236_vm1, %v4382_v28, 0.0 }
  0x8a   :  { %238 = vadd.xlane.f32.xlu0 %v237_v21 }
  0x8b   :  { %v369_v23 = vsel %vm236_vm1, %v344_v22, 0.0  ;;  %v393_v38 = vsel %vm236_vm1, %v352_v33, 0.0 }
  0x8c   :  { %370 = vadd.xlane.f32.xlu1 %v369_v23 }
  0x8d   :  { %v195_v35 = vpop.f32.mrf.mxu2  ;;  %v4430_v57 = vpop.f32.mrf.mxu3 }
  0x8e   :  { %v172_v24 = vpop.f32.mrf.mxu0  ;;  %v192_v25 = vpop.f32.mrf.mxu1  ;;  %v4412_v47 = vadd.f32 %v4365_v17, %v195_v35 }
  0x8f   :  { %v4376_v26 = vadd.f32 %v4365_v17, %v172_v24  ;;  %v4379_v27 = vadd.f32 %v4365_v17, %v192_v25 }
  0x90   :  { %v267_v51 = vsel %vm236_vm1, %v4412_v47, 0.0  ;;  %v354_v3 = vmul.f32 %v4412_v47, %v4412_v47 }
  0x91   :  { %v264_v29 = vsel %vm236_vm1, %v4379_v27, 0.0  ;;  %v240_v30 = vsel %vm236_vm1, %v4376_v26, 0.0  ;;  %v345_v31 = vmul.f32 %v4376_v26, %v4376_v26  ;;  %v353_v53 = vmul.f32 %v4379_v27, %v4379_v27 }
  0x92   :  { %265 = vadd.xlane.f32.xlu2 %v264_v29  ;;  %241 = vadd.xlane.f32.xlu0 %v240_v30  ;;  %v399_v8 = vsel %vm236_vm1, %v354_v3, 0.0 }
  0x93   :  { %v372_v32 = vsel %vm236_vm1, %v345_v31, 0.0  ;;  %v396_v55 = vsel %vm236_vm1, %v353_v53, 0.0 }
  0x94   :  { %373 = vadd.xlane.f32.xlu1 %v372_v32 }
  0x95   :  { %v197_v43 = vpop.f32.mrf.mxu2  ;;  %v217_v4 = vpop.f32.mrf.mxu3 }
  0x96   :  { %v175_v34 = vpop.f32.mrf.mxu0  ;;  %v4416_v49 = vadd.f32 %v4365_v17, %v197_v43 }
  0x97   :  { %v4394_v36 = vadd.f32 %v4365_v17, %v175_v34 }
  0x98   :  { %v270_v52 = vsel %vm236_vm1, %v4416_v49, 0.0  ;;  %v355_v0 = vmul.f32 %v4416_v49, %v4416_v49 }
  0x99   :  { %v243_v37 = vsel %vm236_vm1, %v4394_v36, 0.0  ;;  %v346_v40 = vmul.f32 %v4394_v36, %v4394_v36 }
  0x9a   :  { %244 = vadd.xlane.f32.xlu2 %v243_v37  ;;  %394 = vadd.xlane.f32.xlu0 %v393_v38  ;;  %v402_v6 = vsel %vm236_vm1, %v355_v0, 0.0 }
  0x9b   :  { %v375_v45 = vsel %vm236_vm1, %v346_v40, 0.0 }
  0x9c   :  { %262 = vadd.xlane.f32.xlu1 %v261_v39 }
  0x9d   :  { %v200_v59 = vpop.f32.mrf.mxu2  ;;  %v220_v15 = vpop.f32.mrf.mxu3 }
  0x9e   :  { %v177_v41 = vpop.f32.mrf.mxu0  ;;  %v4465_v21 = vadd.f32 %v4365_v17, %v200_v59  ;;  %v4281_v59 = vmov 64.0  }
  0x9f   :  { %v4404_v42 = vadd.f32 %v4365_v17, %v177_v41  ;;  %4066 = vrcp.f32 %v4281_v59 }
  0xa0   :  { %v273_v25 = vsel %vm236_vm1, %v4465_v21, 0.0  ;;  %v356_v29 = vmul.f32 %v4465_v21, %v4465_v21 }
  0xa1   :  { %v246_v44 = vsel %vm236_vm1, %v4404_v42, 0.0  ;;  %v347_v46 = vmul.f32 %v4404_v42, %v4404_v42 }
  0xa2   :  { %247 = vadd.xlane.f32.xlu2 %v246_v44  ;;  %376 = vadd.xlane.f32.xlu0 %v375_v45  ;;  %v405_v34 = vsel %vm236_vm1, %v356_v29, 0.0 }
  0xa3   :  { %v378_v48 = vsel %vm236_vm1, %v347_v46, 0.0 }
  0xa4   :  { %379 = vadd.xlane.f32.xlu1 %v378_v48 }
  0xa5   :  { %v202_v5 = vpop.f32.mrf.mxu2  ;;  %v222_v30 = vpop.f32.mrf.mxu3 }
  0xa6   :  { %v180_v50 = vpop.f32.mrf.mxu0  ;;  %v4468_v22 = vadd.f32 %v4365_v17, %v202_v5  ;;  %v4067_v0 = vpop.eup %4066  ;;  %v4526_v5 = vadd.f32 %v4365_v17, %v222_v30 }
  0xa7   :  { %v4425_v54 = vadd.f32 %v4365_v17, %v180_v50  ;;  %v4502_v50 = vadd.f32 %v4365_v17, %v4430_v57  ;;  %vm317_vm2 = vweird.f32 %v4067_v0 }
  0xa8   :  { %7558 = vst [vmem:[#allocation2_spill] sm:$0xff] %v4468_v22  ;;  %v276_v24 = vsel %vm236_vm1, %v4468_v22, 0.0  ;;  %v357_v33 = vmul.f32 %v4468_v22, %v4468_v22 }
  0xa9   :  { %v348_v56 = vmul.f32 %v4425_v54, %v4425_v54  ;;  %v249_v61 = vsel %vm236_vm1, %v4425_v54, 0.0  ;;  %7559 = vst [vmem:[#allocation3_spill] sm:$0xff] %v4502_v50  ;;  %v362_v57 = vmul.f32 %v4502_v50, %v4502_v50 }
  0xaa   :  { %268 = vadd.xlane.f32.xlu2 %v267_v51  ;;  %271 = vadd.xlane.f32.xlu0 %v270_v52  ;;  %v408_v37 = vsel %vm236_vm1, %v357_v33, 0.0  ;;  %7562 = vst [vmem:[#allocation6_spill] sm:$0xff] %v4526_v5  ;;  %v4035_v33 = vld [vmem:[%s7546_s1 + $0x28] sm:$0xff] }
  0xab   :  { %v381_v63 = vsel %vm236_vm1, %v348_v56, 0.0  ;;  %1061 = vmatpush.bf16.msrb.mxu1 %v4035_v33 }
  0xac   :  { %397 = vadd.xlane.f32.xlu1 %v396_v55  ;;  %v4509_v55 = vadd.f32 %v4365_v17, %v217_v4 }
  0xad   :  { %v205_v16 = vpop.f32.mrf.mxu2  ;;  %v225_v41 = vpop.f32.mrf.mxu3 }
  0xae   :  { %v182_v58 = vpop.f32.mrf.mxu0  ;;  %v4478_v32 = vadd.f32 %v4365_v17, %v205_v16  ;;  %7560 = vst [vmem:[#allocation4_spill] sm:$0xff] %v4509_v55  ;;  %v294_v3 = vsel %vm236_vm1, %v4509_v55, 0.0 }
  0xaf   :  { %v4433_v60 = vadd.f32 %v4365_v17, %v182_v58  ;;  %v291_v58 = vsel %vm236_vm1, %v4502_v50, 0.0 }
  0xb0   :  { %v279_v35 = vsel %vm236_vm1, %v4478_v32, 0.0  ;;  %v358_v40 = vmul.f32 %v4478_v32, %v4478_v32 }
  0xb1   :  { %v252_v62 = vsel %vm236_vm1, %v4433_v60, 0.0  ;;  %v349_v9 = vmul.f32 %v4433_v60, %v4433_v60 }
  0xb2   :  { %250 = vadd.xlane.f32.xlu2 %v249_v61  ;;  %253 = vadd.xlane.f32.xlu0 %v252_v62  ;;  %v411_v46 = vsel %vm236_vm1, %v358_v40, 0.0  ;;  %v363_v61 = vmul.f32 %v4509_v55, %v4509_v55  ;;  %v423_v62 = vsel %vm236_vm1, %v362_v57, 0.0  ;;  %v4033_v57 = vld [vmem:[%s7546_s1 + $0x18] sm:$0xff] }
  0xb3   :  { %v384_v12 = vsel %vm236_vm1, %v349_v9, 0.0 }
  0xb4   :  { %382 = vadd.xlane.f32.xlu1 %v381_v63  ;;  %v426_v4 = vsel %vm236_vm1, %v363_v61, 0.0 }
  0xb5   :  { %v207_v31 = vpop.f32.mrf.mxu2  ;;  %v227_v53 = vpop.f32.mrf.mxu3 }
  0xb6   :  { %v185_v1 = vpop.f32.mrf.mxu0  ;;  %v4487_v38 = vadd.f32 %v4365_v17, %v207_v31  ;;  %v4539_v16 = vadd.f32 %v4365_v17, %v227_v53 }
  0xb7   :  { %v4443_v2 = vadd.f32 %v4365_v17, %v185_v1  ;;  %v4520_v1 = vadd.f32 %v4365_v17, %v220_v15 }
  0xb8   :  { %v359_v39 = vmul.f32 %v4487_v38, %v4487_v38  ;;  %v282_v44 = vsel %vm236_vm1, %v4487_v38, 0.0  ;;  %7564 = vst [vmem:[#allocation8_spill] sm:$0xff] %v4539_v16  ;;  %v367_v31 = vmul.f32 %v4539_v16, %v4539_v16 }
  0xb9   :  { %v255_v7 = vsel %vm236_vm1, %v4443_v2, 0.0  ;;  %v350_v19 = vmul.f32 %v4443_v2, %v4443_v2  ;;  %7561 = vst [vmem:[#allocation5_spill] sm:$0xff] %v4520_v1 }
  0xba   :  { %403 = vadd.xlane.f32.xlu2 %v402_v6  ;;  %256 = vadd.xlane.f32.xlu0 %v255_v7  ;;  %v414_v45 = vsel %vm236_vm1, %v359_v39, 0.0  ;;  %v313_v6 = vmul.f32 64.0, %v4067_v0  ;;  %v364_v7 = vmul.f32 %v4520_v1, %v4520_v1 }
  0xbb   :  { %v387_v23 = vsel %vm236_vm1, %v350_v19, 0.0 }
  0xbc   :  { %400 = vadd.xlane.f32.xlu1 %v399_v8  ;;  %v300_v8 = vsel %vm236_vm1, %v4526_v5, 0.0  ;;  %v314_v9 = vsub.f32 1.0, %v313_v6 }
  0xbd   :  { %v210_v43 = vpop.f32.mrf.mxu2  ;;  %v230_v63 = vpop.f32.mrf.mxu3 }
  0xbe   :  { %v187_v10 = vpop.f32.mrf.mxu0  ;;  %v4498_v48 = vadd.f32 %v4365_v17, %v210_v43  ;;  %v315_v15 = vmul.f32 %v4067_v0, %v314_v9  ;;  %v4574_v53 = vadd.f32 %v4365_v17, %v230_v63 }
  0xbf   :  { %v4454_v11 = vadd.f32 %v4365_v17, %v187_v10 }
  0xc0   :  { %v360_v51 = vmul.f32 %v4498_v48, %v4498_v48  ;;  %v285_v52 = vsel %vm236_vm1, %v4498_v48, 0.0  ;;  %7565 = vst [vmem:[#allocation9_spill] sm:$0xff] %v4574_v53 }
  0xc1   :  { %v258_v13 = vsel %vm236_vm1, %v4454_v11, 0.0  ;;  %v351_v14 = vmul.f32 %v4454_v11, %v4454_v11 }
  0xc2   :  { %385 = vadd.xlane.f32.xlu2 %v384_v12  ;;  %v417_v56 = vsel %vm236_vm1, %v360_v51, 0.0  ;;  %v297_v12 = vsel %vm236_vm1, %v4520_v1, 0.0  ;;  %v4034_v51 = vld [vmem:[%s7546_s1 + $0x20] sm:$0xff] }
  0xc3   :  { %v390_v18 = vsel %vm236_vm1, %v351_v14, 0.0  ;;  %v4536_v14 = vadd.f32 %v4365_v17, %v225_v41  ;;  %v438_v41 = vsel %vm236_vm1, %v367_v31, 0.0  ;;  %1062 = vmatpush.bf16.msrb.mxu1 %v4034_v51 }
  0xc4   :  { %259 = vadd.xlane.f32.xlu1 %v258_v13  ;;  %391 = vadd.xlane.f32.xlu0 %v390_v18  ;;  %v429_v13 = vsel %vm236_vm1, %v364_v7, 0.0  ;;  %v365_v18 = vmul.f32 %v4526_v5, %v4526_v5  ;;  %v368_v7 = vmul.f32 %v4574_v53, %v4574_v53 }
  0xc5   :  { %v232_v10 = vpop.f32.mrf.mxu3  ;;  %7563 = vst [vmem:[#allocation7_spill] sm:$0xff] %v4536_v14  ;;  %v303_v19 = vsel %vm236_vm1, %v4536_v14, 0.0  ;;  %v212_v29 = vpop.f32.mrf.mxu2 }
  0xc7   :  { %1063 = vmatpush.bf16.msrb.mxu1 %v4033_v57 }
  0xca   :  { %388 = vadd.xlane.f32.xlu2 %v387_v23  ;;  %v316_v23 = vadd.f32 %v4067_v0, %v315_v15 }
  0xcc   :  { %277 = vadd.xlane.f32.xlu1 %v276_v24  ;;  %274 = vadd.xlane.f32.xlu0 %v273_v25  ;;  %v432_v24 = vsel %vm236_vm1, %v365_v18, 0.0  ;;  %v306_v25 = vsel %vm236_vm1, %v4539_v16, 0.0  ;;  %v4548_v30 = vsel %vm317_vm2, %v4067_v0, %v316_v23 }
  0xd2   :  { %406 = vadd.xlane.f32.xlu2 %v405_v34 }
  0xd4   :  { %280 = vadd.xlane.f32.xlu1 %v279_v35  ;;  %409 = vadd.xlane.f32.xlu0 %v408_v37  ;;  %v4556_v35 = vadd.f32 %v4365_v17, %v212_v29  ;;  %v366_v37 = vmul.f32 %v4536_v14, %v4536_v14  ;;  %v309_v17 = vsel %vm236_vm1, %v4574_v53, 0.0 }
  0xd6   :  { %v361_v29 = vmul.f32 %v4556_v35, %v4556_v35 }
  0xda   :  { %283 = vadd.xlane.f32.xlu2 %v282_v44 }
  0xdc   :  { %415 = vadd.xlane.f32.xlu1 %v414_v45  ;;  %412 = vadd.xlane.f32.xlu0 %v411_v46  ;;  %v435_v45 = vsel %vm236_vm1, %v366_v37, 0.0  ;;  %v288_v46 = vsel %vm236_vm1, %v4556_v35, 0.0 }
  0xe2   :  { %286 = vadd.xlane.f32.xlu2 %v285_v52 }
  0xe4   :  { %418 = vadd.xlane.f32.xlu1 %v417_v56  ;;  %292 = vadd.xlane.f32.xlu0 %v291_v58 }
  0xea   :  { %424 = vadd.xlane.f32.xlu2 %v423_v62 }
  0xec   :  { %295 = vadd.xlane.f32.xlu1 %v294_v3  ;;  %427 = vadd.xlane.f32.xlu0 %v426_v4  ;;  %v4032_v4 = vld [vmem:[%s7546_s1 + $0x10] sm:$0xff] }
  0xed   :  { %1064 = vmatpush.bf16.msrb.mxu1 %v4032_v4 }
  0xf2   :  { %301 = vadd.xlane.f32.xlu2 %v300_v8 }
  0xf4   :  { %298 = vadd.xlane.f32.xlu1 %v297_v12  ;;  %430 = vadd.xlane.f32.xlu0 %v429_v13 }
  0xfa   :  { %304 = vadd.xlane.f32.xlu2 %v303_v19  ;;  %v441_v19 = vsel %vm236_vm1, %v368_v7, 0.0 }
  0xfc   :  { %433 = vadd.xlane.f32.xlu1 %v432_v24  ;;  %307 = vadd.xlane.f32.xlu0 %v306_v25 }
  0xfd   :  { %v239_v34 = vpop.xlane.xlu0 %238 }
  0xfe   :  { %v4561_v39 = vmul.f32 %v4548_v30, %v239_v34 }
  0xff   :  { %v371_v40 = vpop.xlane.xlu1 %370 }
 0x100   :  { %v469_v43 = vmul.f32 %v4561_v39, %v4561_v39  ;;  %v444_v44 = vmul.f32 %v371_v40, %v4548_v30  ;;  %v544_v7 = vsub.f32 %v4368_v20, %v4561_v39 }
 0x102   :  { %v494_v52 = vsub.f32 %v444_v44, %v469_v43  ;;  %439 = vadd.xlane.f32.xlu2 %v438_v41  ;;  %v946_v41 = vmax.f32 %v4368_v20, 0.0 }
 0x104   :  { %v519_v56 = vmax.f32 %v494_v52, 0.0  ;;  %436 = vadd.xlane.f32.xlu1 %v435_v45  ;;  %289 = vadd.xlane.f32.xlu0 %v288_v46  ;;  %v420_v46 = vsel %vm236_vm1, %v361_v29, 0.0 }
 0x105   :  { %v4576_v58 = vpop.xlane.xlu2 %265  ;;  %v242_v59 = vpop.xlane.xlu0 %241 }
 0x106   :  { %v569_v61 = vadd.f32 1e-05, %v519_v56  ;;  %v4582_v62 = vmul.f32 %v4548_v30, %v242_v59 }
 0x107   :  { %v374_v0 = vpop.xlane.xlu1 %373 }
 0x108   :  { %4068 = vrsqrt.f32 %v569_v61  ;;  %v470_v63 = vmul.f32 %v4582_v62, %v4582_v62  ;;  %v445_v3 = vmul.f32 %v374_v0, %v4548_v30  ;;  %vm600_vm4 = vweird.f32 %v569_v61 }
 0x109   :  { %v545_v39 = vsub.f32 %v4376_v26, %v4582_v62 }
 0x10a   :  { %310 = vadd.xlane.f32.xlu2 %v309_v17  ;;  %v495_v6 = vsub.f32 %v445_v3, %v470_v63  ;;  %v947_v3 = vmax.f32 %v4376_v26, 0.0 }
 0x10c   :  { %v520_v8 = vmax.f32 %v495_v6, 0.0 }
 0x10d   :  { %v245_v9 = vpop.xlane.xlu2 %244  ;;  %v4594_v10 = vpop.xlane.xlu0 %394 }
 0x10e   :  { %v4069_v12 = vpop.eup %4068  ;;  %v570_v15 = vadd.f32 1e-05, %v520_v8  ;;  %v4600_v25 = vmul.f32 %v4548_v30, %v245_v9 }
 0x10f   :  { %v595_v13 = vmul.f32 %v4069_v12, %v569_v61  ;;  %v4596_v18 = vpop.xlane.xlu1 %262  ;;  %vm601_vm3 = vweird.f32 %v4069_v12 }
 0x110   :  { %4070 = vrsqrt.f32 %v570_v15  ;;  %v471_v44 = vmul.f32 %v4600_v25, %v4600_v25  ;;  %vm602_vm5 = vmor %vm600_vm4, %vm601_vm3  ;;  %vm610_vm7 = vweird.f32 %v570_v15 }
 0x111   :  { %v596_v23 = vmul.f32 %v4069_v12, %v595_v13 }
 0x112   :  { %442 = vadd.xlane.f32.xlu2 %v441_v19 }
 0x113   :  { %v597_v24 = vmul.f32 0.5, %v596_v23 }
 0x115   :  { %v598_v31 = vsub.f32 1.5, %v597_v24  ;;  %v248_v33 = vpop.xlane.xlu2 %247  ;;  %v377_v34 = vpop.xlane.xlu0 %376  ;;  %v4627_v24 = vld [vmem:[%s7548_s2 + $0x1] ss:$0 sm:$0xff] }
 0x116   :  { %v4605_v37 = vmul.f32 %v4548_v30, %v248_v33  ;;  %v446_v40 = vmul.f32 %v377_v34, %v4548_v30  ;;  %v4071_v43 = vpop.eup %4070  ;;  %v949_v34 = vmax.f32 %v4404_v42, 0.0 }
 0x117   :  { %v380_v45 = vpop.xlane.xlu1 %379  ;;  %v599_v51 = vmul.f32 %v4069_v12, %v598_v31  ;;  %v605_v52 = vmul.f32 %v4071_v43, %v570_v15  ;;  %vm611_vm6 = vweird.f32 %v4071_v43 }
 0x118   :  { %v472_v56 = vmul.f32 %v4605_v37, %v4605_v37  ;;  %3551 = vrot.lane.b32.xlu0 %v946_v41, %s4282_s24  ;;  %v496_v59 = vsub.f32 %v446_v40, %v471_v44  ;;  %v447_v57 = vmul.f32 %v380_v45, %v4548_v30  ;;  %vm612_vm8 = vmor %vm610_vm7, %vm611_vm6  ;;  %v4638_v41 = vld [vmem:[%s7548_s2 + $0x2] ss:$0 sm:$0xff] }
 0x119   :  { %v606_v0 = vmul.f32 %v4071_v43, %v605_v52  ;;  %v603_v4 = vsel %vm602_vm5, %v4069_v12, %v599_v51 }
 0x11a   :  { %421 = vadd.xlane.f32.xlu2 %v420_v46  ;;  %v521_v17 = vmax.f32 %v496_v59, 0.0  ;;  %v497_v63 = vsub.f32 %v447_v57, %v472_v56  ;;  %v844_v23 = vmul.f32 %v603_v4, %v544_v7  ;;  %v950_v7 = vmax.f32 %v4425_v54, 0.0 }
 0x11b   :  { %v607_v6 = vmul.f32 0.5, %v606_v0 }
 0x11c   :  { %v571_v8 = vadd.f32 1e-05, %v521_v17  ;;  %v522_v9 = vmax.f32 %v497_v63, 0.0  ;;  %v870_v40 = vmul.f32 %v4627_v24, %v844_v23 }
 0x11d   :  { %v4619_v13 = vpop.xlane.xlu2 %268  ;;  %3553 = vrot.lane.b32.xlu1 %v947_v3, %s4282_s24  ;;  %v4622_v19 = vpop.xlane.xlu0 %271  ;;  %v608_v61 = vsub.f32 1.5, %v607_v6 }
 0x11e   :  { %4072 = vrsqrt.f32 %v571_v8  ;;  %v572_v12 = vadd.f32 1e-05, %v522_v9  ;;  %v896_v52 = vadd.f32 %v4638_v41, %v870_v40  ;;  %vm620_vm10 = vweird.f32 %v571_v8 }
 0x11f   :  { %v4629_v29 = vpop.xlane.xlu1 %397  ;;  %v609_v20 = vmul.f32 %v4071_v43, %v608_v61 }
 0x120   :  { %4074 = vrsqrt.f32 %v572_v12  ;;  %v921_v4 = vmax.f32 %v896_v52, 0.0  ;;  %vm630_vm13 = vweird.f32 %v572_v12 }
 0x121   :  { %v613_v31 = vsel %vm612_vm8, %v4071_v43, %v609_v20 }
 0x122   :  { %v845_v33 = vmul.f32 %v613_v31, %v545_v39 }
 0x124   :  { %v4073_v44 = vpop.eup %4072  ;;  %v871_v26 = vmul.f32 %v4627_v24, %v845_v33 }
 0x125   :  { %v251_v45 = vpop.xlane.xlu2 %250  ;;  %3557 = vrot.lane.b32.xlu1 %v949_v34, %s4282_s24  ;;  %v254_v15 = vpop.xlane.xlu0 %253  ;;  %v615_v62 = vmul.f32 %v4073_v44, %v571_v8  ;;  %vm621_vm9 = vweird.f32 %v4073_v44  ;;  %v546_v8 = vsub.f32 %v4394_v36, %v4600_v25 }
 0x126   :  { %v4643_v43 = vmul.f32 %v4548_v30, %v251_v45  ;;  %v4075_v46 = vpop.eup %4074  ;;  %v897_v56 = vadd.f32 %v4638_v41, %v871_v26  ;;  %vm4654_vm12 = vmor %vm620_vm10, %vm621_vm9 }
 0x127   :  { %v383_v51 = vpop.xlane.xlu1 %382  ;;  %v616_v59 = vmul.f32 %v4073_v44, %v615_v62  ;;  %v625_v57 = vmul.f32 %v4075_v46, %v572_v12  ;;  %vm631_vm11 = vweird.f32 %v4075_v46 }
 0x128   :  { %v473_v0 = vmul.f32 %v4643_v43, %v4643_v43  ;;  %v448_v3 = vmul.f32 %v383_v51, %v4548_v30  ;;  %v922_v6 = vmax.f32 %v897_v56, 0.0  ;;  %v948_v51 = vmax.f32 %v4394_v36, 0.0  ;;  %vm632_vm14 = vmor %vm630_vm13, %vm631_vm11 }
 0x129   :  { %v617_v17 = vmul.f32 0.5, %v616_v59  ;;  %v626_v63 = vmul.f32 %v4075_v46, %v625_v57  ;;  %v547_v59 = vsub.f32 %v4404_v42, %v4605_v37  ;;  %v4671_v57 = vmul.f32 %v4548_v30, %v254_v15 }
 0x12a   :  { %v498_v23 = vsub.f32 %v448_v3, %v473_v0  ;;  %v971_v20 = vpack.c.bf16 %v922_v6, %v921_v4  ;;  %v4678_v36 = vmul.f32 %v4548_v30, %v4576_v58  ;;  %v4685_v37 = vmul.f32 %v4548_v30, %v4596_v18 }
 0x12b   :  { %v618_v9 = vsub.f32 1.5, %v617_v17  ;;  %v627_v61 = vmul.f32 0.5, %v626_v63  ;;  %v474_v42 = vmul.f32 %v4671_v57, %v4671_v57 }
 0x12c   :  { %v523_v40 = vmax.f32 %v498_v23, 0.0  ;;  %3934 = vmatmul.msk.bf16.vlgmr.msrb.gmra.mxu1 %vm236_vm1, %v971_v20  ;;  %v478_v23 = vmul.f32 %v4678_v36, %v4678_v36  ;;  %v477_v34 = vmul.f32 %v4685_v37, %v4685_v37 }
 0x12d   :  { %v4651_v39 = vpop.xlane.xlu2 %403  ;;  %3559 = vrot.lane.b32.xlu1 %v950_v7, %s4282_s24  ;;  %v619_v31 = vmul.f32 %v4073_v44, %v618_v9  ;;  %v628_v33 = vsub.f32 1.5, %v627_v61  ;;  %v257_v45 = vpop.xlane.xlu0 %256  ;;  %v453_v9 = vmul.f32 %v4629_v29, %v4548_v30 }
 0x12e   :  { %v4666_v56 = vadd.f32 1e-05, %v523_v40  ;;  %v4707_v40 = vmul.f32 %v4548_v30, %v257_v45 }
 0x12f   :  { %v4659_v26 = vpop.xlane.xlu1 %400  ;;  %v629_v62 = vmul.f32 %v4075_v46, %v628_v33  ;;  %v623_v52 = vsel %vm4654_vm12, %v4073_v44, %v619_v31 }
 0x130   :  { %4076 = vrsqrt.f32 %v4666_v56  ;;  %v846_v0 = vmul.f32 %v623_v52, %v546_v8  ;;  %vm640_vm2 = vweird.f32 %v4666_v56 }
 0x131   :  { %v633_v12 = vsel %vm632_vm14, %v4075_v46, %v629_v62 }
 0x132   :  { %3555 = vrot.lane.b32.xlu2 %v948_v51, %s4282_s24  ;;  %v847_v17 = vmul.f32 %v633_v12, %v547_v59  ;;  %v872_v63 = vmul.f32 %v4627_v24, %v846_v0  ;;  %v452_v59 = vmul.f32 %v4594_v10, %v4548_v30  ;;  %v503_v12 = vsub.f32 %v453_v9, %v478_v23 }
 0x133   :  { %v475_v0 = vmul.f32 %v4707_v40, %v4707_v40 }
 0x134   :  { %v873_v3 = vmul.f32 %v4627_v24, %v847_v17  ;;  %v898_v4 = vadd.f32 %v4638_v41, %v872_v63 }
 0x135   :  { %v386_v44 = vpop.xlane.xlu2 %385 }
 0x136   :  { %v449_v25 = vmul.f32 %v386_v44, %v4548_v30  ;;  %v4692_v58 = vpop.eup %4076  ;;  %v899_v18 = vadd.f32 %v4638_v41, %v873_v3  ;;  %v923_v29 = vmax.f32 %v898_v4, 0.0 }
 0x137   :  { %v260_v15 = vpop.xlane.xlu1 %259  ;;  %v392_v46 = vpop.xlane.xlu0 %391  ;;  %v635_v20 = vmul.f32 %v4692_v58, %v4666_v56  ;;  %vm641_vm15 = vweird.f32 %v4692_v58 }
 0x138   :  { %v499_v6 = vsub.f32 %v449_v25, %v474_v42  ;;  %v4690_v7 = vmul.f32 %v4548_v30, %v260_v15  ;;  %v451_v61 = vmul.f32 %v392_v46, %v4548_v30  ;;  %v924_v62 = vmax.f32 %v899_v18, 0.0  ;;  %vm4743_vm3 = vmor %vm640_vm2, %vm641_vm15 }
 0x139   :  { %v636_v51 = vmul.f32 %v4692_v58, %v635_v20  ;;  %v502_v42 = vsub.f32 %v452_v59, %v477_v34  ;;  %v528_v46 = vmax.f32 %v503_v12, 0.0  ;;  %v4739_v59 = vmul.f32 %v4548_v30, %v4619_v13 }
 0x13a   :  { %v524_v31 = vmax.f32 %v499_v6, 0.0  ;;  %v476_v33 = vmul.f32 %v4690_v7, %v4690_v7  ;;  %v972_v17 = vpack.c.bf16 %v924_v62, %v923_v29 }
 0x13b   :  { %v637_v25 = vmul.f32 0.5, %v636_v51  ;;  %v527_v10 = vmax.f32 %v502_v42, 0.0  ;;  %v4721_v18 = vadd.f32 1e-05, %v528_v46  ;;  %v548_v42 = vsub.f32 %v4425_v54, %v4643_v43 }
 0x13c   :  { %v574_v52 = vadd.f32 1e-05, %v524_v31  ;;  %v501_v8 = vsub.f32 %v451_v61, %v476_v33  ;;  %3935 = vmatmul.msk.bf16.gmra.mxu1 %vm236_vm1, %v972_v17  ;;  %v479_v46 = vmul.f32 %v4739_v59, %v4739_v59 }
 0x13d   :  { %v389_v44 = vpop.xlane.xlu2 %388  ;;  %v638_v61 = vsub.f32 1.5, %v637_v25  ;;  %v4727_v33 = vadd.f32 1e-05, %v527_v10  ;;  %vm690_vm15 = vweird.f32 %v4721_v18 }
 0x13e   :  { %4078 = vrsqrt.f32 %v574_v52  ;;  %v526_v63 = vmax.f32 %v501_v8, 0.0  ;;  %v450_v45 = vmul.f32 %v389_v44, %v4548_v30  ;;  %v4751_v44 = vmul.f32 %v4548_v30, %v4622_v19 }
 0x13f   :  { %v4718_v4 = vpop.xlane.xlu0 %274  ;;  %v639_v62 = vmul.f32 %v4692_v58, %v638_v61  ;;  %v455_v19 = vmul.f32 %v4651_v39, %v4548_v30  ;;  %vm650_vm5 = vweird.f32 %v574_v52  ;;  %vm680_vm2 = vweird.f32 %v4727_v33 }
 0x140   :  { %v4716_v15 = vadd.f32 1e-05, %v526_v63  ;;  %v500_v3 = vsub.f32 %v450_v45, %v475_v0  ;;  %v454_v63 = vmul.f32 %v4659_v26, %v4548_v30 }
 0x141   :  { %v643_v56 = vsel %vm4743_vm3, %v4692_v58, %v639_v62  ;;  %v480_v58 = vmul.f32 %v4751_v44, %v4751_v44 }
 0x142   :  { %4080 = vrsqrt.f32 %v4716_v15  ;;  %v525_v6 = vmax.f32 %v500_v3, 0.0  ;;  %v504_v54 = vsub.f32 %v454_v63, %v479_v46  ;;  %vm670_vm10 = vweird.f32 %v4716_v15 }
 0x143   :  { %v505_v62 = vsub.f32 %v455_v19, %v480_v58 }
 0x144   :  { %v4079_v9 = vpop.eup %4078  ;;  %v4725_v31 = vadd.f32 1e-05, %v525_v6  ;;  %v848_v6 = vmul.f32 %v643_v56, %v548_v42  ;;  %v529_v56 = vmax.f32 %v504_v54, 0.0 }
 0x145   :  { %v645_v23 = vmul.f32 %v4079_v9, %v574_v52  ;;  %v4723_v20 = vpop.xlane.xlu2 %406  ;;  %vm651_vm4 = vweird.f32 %v4079_v9  ;;  %v530_v19 = vmax.f32 %v505_v62, 0.0  ;;  %v550_v62 = vsub.f32 %v4443_v2, %v4707_v40 }
 0x146   :  { %4082 = vrsqrt.f32 %v4725_v31  ;;  %vm652_vm6 = vmor %vm650_vm5, %vm651_vm4  ;;  %v4789_v54 = vadd.f32 1e-05, %v529_v56  ;;  %vm660_vm9 = vweird.f32 %v4725_v31  ;;  %v4812_v40 = vmul.f32 %v4548_v30, %v4718_v4 }
 0x147   :  { %v646_v34 = vmul.f32 %v4079_v9, %v645_v23  ;;  %4084 = vrsqrt.f32 %v4721_v18  ;;  %v4747_v17 = vpop.xlane.xlu0 %409  ;;  %v549_v23 = vsub.f32 %v4433_v60, %v4671_v57  ;;  %v456_v4 = vmul.f32 %v4723_v20, %v4548_v30 }
 0x148   :  { %v4729_v29 = vpop.eup %4080  ;;  %4086 = vrsqrt.f32 %v4727_v33 }
 0x149   :  { %v647_v51 = vmul.f32 0.5, %v646_v34  ;;  %v665_v8 = vmul.f32 %v4729_v29, %v4716_v15  ;;  %vm671_vm8 = vweird.f32 %v4729_v29  ;;  %4088 = vrsqrt.f32 %v4789_v54 }
 0x14a   :  { %vm4800_vm12 = vmor %vm670_vm10, %vm671_vm8 }
 0x14b   :  { %v648_v0 = vsub.f32 1.5, %v647_v51  ;;  %v666_v13 = vmul.f32 %v4729_v29, %v665_v8 }
 0x14c   :  { %v4083_v25 = vpop.eup %4082 }
 0x14d   :  { %v4761_v45 = vpop.xlane.xlu2 %283  ;;  %v649_v3 = vmul.f32 %v4079_v9, %v648_v0  ;;  %v4767_v26 = vpop.eup %4084  ;;  %v655_v10 = vmul.f32 %v4083_v25, %v4725_v31  ;;  %v667_v43 = vmul.f32 0.5, %v666_v13  ;;  %v874_v0 = vmul.f32 %v4627_v24, %v848_v6 }
 0x14e   :  { %v4772_v61 = vpop.eup %4086  ;;  %v685_v34 = vmul.f32 %v4767_v26, %v4721_v18  ;;  %vm661_vm7 = vweird.f32 %v4083_v25  ;;  %v551_v31 = vsub.f32 %v4454_v11, %v4690_v7  ;;  %v481_v7 = vmul.f32 %v4812_v40, %v4812_v40 }
 0x14f   :  { %v656_v39 = vmul.f32 %v4083_v25, %v655_v10  ;;  %v653_v51 = vsel %vm652_vm6, %v4079_v9, %v649_v3  ;;  %v668_v63 = vsub.f32 1.5, %v667_v43  ;;  %v675_v52 = vmul.f32 %v4772_v61, %v4727_v33  ;;  %v4781_v42 = vpop.xlane.xlu0 %412  ;;  %v278_v9 = vpop.xlane.xlu1 %277  ;;  %vm662_vm11 = vmor %vm660_vm9, %vm661_vm7 }
 0x150   :  { %v849_v12 = vmul.f32 %v653_v51, %v549_v23  ;;  %v686_v10 = vmul.f32 %v4767_v26, %v685_v34  ;;  %v900_v6 = vadd.f32 %v4638_v41, %v874_v0  ;;  %v4795_v34 = vadd.f32 1e-05, %v530_v19 }
 0x151   :  { %v657_v8 = vmul.f32 0.5, %v656_v39  ;;  %v669_v43 = vmul.f32 %v4729_v29, %v668_v63  ;;  %v676_v23 = vmul.f32 %v4772_v61, %v675_v52  ;;  %v457_v52 = vmul.f32 %v4747_v17, %v4548_v30 }
 0x152   :  { %v875_v46 = vmul.f32 %v4627_v24, %v849_v12  ;;  %v687_v39 = vmul.f32 0.5, %v686_v10  ;;  %v925_v12 = vmax.f32 %v900_v6, 0.0  ;;  %4090 = vrsqrt.f32 %v4795_v34 }
 0x153   :  { %v658_v13 = vsub.f32 1.5, %v657_v8  ;;  %v4805_v8 = vmul.f32 %v4548_v30, %v278_v9  ;;  %v673_v15 = vsel %vm4800_vm12, %v4729_v29, %v669_v43  ;;  %v677_v10 = vmul.f32 0.5, %v676_v23 }
 0x154   :  { %v901_v58 = vadd.f32 %v4638_v41, %v875_v46  ;;  %v851_v19 = vmul.f32 %v673_v15, %v551_v31  ;;  %v688_v17 = vsub.f32 1.5, %v687_v39  ;;  %v506_v23 = vsub.f32 %v456_v4, %v481_v7 }
 0x155   :  { %v4783_v57 = vpop.xlane.xlu2 %286  ;;  %v659_v3 = vmul.f32 %v4083_v25, %v658_v13  ;;  %v482_v63 = vmul.f32 %v4805_v8, %v4805_v8  ;;  %v678_v43 = vsub.f32 1.5, %v677_v10  ;;  %vm691_vm13 = vweird.f32 %v4767_v26 }
 0x156   :  { %v926_v0 = vmax.f32 %v901_v58, 0.0  ;;  %v4832_v58 = vpop.eup %4088  ;;  %v689_v20 = vmul.f32 %v4767_v26, %v688_v17  ;;  %vm681_vm14 = vweird.f32 %v4772_v61  ;;  %v531_v15 = vmax.f32 %v506_v23, 0.0  ;;  %vm4849_vm3 = vmor %vm690_vm15, %vm691_vm13 }
 0x157   :  { %v663_v56 = vsel %vm662_vm11, %v4083_v25, %v659_v3  ;;  %v4828_v29 = vpop.xlane.xlu0 %292  ;;  %v281_v9 = vpop.xlane.xlu1 %280  ;;  %v507_v3 = vsub.f32 %v457_v52, %v482_v63  ;;  %v679_v31 = vmul.f32 %v4772_v61, %v678_v43  ;;  %v4859_v10 = vmul.f32 %v4548_v30, %v4761_v45  ;;  %vm4870_vm4 = vmor %vm680_vm2, %vm681_vm14 }
 0x158   :  { %v973_v25 = vpack.c.bf16 %v926_v0, %v925_v12  ;;  %v850_v46 = vmul.f32 %v663_v56, %v550_v62  ;;  %v877_v62 = vmul.f32 %v4627_v24, %v851_v19  ;;  %v4835_v51 = vpop.eup %4090  ;;  %v695_v56 = vmul.f32 %v4832_v58, %v4789_v54 }
 0x159   :  { %v532_v12 = vmax.f32 %v507_v3, 0.0  ;;  %v693_v33 = vsel %vm4849_vm3, %v4767_v26, %v689_v20  ;;  %v553_v4 = vsub.f32 %v4379_v27, %v4678_v36  ;;  %v4876_v45 = vmul.f32 %v4548_v30, %v281_v9 }
 0x15a   :  { %3936 = vmatmul.msk.bf16.gmra.mxu1 %vm236_vm1, %v973_v25  ;;  %v876_v6 = vmul.f32 %v4627_v24, %v850_v46  ;;  %v903_v63 = vadd.f32 %v4638_v41, %v877_v62  ;;  %v705_v25 = vmul.f32 %v4835_v51, %v4795_v34  ;;  %v696_v17 = vmul.f32 %v4832_v58, %v695_v56 }
 0x15b   :  { %v4855_v46 = vadd.f32 1e-05, %v532_v12  ;;  %v683_v26 = vsel %vm4870_vm4, %v4772_v61, %v679_v31  ;;  %v4883_v36 = vadd.f32 1e-05, %v531_v15  ;;  %v483_v62 = vmul.f32 %v4876_v45, %v4876_v45 }
 0x15c   :  { %v902_v39 = vadd.f32 %v4638_v41, %v876_v6  ;;  %v552_v6 = vsub.f32 %v4382_v28, %v4685_v37  ;;  %v928_v43 = vmax.f32 %v903_v63, 0.0  ;;  %v706_v23 = vmul.f32 %v4835_v51, %v705_v25 }
 0x15d   :  { %v4821_v13 = vpop.xlane.xlu2 %424  ;;  %v458_v9 = vmul.f32 %v4781_v42, %v4548_v30  ;;  %v853_v20 = vmul.f32 %v693_v33, %v553_v4  ;;  %4092 = vrsqrt.f32 %v4855_v46  ;;  %v484_v37 = vmul.f32 %v4859_v10, %v4859_v10 }
 0x15e   :  { %v927_v18 = vmax.f32 %v902_v39, 0.0  ;;  %v697_v56 = vmul.f32 0.5, %v696_v17  ;;  %v852_v31 = vmul.f32 %v683_v26, %v552_v6  ;;  %4094 = vrsqrt.f32 %v4883_v36 }
 0x15f   :  { %v4861_v7 = vpop.xlane.xlu0 %427  ;;  %v416_v3 = vpop.xlane.xlu1 %415  ;;  %v707_v15 = vmul.f32 0.5, %v706_v23  ;;  %v508_v63 = vsub.f32 %v458_v9, %v483_v62  ;;  %v879_v52 = vmul.f32 %v4627_v24, %v853_v20  ;;  %vm701_vm5 = vweird.f32 %v4832_v58 }
 0x160   :  { %v459_v12 = vmul.f32 %v416_v3, %v4548_v30  ;;  %v974_v61 = vpack.c.bf16 %v928_v43, %v927_v18  ;;  %v698_v25 = vsub.f32 1.5, %v697_v56  ;;  %v878_v4 = vmul.f32 %v4627_v24, %v852_v31 }
 0x161   :  { %v708_v18 = vsub.f32 1.5, %v707_v15  ;;  %v533_v3 = vmax.f32 %v508_v63, 0.0  ;;  %v905_v43 = vadd.f32 %v4638_v41, %v879_v52  ;;  %vm700_vm6 = vweird.f32 %v4789_v54 }
 0x162   :  { %v509_v42 = vsub.f32 %v459_v12, %v484_v37  ;;  %v699_v23 = vmul.f32 %v4832_v58, %v698_v25  ;;  %v904_v9 = vadd.f32 %v4638_v41, %v878_v4  ;;  %vm711_vm7 = vweird.f32 %v4835_v51  ;;  %vm4921_vm8 = vmor %vm700_vm6, %vm701_vm5 }
 0x163   :  { %v4899_v33 = vpop.eup %4092  ;;  %v709_v20 = vmul.f32 %v4835_v51, %v708_v18  ;;  %v4919_v12 = vadd.f32 1e-05, %v533_v3  ;;  %v930_v31 = vmax.f32 %v905_v43, 0.0  ;;  %vm710_vm9 = vweird.f32 %v4795_v34 }
 0x164   :  { %v4904_v17 = vpop.eup %4094  ;;  %v534_v6 = vmax.f32 %v509_v42, 0.0  ;;  %v725_v62 = vmul.f32 %v4899_v33, %v4855_v46  ;;  %v703_v63 = vsel %vm4921_vm8, %v4832_v58, %v699_v23  ;;  %v554_v42 = vsub.f32 %v4412_v47, %v4739_v59  ;;  %vm4934_vm10 = vmor %vm710_vm9, %vm711_vm7 }
 0x165   :  { %v4839_v0 = vpop.xlane.xlu2 %301  ;;  %v715_v37 = vmul.f32 %v4904_v17, %v4883_v36  ;;  %v4940_v25 = vmul.f32 %v4548_v30, %v4783_v57  ;;  %v929_v4 = vmax.f32 %v904_v9, 0.0  ;;  %4096 = vrsqrt.f32 %v4919_v12 }
 0x166   :  { %v4925_v56 = vadd.f32 1e-05, %v534_v6  ;;  %v726_v54 = vmul.f32 %v4899_v33, %v725_v62  ;;  %v713_v58 = vsel %vm4934_vm10, %v4835_v51, %v709_v20  ;;  %v555_v59 = vsub.f32 %v4416_v49, %v4751_v44 }
 0x167   :  { %v4902_v19 = vpop.xlane.xlu0 %430  ;;  %v419_v15 = vpop.xlane.xlu1 %418  ;;  %v716_v34 = vmul.f32 %v4904_v17, %v715_v37  ;;  %v975_v3 = vpack.c.bf16 %v930_v31, %v929_v4  ;;  %v854_v57 = vmul.f32 %v703_v63, %v554_v42  ;;  %v485_v23 = vmul.f32 %v4940_v25, %v4940_v25 }
 0x168   :  { %4098 = vrsqrt.f32 %v4925_v56  ;;  %v727_v43 = vmul.f32 0.5, %v726_v54  ;;  %v460_v62 = vmul.f32 %v419_v15, %v4548_v30  ;;  %v855_v51 = vmul.f32 %v713_v58, %v555_v59 }
 0x169   :  { %v717_v9 = vmul.f32 0.5, %v716_v34  ;;  %v880_v44 = vmul.f32 %v4627_v24, %v854_v57  ;;  %vm730_vm11 = vweird.f32 %v4855_v46  ;;  %vm731_vm12 = vweird.f32 %v4899_v33 }
 0x16a   :  { %3937 = vmatmul.msk.bf16.gmra.mxu1 %vm236_vm1, %v974_v61  ;;  %v728_v37 = vsub.f32 1.5, %v727_v43  ;;  %v510_v31 = vsub.f32 %v460_v62, %v485_v23  ;;  %v881_v63 = vmul.f32 %v4627_v24, %v855_v51  ;;  %vm720_vm13 = vweird.f32 %v4883_v36  ;;  %vm4976_vm15 = vmor %vm730_vm11, %vm731_vm12 }
 0x16b   :  { %v4959_v20 = vpop.eup %4096  ;;  %v718_v54 = vsub.f32 1.5, %v717_v9  ;;  %v906_v4 = vadd.f32 %v4638_v41, %v880_v44  ;;  %vm721_vm14 = vweird.f32 %v4904_v17  ;;  %v557_v9 = vsub.f32 %v4468_v22, %v4805_v8 }
 0x16c   :  { %v735_v42 = vmul.f32 %v4959_v20, %v4919_v12  ;;  %v729_v34 = vmul.f32 %v4899_v33, %v728_v37  ;;  %v535_v59 = vmax.f32 %v510_v31, 0.0  ;;  %v907_v43 = vadd.f32 %v4638_v41, %v881_v63  ;;  %vm4985_vm2 = vmor %vm720_vm13, %vm721_vm14 }
 0x16d   :  { %v4894_v39 = vpop.xlane.xlu2 %304  ;;  %v719_v36 = vmul.f32 %v4904_v17, %v718_v54  ;;  %v931_v51 = vmax.f32 %v906_v4, 0.0  ;;  %v5007_v8 = vmul.f32 %v4548_v30, %v4828_v29  ;;  %v462_v29 = vmul.f32 %v4821_v13, %v4548_v30 }
 0x16e   :  { %v4961_v61 = vpop.eup %4098  ;;  %v736_v62 = vmul.f32 %v4959_v20, %v735_v42  ;;  %v733_v31 = vsel %vm4976_vm15, %v4899_v33, %v729_v34  ;;  %v4999_v63 = vadd.f32 1e-05, %v535_v59  ;;  %v932_v42 = vmax.f32 %v907_v43, 0.0 }
 0x16f   :  { %v4950_v18 = vpop.xlane.xlu0 %307  ;;  %v296_v15 = vpop.xlane.xlu1 %295  ;;  %v745_v58 = vmul.f32 %v4961_v61, %v4925_v56  ;;  %v723_v33 = vsel %vm4985_vm2, %v4904_v17, %v719_v36  ;;  %v556_v34 = vsub.f32 %v4465_v21, %v4812_v40  ;;  %v487_v43 = vmul.f32 %v5007_v8, %v5007_v8 }
 0x170   :  { %v976_v46 = vpack.c.bf16 %v932_v42, %v931_v51  ;;  %4100 = vrsqrt.f32 %v4999_v63  ;;  %vm740_vm3 = vweird.f32 %v4919_v12  ;;  %vm741_vm4 = vweird.f32 %v4959_v20 }
 0x171   :  { %v746_v44 = vmul.f32 %v4961_v61, %v745_v58  ;;  %v737_v58 = vmul.f32 0.5, %v736_v62  ;;  %v856_v17 = vmul.f32 %v723_v33, %v556_v34  ;;  %vm750_vm5 = vweird.f32 %v4925_v56  ;;  %vm5036_vm7 = vmor %vm740_vm3, %vm741_vm4 }
 0x172   :  { %vm751_vm6 = vweird.f32 %v4961_v61  ;;  %vm760_vm9 = vweird.f32 %v4999_v63 }
 0x173   :  { %v738_v62 = vsub.f32 1.5, %v737_v58  ;;  %v882_v42 = vmul.f32 %v4627_v24, %v856_v17  ;;  %vm5041_vm8 = vmor %vm750_vm5, %vm751_vm6 }
 0x175   :  { %v4906_v26 = vpop.xlane.xlu2 %439 }
 0x177   :  { %v290_v57 = vpop.xlane.xlu0 %289  ;;  %v299_v40 = vpop.xlane.xlu1 %298 }
 0x178   :  { %v4994_v37 = vmul.f32 %v4548_v30, %v290_v57  ;;  %v857_v57 = vmul.f32 %v733_v31, %v557_v9 }
 0x17a   :  { %3938 = vmatmul.msk.bf16.gmra.mxu1 %vm236_vm1, %v975_v3  ;;  %v4981_v3 = vmul.f32 %v4548_v30, %v296_v15  ;;  %v463_v15 = vmul.f32 %v4861_v7, %v4548_v30  ;;  %v486_v4 = vmul.f32 %v4994_v37, %v4994_v37  ;;  %v747_v7 = vmul.f32 0.5, %v746_v44 }
 0x17b   :  { %v883_v51 = vmul.f32 %v4627_v24, %v857_v57  ;;  %v512_v44 = vsub.f32 %v462_v29, %v487_v43  ;;  %v558_v43 = vsub.f32 %v4478_v32, %v4876_v45 }
 0x17c   :  { %v488_v54 = vmul.f32 %v4981_v3, %v4981_v3  ;;  %v748_v9 = vsub.f32 1.5, %v747_v7 }
 0x17d   :  { %v4952_v6 = vpop.xlane.xlu2 %310  ;;  %v537_v34 = vmax.f32 %v512_v44, 0.0 }
 0x17e   :  { %v513_v23 = vsub.f32 %v463_v15, %v488_v54  ;;  %v739_v15 = vmul.f32 %v4959_v20, %v738_v62  ;;  %v749_v33 = vmul.f32 %v4961_v61, %v748_v9  ;;  %v559_v62 = vsub.f32 %v4487_v38, %v4859_v10 }
 0x17f   :  { %v5055_v29 = vadd.f32 1e-05, %v537_v34  ;;  %v434_v17 = vpop.xlane.xlu1 %433 }
 0x180   :  { %v538_v13 = vmax.f32 %v513_v23, 0.0  ;;  %v743_v7 = vsel %vm5036_vm7, %v4959_v20, %v739_v15  ;;  %v5059_v23 = vmul.f32 %v4548_v30, %v4839_v0  ;;  %v5068_v20 = vmul.f32 %v4548_v30, %v299_v40 }
 0x181   :  { %v858_v44 = vmul.f32 %v743_v7, %v558_v43  ;;  %v464_v40 = vmul.f32 %v4902_v19, %v4548_v30  ;;  %vm780_vm3 = vweird.f32 %v5055_v29 }
 0x182   :  { %v5045_v58 = vadd.f32 1e-05, %v538_v13  ;;  %v490_v0 = vmul.f32 %v5059_v23, %v5059_v23  ;;  %v489_v10 = vmul.f32 %v5068_v20, %v5068_v20 }
 0x183   :  { %v884_v56 = vmul.f32 %v4627_v24, %v858_v44 }
 0x184   :  { %vm790_vm15 = vweird.f32 %v5045_v58 }
 0x185   :  { %v4968_v52 = vpop.xlane.xlu2 %442 }
 0x18a   :  { %3939 = vmatmul.msk.bf16.gmra.mxu1 %vm236_vm1, %v976_v46  ;;  %v908_v46 = vadd.f32 %v4638_v41, %v882_v42 }
 0x18c   :  { %v933_v45 = vmax.f32 %v908_v46, 0.0 }
 0x18d   :  { %v422_v59 = vpop.xlane.xlu2 %421 }
 0x18e   :  { %v461_v22 = vmul.f32 %v422_v59, %v4548_v30 }
 0x190   :  { %v511_v36 = vsub.f32 %v461_v22, %v486_v4  ;;  %v5031_v22 = vpop.eup %4100  ;;  %v909_v4 = vadd.f32 %v4638_v41, %v883_v51 }
 0x191   :  { %v755_v59 = vmul.f32 %v5031_v22, %v4999_v63  ;;  %vm761_vm10 = vweird.f32 %v5031_v22 }
 0x192   :  { %v536_v31 = vmax.f32 %v511_v36, 0.0  ;;  %v934_v57 = vmax.f32 %v909_v4, 0.0  ;;  %v753_v36 = vsel %vm5041_vm8, %v4961_v61, %v749_v33  ;;  %vm5097_vm13 = vmor %vm760_vm9, %vm761_vm10 }
 0x193   :  { %v756_v9 = vmul.f32 %v5031_v22, %v755_v59  ;;  %v859_v42 = vmul.f32 %v753_v36, %v559_v62  ;;  %v514_v59 = vsub.f32 %v464_v40, %v489_v10  ;;  %v910_v36 = vadd.f32 %v4638_v41, %v884_v56  ;;  %v5115_v10 = vld [vmem:[%s7548_s2 + $0x3] ss:$0 sm:$0xff] }
 0x194   :  { %v5029_v54 = vadd.f32 1e-05, %v536_v31  ;;  %v465_v31 = vmul.f32 %v434_v17, %v4548_v30  ;;  %v977_v13 = vpack.c.bf16 %v934_v57, %v933_v45 }
 0x195   :  { %v757_v4 = vmul.f32 0.5, %v756_v9  ;;  %v885_v46 = vmul.f32 %v4627_v24, %v859_v42  ;;  %v935_v40 = vmax.f32 %v910_v36, 0.0 }
 0x196   :  { %4102 = vrsqrt.f32 %v5029_v54  ;;  %v515_v12 = vsub.f32 %v465_v31, %v490_v0  ;;  %vm770_vm11 = vweird.f32 %v5029_v54  ;;  %v539_v0 = vmax.f32 %v514_v59, 0.0 }
 0x197   :  { %4104 = vrsqrt.f32 %v5045_v58  ;;  %v758_v43 = vsub.f32 1.5, %v757_v4  ;;  %v911_v62 = vadd.f32 %v4638_v41, %v885_v46  ;;  %v560_v4 = vsub.f32 %v4498_v48, %v4940_v25 }
 0x198   :  { %4106 = vrsqrt.f32 %v5055_v29  ;;  %v540_v17 = vmax.f32 %v515_v12, 0.0  ;;  %v561_v46 = vsub.f32 %v4556_v35, %v4994_v37 }
 0x199   :  { %v759_v63 = vmul.f32 %v5031_v22, %v758_v43 }
 0x19a   :  { %3940 = vmatmul.msk.bf16.gmra.mxu1 %vm236_vm1, %v977_v13  ;;  %v5106_v13 = vadd.f32 1e-05, %v540_v17 }
 0x19c   :  { %v4103_v51 = vpop.eup %4102  ;;  %4108 = vrsqrt.f32 %v5106_v13  ;;  %vm810_vm7 = vweird.f32 %v5106_v13 }
 0x19d   :  { %v765_v61 = vmul.f32 %v4103_v51, %v5029_v54  ;;  %v5081_v33 = vpop.eup %4104  ;;  %vm771_vm12 = vweird.f32 %v4103_v51  ;;  %v437_v54 = vpop.xlane.xlu1 %436 }
 0x19e   :  { %v5085_v7 = vpop.eup %4106  ;;  %v785_v19 = vmul.f32 %v5081_v33, %v5045_v58  ;;  %vm5108_vm14 = vmor %vm770_vm11, %vm771_vm12  ;;  %v466_v25 = vmul.f32 %v437_v54, %v4548_v30  ;;  %vm791_vm2 = vweird.f32 %v5081_v33 }
 0x19f   :  { %v766_v15 = vmul.f32 %v4103_v51, %v765_v61  ;;  %v775_v9 = vmul.f32 %v5085_v7, %v5055_v29  ;;  %v5104_v61 = vmul.f32 %v4548_v30, %v4894_v39  ;;  %vm781_vm4 = vweird.f32 %v5085_v7  ;;  %vm5167_vm5 = vmor %vm790_vm15, %vm791_vm2 }
 0x1a0   :  { %v786_v31 = vmul.f32 %v5081_v33, %v785_v19  ;;  %vm5180_vm6 = vmor %vm780_vm3, %vm781_vm4 }
 0x1a1   :  { %v767_v34 = vmul.f32 0.5, %v766_v15  ;;  %v936_v15 = vmax.f32 %v911_v62, 0.0  ;;  %v776_v12 = vmul.f32 %v5085_v7, %v775_v9  ;;  %v491_v56 = vmul.f32 %v5104_v61, %v5104_v61 }
 0x1a2   :  { %v787_v59 = vmul.f32 0.5, %v786_v31  ;;  %v5150_v31 = vpop.eup %4108 }
 0x1a3   :  { %v768_v57 = vsub.f32 1.5, %v767_v34  ;;  %v5122_v34 = vadd.f32 1e-05, %v539_v0  ;;  %v978_v17 = vpack.c.bf16 %v936_v15, %v935_v40  ;;  %v777_v62 = vmul.f32 0.5, %v776_v12 }
 0x1a4   :  { %v516_v9 = vsub.f32 %v466_v25, %v491_v56  ;;  %v788_v0 = vsub.f32 1.5, %v787_v59  ;;  %vm811_vm8 = vweird.f32 %v5150_v31 }
 0x1a5   :  { %v769_v45 = vmul.f32 %v4103_v51, %v768_v57  ;;  %v5130_v57 = vmul.f32 %v4548_v30, %v4950_v18  ;;  %v467_v18 = vmul.f32 %v4906_v26, %v4548_v30  ;;  %4110 = vrsqrt.f32 %v5122_v34  ;;  %vm5251_vm11 = vmor %vm810_vm7, %vm811_vm8 }
 0x1a6   :  { %v778_v26 = vsub.f32 1.5, %v777_v62  ;;  %v541_v40 = vmax.f32 %v516_v9, 0.0  ;;  %vm800_vm9 = vweird.f32 %v5122_v34 }
 0x1a7   :  { %v773_v39 = vsel %vm5108_vm14, %v4103_v51, %v769_v45  ;;  %v763_v51 = vsel %vm5097_vm13, %v5031_v22, %v759_v63  ;;  %v492_v37 = vmul.f32 %v5130_v57, %v5130_v57 }
 0x1a8   :  { %v861_v36 = vmul.f32 %v773_v39, %v561_v46  ;;  %v860_v45 = vmul.f32 %v763_v51, %v560_v4  ;;  %v789_v39 = vmul.f32 %v5081_v33, %v788_v0  ;;  %v779_v25 = vmul.f32 %v5085_v7, %v778_v26 }
 0x1a9   :  { %v1066_v43 = vpop.f32.mrf.mxu1  ;;  %v517_v44 = vsub.f32 %v467_v18, %v492_v37  ;;  %v5186_v37 = vadd.f32 1e-05, %v541_v40 }
 0x1aa   :  { %v5138_v19 = vadd.f32 %v5115_v10, %v1066_v43  ;;  %3941 = vmatmul.msk.bf16.gmra.mxu1 %vm236_vm1, %v978_v17  ;;  %v887_v63 = vmul.f32 %v4627_v24, %v861_v36  ;;  %v886_v42 = vmul.f32 %v4627_v24, %v860_v45  ;;  %v805_v24 = vmul.f32 %v5150_v31, %v5106_v13 }
 0x1ab   :  { %v5157_v4 = vpop.eup %4110  ;;  %v542_v59 = vmax.f32 %v517_v44, 0.0  ;;  %v793_v62 = vsel %vm5167_vm5, %v5081_v33, %v789_v39  ;;  %v5198_v45 = vmul.f32 %v4548_v30, %v4952_v6  ;;  %v562_v33 = vsub.f32 %v4502_v50, %v5007_v8 }
 0x1ac   :  { %v1132_v22 = vsel %vm236_vm1, %v5138_v19, 0.0  ;;  %v1232_v54 = vmul.f32 %v5138_v19, %v5138_v19  ;;  %v913_v56 = vadd.f32 %v4638_v41, %v887_v63  ;;  %v912_v17 = vadd.f32 %v4638_v41, %v886_v42 }
 0x1ad   :  { %1133 = vadd.xlane.f32.xlu0 %v1132_v22  ;;  %v795_v36 = vmul.f32 %v5157_v4, %v5122_v34  ;;  %v563_v41 = vsub.f32 %v4509_v55, %v4981_v3  ;;  %v806_v29 = vmul.f32 %v5150_v31, %v805_v24  ;;  %v5194_v22 = vadd.f32 1e-05, %v542_v59  ;;  %v5227_v59 = vld [vmem:[%s7548_s2 + $0x1] ss:$0 sm:$0xff] }
 0x1ae   :  { %v1257_v51 = vsel %vm236_vm1, %v1232_v54, 0.0  ;;  %v938_v18 = vmax.f32 %v913_v56, 0.0  ;;  %v937_v9 = vmax.f32 %v912_v17, 0.0  ;;  %v783_v63 = vsel %vm5180_vm6, %v5085_v7, %v779_v25 }
 0x1af   :  { %v796_v3 = vmul.f32 %v5157_v4, %v795_v36  ;;  %4112 = vrsqrt.f32 %v5186_v37  ;;  %v863_v26 = vmul.f32 %v793_v62, %v563_v41  ;;  %v493_v6 = vmul.f32 %v5198_v45, %v5198_v45 }
 0x1b0   :  { %v468_v54 = vmul.f32 %v4968_v52, %v4548_v30  ;;  %v979_v40 = vpack.c.bf16 %v938_v18, %v937_v9  ;;  %v807_v7 = vmul.f32 0.5, %v806_v29  ;;  %4114 = vrsqrt.f32 %v5194_v22  ;;  %v5243_v29 = vld [vmem:[%s7548_s2 + $0x2] ss:$0 sm:$0xff] }
 0x1b1   :  { %v1068_v15 = vpop.f32.mrf.mxu1  ;;  %v797_v46 = vmul.f32 0.5, %v796_v3  ;;  %v889_v25 = vmul.f32 %v5227_v59, %v863_v26  ;;  %vm801_vm10 = vweird.f32 %v5157_v4  ;;  %vm820_vm13 = vweird.f32 %v5186_v37 }
 0x1b2   :  { %v5162_v12 = vadd.f32 %v5115_v10, %v1068_v15  ;;  %v862_v15 = vmul.f32 %v783_v63, %v562_v33  ;;  %v518_v52 = vsub.f32 %v468_v54, %v493_v6  ;;  %vm5263_vm12 = vmor %vm800_vm9, %vm801_vm10  ;;  %vm830_vm15 = vweird.f32 %v5194_v22 }
 0x1b3   :  { %v798_v58 = vsub.f32 1.5, %v797_v46  ;;  %v915_v9 = vadd.f32 %v5243_v29, %v889_v25 }
 0x1b4   :  { %v1135_v43 = vsel %vm236_vm1, %v5162_v12, 0.0  ;;  %v1233_v0 = vmul.f32 %v5162_v12, %v5162_v12  ;;  %v888_v17 = vmul.f32 %v5227_v59, %v862_v15  ;;  %v543_v62 = vmax.f32 %v518_v52, 0.0 }
 0x1b5   :  { %1136 = vadd.xlane.f32.xlu1 %v1135_v43  ;;  %1258 = vadd.xlane.f32.xlu0 %v1257_v51  ;;  %v5230_v43 = vpop.eup %4112  ;;  %v808_v51 = vsub.f32 1.5, %v807_v7  ;;  %v799_v34 = vmul.f32 %v5157_v4, %v798_v58  ;;  %v940_v7 = vmax.f32 %v915_v9, 0.0 }
 0x1b6   :  { %v1260_v8 = vsel %vm236_vm1, %v1233_v0, 0.0  ;;  %v5235_v18 = vpop.eup %4114  ;;  %v815_v0 = vmul.f32 %v5230_v43, %v5186_v37  ;;  %v593_v54 = vadd.f32 1e-05, %v543_v62  ;;  %vm821_vm14 = vweird.f32 %v5230_v43 }
 0x1b7   :  { %v809_v13 = vmul.f32 %v5150_v31, %v808_v51  ;;  %v825_v26 = vmul.f32 %v5235_v18, %v5194_v22  ;;  %v803_v52 = vsel %vm5263_vm12, %v5157_v4, %v799_v34  ;;  %vm831_vm2 = vweird.f32 %v5235_v18  ;;  %vm822_vm3 = vmor %vm820_vm13, %vm821_vm14 }
 0x1b8   :  { %v816_v15 = vmul.f32 %v5230_v43, %v815_v0  ;;  %4116 = vrsqrt.f32 %v593_v54  ;;  %vm832_vm4 = vmor %vm830_vm15, %vm831_vm2  ;;  %v566_v34 = vsub.f32 %v4536_v14, %v5104_v61  ;;  %vm840_vm5 = vweird.f32 %v593_v54 }
 0x1b9   :  { %v1071_v44 = vpop.f32.mrf.mxu1  ;;  %v826_v46 = vmul.f32 %v5235_v18, %v825_v26 }
 0x1ba   :  { %v5214_v42 = vadd.f32 %v5115_v10, %v1071_v44  ;;  %3942 = vmatmul.msk.bf16.gmra.mxu1 %vm236_vm1, %v979_v40  ;;  %v914_v44 = vadd.f32 %v5243_v29, %v888_v17  ;;  %v817_v17 = vmul.f32 0.5, %v816_v15 }
 0x1bb   :  { %v827_v58 = vmul.f32 0.5, %v826_v46 }
 0x1bc   :  { %v1138_v39 = vsel %vm236_vm1, %v5214_v42, 0.0  ;;  %v1234_v56 = vmul.f32 %v5214_v42, %v5214_v42 }
 0x1bd   :  { %1261 = vadd.xlane.f32.xlu1 %v1260_v8  ;;  %1139 = vadd.xlane.f32.xlu0 %v1138_v39  ;;  %v813_v8 = vsel %vm5251_vm11, %v5150_v31, %v809_v13  ;;  %v565_v39 = vsub.f32 %v4526_v5, %v5059_v23  ;;  %v828_v13 = vsub.f32 1.5, %v827_v58 }
 0x1be   :  { %v1263_v24 = vsel %vm236_vm1, %v1234_v56, 0.0  ;;  %v939_v56 = vmax.f32 %v914_v44, 0.0  ;;  %v4117_v62 = vpop.eup %4116 }
 0x1bf   :  { %1264 = vadd.xlane.f32.xlu2 %v1263_v24  ;;  %v564_v24 = vsub.f32 %v4520_v1, %v5068_v20  ;;  %v865_v51 = vmul.f32 %v813_v8, %v565_v39  ;;  %v835_v0 = vmul.f32 %v4117_v62, %v593_v54  ;;  %vm841_vm6 = vweird.f32 %v4117_v62 }
 0x1c0   :  { %v980_v25 = vpack.c.bf16 %v940_v7, %v939_v56  ;;  %vm842_vm7 = vmor %vm840_vm5, %vm841_vm6 }
 0x1c1   :  { %v1073_v36 = vpop.f32.mrf.mxu1  ;;  %v864_v31 = vmul.f32 %v803_v52, %v564_v24  ;;  %v891_v23 = vmul.f32 %v5227_v59, %v865_v51  ;;  %v836_v44 = vmul.f32 %v4117_v62, %v835_v0 }
 0x1c2   :  { %v5238_v41 = vadd.f32 %v5115_v10, %v1073_v36  ;;  %v818_v36 = vsub.f32 1.5, %v817_v17 }
 0x1c3   :  { %v890_v9 = vmul.f32 %v5227_v59, %v864_v31  ;;  %v917_v20 = vadd.f32 %v5243_v29, %v891_v23  ;;  %v837_v39 = vmul.f32 0.5, %v836_v44 }
 0x1c4   :  { %v1141_v33 = vsel %vm236_vm1, %v5238_v41, 0.0  ;;  %v1235_v3 = vmul.f32 %v5238_v41, %v5238_v41  ;;  %v819_v4 = vmul.f32 %v5230_v43, %v818_v36 }
 0x1c5   :  { %1142 = vadd.xlane.f32.xlu1 %v1141_v33  ;;  %v916_v63 = vadd.f32 %v5243_v29, %v890_v9  ;;  %v829_v33 = vmul.f32 %v5235_v18, %v828_v13  ;;  %v838_v46 = vsub.f32 1.5, %v837_v39  ;;  %v568_v13 = vsub.f32 %v4574_v53, %v5198_v45 }
 0x1c6   :  { %v1266_v40 = vsel %vm236_vm1, %v1235_v3, 0.0  ;;  %v942_v3 = vmax.f32 %v917_v20, 0.0  ;;  %v823_v37 = vsel %vm822_vm3, %v5230_v43, %v819_v4 }
 0x1c7   :  { %1267 = vadd.xlane.f32.xlu0 %v1266_v40  ;;  %v941_v26 = vmax.f32 %v916_v63, 0.0  ;;  %v833_v22 = vsel %vm832_vm4, %v5235_v18, %v829_v33  ;;  %v567_v40 = vsub.f32 %v4539_v16, %v5130_v57  ;;  %v866_v7 = vmul.f32 %v823_v37, %v566_v34 }
 0x1c8   :  { %v839_v17 = vmul.f32 %v4117_v62, %v838_v46 }
 0x1c9   :  { %v981_v8 = vpack.c.bf16 %v942_v3, %v941_v26  ;;  %v867_v56 = vmul.f32 %v833_v22, %v567_v40  ;;  %v892_v57 = vmul.f32 %v5227_v59, %v866_v7 }
 0x1ca   :  { %3943 = vmatmul.msk.bf16.gmra.mxu1 %vm236_vm1, %v980_v25  ;;  %v843_v9 = vsel %vm842_vm7, %v4117_v62, %v839_v17 }
 0x1cb   :  { %v893_v52 = vmul.f32 %v5227_v59, %v867_v56  ;;  %v918_v51 = vadd.f32 %v5243_v29, %v892_v57  ;;  %v868_v33 = vmul.f32 %v843_v9, %v568_v13 }
 0x1cd   :  { %v919_v23 = vadd.f32 %v5243_v29, %v893_v52  ;;  %v943_v36 = vmax.f32 %v918_v51, 0.0  ;;  %v894_v45 = vmul.f32 %v5227_v59, %v868_v33  ;;  %v952_v59 = vmax.f32 %v4443_v2, 0.0  ;;  %v5361_v51 = vpop.permute.xlu0 %3551 }
 0x1cf   :  { %v944_v20 = vmax.f32 %v919_v23, 0.0  ;;  %v920_v26 = vadd.f32 %v5243_v29, %v894_v45  ;;  %v951_v29 = vmax.f32 %v4433_v60, 0.0 }
 0x1d1   :  { %v982_v63 = vpack.c.bf16 %v944_v20, %v943_v36 }
 0x1d7   :  { %v1076_v6 = vpop.f32.mrf.mxu1 }
 0x1d8   :  { %v5298_v15 = vadd.f32 %v5115_v10, %v1076_v6  ;;  %v945_v6 = vmax.f32 %v920_v26, 0.0 }
 0x1da   :  { %3944 = vmatmul.msk.bf16.gmra.mxu1 %vm236_vm1, %v981_v8  ;;  %v1144_v43 = vsel %vm236_vm1, %v5298_v15, 0.0  ;;  %v1236_v61 = vmul.f32 %v5298_v15, %v5298_v15  ;;  %v983_v7 = vpack.c.bf16 %v945_v6, %v945_v6 }
 0x1db   :  { %1145 = vadd.xlane.f32.xlu1 %v1144_v43 }
 0x1dc   :  { %v1269_v18 = vsel %vm236_vm1, %v1236_v61, 0.0 }
 0x1dd   :  { %1270 = vadd.xlane.f32.xlu0 %v1269_v18  ;;  %v5349_v18 = vpop.permute.xlu1 %3553 }
 0x1df   :  { %v1078_v24 = vpop.f32.mrf.mxu1 }
 0x1e0   :  { %v5309_v25 = vadd.f32 %v5115_v10, %v1078_v24 }
 0x1e2   :  { %v1147_v31 = vsel %vm236_vm1, %v5309_v25, 0.0  ;;  %v1237_v58 = vmul.f32 %v5309_v25, %v5309_v25 }
 0x1e3   :  { %1148 = vadd.xlane.f32.xlu2 %v1147_v31 }
 0x1e4   :  { %v1272_v54 = vsel %vm236_vm1, %v1237_v58, 0.0 }
 0x1e5   :  { %1273 = vadd.xlane.f32.xlu1 %v1272_v54  ;;  %v5358_v60 = vpop.permute.xlu1 %3557 }
 0x1e7   :  { %v1081_v4 = vpop.f32.mrf.mxu1 }
 0x1e8   :  { %v5321_v0 = vadd.f32 %v5115_v10, %v1081_v4 }
 0x1ea   :  { %3945 = vmatmul.msk.bf16.gmra.mxu1 %vm236_vm1, %v982_v63  ;;  %v1150_v3 = vsel %vm236_vm1, %v5321_v0, 0.0  ;;  %v1238_v37 = vmul.f32 %v5321_v0, %v5321_v0 }
 0x1eb   :  { %1151 = vadd.xlane.f32.xlu2 %v1150_v3 }
 0x1ec   :  { %v1275_v62 = vsel %vm236_vm1, %v1238_v37, 0.0 }
 0x1ed   :  { %1276 = vadd.xlane.f32.xlu1 %v1275_v62  ;;  %v5369_v54 = vpop.permute.xlu1 %3559  ;;  %v5383_v62 = vpop.permute.xlu2 %3555 }
 0x1ef   :  { %v1083_v44 = vpop.f32.mrf.mxu1 }
 0x1f0   :  { %v5331_v34 = vadd.f32 %v5115_v10, %v1083_v44 }
 0x1f2   :  { %v1153_v22 = vsel %vm236_vm1, %v5331_v34, 0.0  ;;  %v1239_v37 = vmul.f32 %v5331_v34, %v5331_v34 }
 0x1f3   :  { %1154 = vadd.xlane.f32.xlu0 %v1153_v22 }
 0x1f4   :  { %v1278_v6 = vsel %vm236_vm1, %v1239_v37, 0.0  ;;  %v4038_v37 = vld [vmem:[%s7546_s1 + $0x40] sm:$0xff] }
 0x1f7   :  { %v1086_v40 = vpop.f32.mrf.mxu1 }
 0x1f8   :  { %v5386_v44 = vadd.f32 %v5115_v10, %v1086_v40 }
 0x1fa   :  { %3946 = vmatmul.msk.bf16.gmra.mxu1 %vm236_vm1, %v983_v7 }
 0x1ff   :  { %v1088_v8 = vpop.f32.mrf.mxu1 }
 0x200   :  { %v5338_v39 = vadd.f32 %v5115_v10, %v1088_v8 }
 0x202   :  { %v1159_v56 = vsel %vm236_vm1, %v5338_v39, 0.0 }
 0x203   :  { %1160 = vadd.xlane.f32.xlu1 %v1159_v56  ;;  %3563 = vrot.lane.b32.xlu2 %v952_v59, %s4282_s24  ;;  %v1240_v56 = vmul.f32 %v5386_v44, %v5386_v44 }
 0x207   :  { %v1091_v43 = vpop.f32.mrf.mxu1  ;;  %3561 = vrot.lane.b32.xlu0 %v951_v29, %s4282_s24 }
 0x208   :  { %v5347_v61 = vadd.f32 %v5115_v10, %v1091_v43 }
 0x20a   :  { %v1162_v57 = vsel %vm236_vm1, %v5347_v61, 0.0 }
 0x20b   :  { %1163 = vadd.xlane.f32.xlu1 %v1162_v57 }
 0x20f   :  { %v1093_v2 = vpop.f32.mrf.mxu1 }
 0x210   :  { %v5354_v46 = vadd.f32 %v5115_v10, %v1093_v2 }
 0x212   :  { %v1243_v52 = vmul.f32 %v5354_v46, %v5354_v46 }
 0x214   :  { %v1290_v24 = vsel %vm236_vm1, %v1243_v52, 0.0  ;;  %v1156_v52 = vsel %vm236_vm1, %v5386_v44, 0.0 }
 0x215   :  { %1291 = vadd.xlane.f32.xlu1 %v1290_v24 }
 0x217   :  { %v1096_v17 = vpop.f32.mrf.mxu1 }
 0x218   :  { %v5364_v31 = vadd.f32 %v5115_v10, %v1096_v17 }
 0x21a   :  { %v1244_v58 = vmul.f32 %v5364_v31, %v5364_v31 }
 0x21c   :  { %v1293_v23 = vsel %vm236_vm1, %v1244_v58, 0.0 }
 0x21d   :  { %1294 = vadd.xlane.f32.xlu1 %v1293_v23 }
 0x21f   :  { %v5371_v9 = vpop.f32.mrf.mxu1 }
 0x220   :  { %v1134_v36 = vpop.xlane.xlu0 %1133 }
 0x221   :  { %v5374_v13 = vmul.f32 %v1134_v36, %v4548_v30  ;;  %v4039_v36 = vld [vmem:[%s7546_s1 + $0x48] sm:$0xff] }
 0x222   :  { %1924 = vmatpush.bf16.msrb.mxu2 %v4039_v36 }
 0x223   :  { %v1357_v63 = vmul.f32 %v5374_v13, %v5374_v13 }
 0x226   :  { %1925 = vmatpush.bf16.msrb.mxu2 %v4038_v37 }
 0x227   :  { %v5378_v33 = vpop.f32.mrf.mxu1 }
 0x228   :  { %v1137_v20 = vpop.xlane.xlu1 %1136  ;;  %v1259_v4 = vpop.xlane.xlu0 %1258 }
 0x229   :  { %v1332_v3 = vmul.f32 %v1259_v4, %v4548_v30  ;;  %v5389_v26 = vmul.f32 %v1137_v20, %v4548_v30 }
 0x22b   :  { %v1382_v45 = vsub.f32 %v1332_v3, %v1357_v63  ;;  %v1358_v29 = vmul.f32 %v5389_v26, %v5389_v26  ;;  %v1281_v3 = vsel %vm236_vm1, %v1240_v56, 0.0 }
 0x22c   :  { %1279 = vadd.xlane.f32.xlu2 %v1278_v6 }
 0x22d   :  { %v1407_v22 = vmax.f32 %v1382_v45, 0.0  ;;  %v1241_v45 = vmul.f32 %v5338_v39, %v5338_v39 }
 0x22f   :  { %v1457_v7 = vadd.f32 1e-05, %v1407_v22  ;;  %v1103_v43 = vpop.f32.mrf.mxu1 }
 0x230   :  { %v1262_v8 = vpop.xlane.xlu1 %1261  ;;  %v1140_v59 = vpop.xlane.xlu0 %1139  ;;  %v5401_v2 = vadd.f32 %v5115_v10, %v1103_v43 }
 0x231   :  { %4118 = vrsqrt.f32 %v1457_v7  ;;  %v1333_v40 = vmul.f32 %v1262_v8, %v4548_v30  ;;  %v5398_v57 = vmul.f32 %v1140_v59, %v4548_v30  ;;  %1157 = vadd.xlane.f32.xlu0 %v1156_v52  ;;  %v4037_v52 = vld [vmem:[%s7546_s1 + $0x38] sm:$0xff]  ;;  %vm1488_vm9 = vweird.f32 %v1457_v7 }
 0x232   :  { %v1265_v24 = vpop.xlane.xlu2 %1264  ;;  %v1177_v20 = vsel %vm236_vm1, %v5401_v2, 0.0  ;;  %1926 = vmatpush.bf16.msrb.mxu2 %v4037_v52 }
 0x233   :  { %v1383_v17 = vsub.f32 %v1333_v40, %v1358_v29  ;;  %v1359_v58 = vmul.f32 %v5398_v57, %v5398_v57  ;;  %v1334_v23 = vmul.f32 %v1265_v24, %v4548_v30  ;;  %1178 = vadd.xlane.f32.xlu1 %v1177_v20 }
 0x234   :  { %1282 = vadd.xlane.f32.xlu2 %v1281_v3  ;;  %v1165_v3 = vsel %vm236_vm1, %v5354_v46, 0.0 }
 0x235   :  { %v1408_v4 = vmax.f32 %v1383_v17, 0.0  ;;  %v1384_v63 = vsub.f32 %v1334_v23, %v1359_v58  ;;  %v1284_v58 = vsel %vm236_vm1, %v1241_v45, 0.0 }
 0x237   :  { %v4119_v22 = vpop.eup %4118  ;;  %v5419_v6 = vadd.f32 1e-05, %v1408_v4  ;;  %v1409_v8 = vmax.f32 %v1384_v63, 0.0  ;;  %v1106_v56 = vpop.f32.mrf.mxu1 }
 0x238   :  { %v1483_v59 = vmul.f32 %v4119_v22, %v1457_v7  ;;  %v1143_v29 = vpop.xlane.xlu1 %1142  ;;  %v5431_v17 = vadd.f32 %v5115_v10, %v1106_v56  ;;  %vm1489_vm8 = vweird.f32 %v4119_v22 }
 0x239   :  { %4120 = vrsqrt.f32 %v5419_v6  ;;  %v5422_v43 = vadd.f32 1e-05, %v1409_v8  ;;  %v5425_v40 = vmul.f32 %v1143_v29, %v4548_v30  ;;  %1285 = vadd.xlane.f32.xlu0 %v1284_v58  ;;  %v1242_v8 = vmul.f32 %v5347_v61, %v5347_v61  ;;  %v4036_v29 = vld [vmem:[%s7546_s1 + $0x30] sm:$0xff]  ;;  %vm1490_vm10 = vmor %vm1488_vm9, %vm1489_vm8 }
 0x23a   :  { %v1484_v24 = vmul.f32 %v4119_v22, %v1483_v59  ;;  %v1268_v23 = vpop.xlane.xlu0 %1267  ;;  %v1180_v63 = vsel %vm236_vm1, %v5431_v17, 0.0  ;;  %1927 = vmatpush.bf16.msrb.mxu2 %v4036_v29  ;;  %v5463_v29 = vadd.f32 %v5115_v10, %v5371_v9  ;;  %vm1498_vm12 = vweird.f32 %v5419_v6 }
 0x23b   :  { %4122 = vrsqrt.f32 %v5422_v43  ;;  %v1360_v36 = vmul.f32 %v5425_v40, %v5425_v40  ;;  %v1335_v4 = vmul.f32 %v1268_v23, %v4548_v30  ;;  %1181 = vadd.xlane.f32.xlu1 %v1180_v63  ;;  %v1287_v63 = vsel %vm236_vm1, %v1242_v8, 0.0 }
 0x23c   :  { %v1485_v20 = vmul.f32 0.5, %v1484_v24  ;;  %1166 = vadd.xlane.f32.xlu2 %v1165_v3  ;;  %v1432_v3 = vsub.f32 %v5138_v19, %v5374_v13  ;;  %v5470_v13 = vld [vmem:[%s7548_s2 + $0x4] ss:$0 sm:$0xff]  ;;  %v1433_v9 = vsub.f32 %v5162_v12, %v5389_v26  ;;  %vm1508_vm15 = vweird.f32 %v5422_v43 }
 0x23d   :  { %v1385_v45 = vsub.f32 %v1335_v4, %v1360_v36 }
 0x23e   :  { %v1486_v37 = vsub.f32 1.5, %v1485_v20 }
 0x23f   :  { %v4121_v59 = vpop.eup %4120  ;;  %v1410_v58 = vmax.f32 %v1385_v45, 0.0  ;;  %v1108_v52 = vpop.f32.mrf.mxu1 }
 0x240   :  { %v1487_v56 = vmul.f32 %v4119_v22, %v1486_v37  ;;  %v1493_v24 = vmul.f32 %v4121_v59, %v5419_v6  ;;  %v5456_v7 = vadd.f32 %v5115_v10, %v1108_v52  ;;  %vm1499_vm11 = vweird.f32 %v4121_v59 }
 0x241   :  { %v5448_v23 = vpop.eup %4122  ;;  %v1460_v37 = vadd.f32 1e-05, %v1410_v58  ;;  %1288 = vadd.xlane.f32.xlu0 %v1287_v63  ;;  %vm1500_vm13 = vmor %vm1498_vm12, %vm1499_vm11  ;;  %v1171_v6 = vsel %vm236_vm1, %v5463_v29, 0.0 }
 0x242   :  { %v1491_v36 = vsel %vm1490_vm10, %v4119_v22, %v1487_v56  ;;  %v1494_v20 = vmul.f32 %v4121_v59, %v1493_v24  ;;  %v1503_v4 = vmul.f32 %v5448_v23, %v5422_v43  ;;  %v1168_v22 = vsel %vm236_vm1, %v5364_v31, 0.0 }
 0x243   :  { %v1732_v56 = vmul.f32 %v1491_v36, %v1432_v3  ;;  %4124 = vrsqrt.f32 %v1460_v37  ;;  %v1249_v19 = vmul.f32 %v5456_v7, %v5456_v7  ;;  %vm1509_vm14 = vweird.f32 %v5448_v23 }
 0x244   :  { %v1495_v45 = vmul.f32 0.5, %v1494_v20  ;;  %v1504_v53 = vmul.f32 %v5448_v23, %v1503_v4  ;;  %1169 = vadd.xlane.f32.xlu2 %v1168_v22  ;;  %v1245_v20 = vmul.f32 %v5463_v29, %v5463_v29  ;;  %vm5499_vm2 = vmor %vm1508_vm15, %vm1509_vm14  ;;  %vm1518_vm4 = vweird.f32 %v1460_v37 }
 0x245   :  { %v1308_v58 = vsel %vm236_vm1, %v1249_v19, 0.0  ;;  %v1758_v4 = vmul.f32 %v5470_v13, %v1732_v56 }
 0x246   :  { %v1496_v8 = vsub.f32 1.5, %v1495_v45  ;;  %v1505_v24 = vmul.f32 0.5, %v1504_v53  ;;  %1309 = vadd.xlane.f32.xlu1 %v1308_v58  ;;  %v5484_v53 = vld [vmem:[%s7548_s2 + $0x5] ss:$0 sm:$0xff]  ;;  %v1296_v22 = vsel %vm236_vm1, %v1245_v20, 0.0 }
 0x247   :  { %v5476_v36 = vpop.f32.mrf.mxu1  ;;  %v1784_v56 = vadd.f32 %v5484_v53, %v1758_v4 }
 0x248   :  { %v1497_v52 = vmul.f32 %v4121_v59, %v1496_v8  ;;  %v1506_v3 = vsub.f32 1.5, %v1505_v24  ;;  %v5493_v8 = vadd.f32 %v5115_v10, %v5378_v33 }
 0x249   :  { %v4125_v45 = vpop.eup %4124  ;;  %1172 = vadd.xlane.f32.xlu0 %v1171_v6 }
 0x24a   :  { %v1501_v63 = vsel %vm1500_vm13, %v4121_v59, %v1497_v52  ;;  %v1513_v26 = vmul.f32 %v4125_v45, %v1460_v37  ;;  %v1507_v59 = vmul.f32 %v5448_v23, %v1506_v3  ;;  %vm1519_vm3 = vweird.f32 %v4125_v45 }
 0x24b   :  { %v1733_v12 = vmul.f32 %v1501_v63, %v1433_v9  ;;  %v1809_v63 = vmax.f32 %v1784_v56, 0.0  ;;  %vm1520_vm5 = vmor %vm1518_vm4, %vm1519_vm3 }
 0x24c   :  { %v1514_v24 = vmul.f32 %v4125_v45, %v1513_v26  ;;  %1297 = vadd.xlane.f32.xlu2 %v1296_v22  ;;  %v1174_v26 = vsel %vm236_vm1, %v5493_v8, 0.0  ;;  %v1511_v43 = vsel %vm5499_vm2, %v5448_v23, %v1507_v59  ;;  %v1434_v22 = vsub.f32 %v5214_v42, %v5398_v57 }
 0x24d   :  { %v1759_v19 = vmul.f32 %v5470_v13, %v1733_v12  ;;  %v1247_v42 = vmul.f32 %v5401_v2, %v5401_v2 }
 0x24e   :  { %v1515_v52 = vmul.f32 0.5, %v1514_v24  ;;  %v1146_v9 = vpop.xlane.xlu1 %1145  ;;  %v1734_v23 = vmul.f32 %v1511_v43, %v1434_v22 }
 0x24f   :  { %v1785_v58 = vadd.f32 %v5484_v53, %v1759_v19  ;;  %v5504_v4 = vmul.f32 %v1146_v9, %v4548_v30  ;;  %v1113_v33 = vpop.f32.mrf.mxu1 }
 0x250   :  { %v1516_v6 = vsub.f32 1.5, %v1515_v52  ;;  %v1271_v12 = vpop.xlane.xlu0 %1270  ;;  %v1435_v52 = vsub.f32 %v5238_v41, %v5425_v40 }
 0x251   :  { %v1810_v3 = vmax.f32 %v1785_v58, 0.0  ;;  %v1361_v19 = vmul.f32 %v5504_v4, %v5504_v4  ;;  %v1336_v24 = vmul.f32 %v1271_v12, %v4548_v30  ;;  %1175 = vadd.xlane.f32.xlu0 %v1174_v26 }
 0x252   :  { %v1517_v58 = vmul.f32 %v4125_v45, %v1516_v6  ;;  %v1302_v6 = vsel %vm236_vm1, %v1247_v42, 0.0 }
 0x253   :  { %v1834_v56 = vpack.c.bf16 %v1810_v3, %v1809_v63  ;;  %v1386_v9 = vsub.f32 %v1336_v24, %v1361_v19  ;;  %v1760_v3 = vmul.f32 %v5470_v13, %v1734_v23  ;;  %v1248_v19 = vmul.f32 %v5431_v17, %v5431_v17 }
 0x254   :  { %v1521_v57 = vsel %vm1520_vm5, %v4125_v45, %v1517_v58  ;;  %v954_v24 = vmax.f32 %v4382_v28, 0.0  ;;  %v5540_v28 = vadd.f32 %v5115_v10, %v1113_v33  ;;  %v1436_v33 = vsub.f32 %v5298_v15, %v5504_v4 }
 0x255   :  { %3963 = vmatmul.msk.bf16.vlgmr.msrb.gmra.mxu2 %vm236_vm1, %v1834_v56  ;;  %v1411_v59 = vmax.f32 %v1386_v9, 0.0  ;;  %v1735_v20 = vmul.f32 %v1521_v57, %v1435_v52 }
 0x256   :  { %v1149_v16 = vpop.xlane.xlu2 %1148 }
 0x257   :  { %v1461_v12 = vadd.f32 1e-05, %v1411_v59  ;;  %v5522_v63 = vmul.f32 %v1149_v16, %v4548_v30  ;;  %v1116_v37 = vpop.f32.mrf.mxu1  ;;  %v1761_v41 = vmul.f32 %v5470_v13, %v1735_v20  ;;  %v1786_v16 = vadd.f32 %v5484_v53, %v1760_v3 }
 0x258   :  { %v1274_v40 = vpop.xlane.xlu1 %1273  ;;  %v1305_v59 = vsel %vm236_vm1, %v1248_v19, 0.0 }
 0x259   :  { %4126 = vrsqrt.f32 %v1461_v12  ;;  %v1362_v26 = vmul.f32 %v5522_v63, %v5522_v63  ;;  %1303 = vadd.xlane.f32.xlu0 %v1302_v6  ;;  %v1337_v45 = vmul.f32 %v1274_v40, %v4548_v30  ;;  %v1787_v43 = vadd.f32 %v5484_v53, %v1761_v41 }
 0x25a   :  { %v1811_v23 = vmax.f32 %v1786_v16, 0.0  ;;  %v953_v41 = vmax.f32 %v4454_v11, 0.0  ;;  %v1189_v16 = vsel %vm236_vm1, %v5540_v28, 0.0  ;;  %vm1528_vm7 = vweird.f32 %v1461_v12 }
 0x25b   :  { %v1387_v22 = vsub.f32 %v1337_v45, %v1362_v26  ;;  %v1812_v56 = vmax.f32 %v1787_v43, 0.0  ;;  %v1437_v15 = vsub.f32 %v5309_v25, %v5522_v63 }
 0x25d   :  { %v1412_v58 = vmax.f32 %v1387_v22, 0.0  ;;  %v1835_v20 = vpack.c.bf16 %v1812_v56, %v1811_v23 }
 0x25f   :  { %v4127_v52 = vpop.eup %4126  ;;  %3567 = vrot.lane.b32.xlu1 %v954_v24, %s4282_s24  ;;  %v1118_v9 = vpop.f32.mrf.mxu1  ;;  %v1462_v57 = vadd.f32 1e-05, %v1412_v58  ;;  %v5548_v24 = vadd.f32 %v5115_v10, %v1116_v37 }
 0x260   :  { %v1523_v42 = vmul.f32 %v4127_v52, %v1461_v12  ;;  %vm1529_vm6 = vweird.f32 %v4127_v52 }
 0x261   :  { %1306 = vadd.xlane.f32.xlu0 %v1305_v59  ;;  %4128 = vrsqrt.f32 %v1462_v57  ;;  %vm1530_vm8 = vmor %vm1528_vm7, %vm1529_vm6  ;;  %v5551_v59 = vadd.f32 %v5115_v10, %v1118_v9  ;;  %v1192_v12 = vsel %vm236_vm1, %v5548_v24, 0.0  ;;  %vm1538_vm10 = vweird.f32 %v1462_v57 }
 0x262   :  { %v1524_v3 = vmul.f32 %v4127_v52, %v1523_v42 }
 0x264   :  { %v1525_v40 = vmul.f32 0.5, %v1524_v3  ;;  %3565 = vrot.lane.b32.xlu2 %v953_v41, %s4282_s24 }
 0x265   :  { %3964 = vmatmul.msk.bf16.gmra.mxu2 %vm236_vm1, %v1835_v20 }
 0x266   :  { %v1526_v6 = vsub.f32 1.5, %v1525_v40 }
 0x267   :  { %v1121_v26 = vpop.f32.mrf.mxu1  ;;  %v4129_v45 = vpop.eup %4128 }
 0x268   :  { %v1527_v43 = vmul.f32 %v4127_v52, %v1526_v6  ;;  %v1533_v22 = vmul.f32 %v4129_v45, %v1462_v57  ;;  %vm1539_vm9 = vweird.f32 %v4129_v45  ;;  %v5565_v57 = vadd.f32 %v5115_v10, %v1121_v26 }
 0x269   :  { %1190 = vadd.xlane.f32.xlu0 %v1189_v16  ;;  %vm1540_vm11 = vmor %vm1538_vm10, %vm1539_vm9 }
 0x26a   :  { %v1534_v11 = vmul.f32 %v4129_v45, %v1533_v22  ;;  %v1531_v19 = vsel %vm1530_vm8, %v4127_v52, %v1527_v43  ;;  %v1253_v52 = vmul.f32 %v5551_v59, %v5551_v59  ;;  %v1254_v16 = vmul.f32 %v5565_v57, %v5565_v57  ;;  %v1152_v22 = vpop.xlane.xlu2 %1151 }
 0x26b   :  { %v1736_v58 = vmul.f32 %v1531_v19, %v1436_v33  ;;  %v5574_v19 = vadd.f32 %v5115_v10, %v5476_v36  ;;  %v5578_v33 = vmul.f32 %v1152_v22, %v4548_v30  ;;  %v1246_v36 = vmul.f32 %v5493_v8, %v5493_v8 }
 0x26c   :  { %v1535_v56 = vmul.f32 0.5, %v1534_v11  ;;  %v1320_v6 = vsel %vm236_vm1, %v1253_v52, 0.0  ;;  %v1323_v26 = vsel %vm236_vm1, %v1254_v16, 0.0  ;;  %v1195_v52 = vsel %vm236_vm1, %v5551_v59, 0.0 }
 0x26d   :  { %v1762_v4 = vmul.f32 %v5470_v13, %v1736_v58  ;;  %v1250_v58 = vmul.f32 %v5574_v19, %v5574_v19 }
 0x26e   :  { %v1536_v23 = vsub.f32 1.5, %v1535_v56  ;;  %v1277_v56 = vpop.xlane.xlu1 %1276 }
 0x26f   :  { %v1123_v42 = vpop.f32.mrf.mxu1  ;;  %v1788_v41 = vadd.f32 %v5484_v53, %v1762_v4  ;;  %v1299_v4 = vsel %vm236_vm1, %v1246_v36, 0.0 }
 0x270   :  { %v1537_v20 = vmul.f32 %v4129_v45, %v1536_v23  ;;  %v1363_v23 = vmul.f32 %v5578_v33, %v5578_v33 }
 0x271   :  { %1193 = vadd.xlane.f32.xlu0 %v1192_v12  ;;  %v1813_v63 = vmax.f32 %v1788_v41, 0.0  ;;  %v1338_v12 = vmul.f32 %v1277_v56, %v4548_v30  ;;  %v1155_v41 = vpop.xlane.xlu0 %1154 }
 0x272   :  { %v1541_v37 = vsel %vm1540_vm11, %v4129_v45, %v1537_v20  ;;  %v1311_v20 = vsel %vm236_vm1, %v1250_v58, 0.0  ;;  %v5608_v16 = vmul.f32 %v1155_v41, %v4548_v30 }
 0x273   :  { %v1737_v3 = vmul.f32 %v1541_v37, %v1437_v15  ;;  %v1388_v15 = vsub.f32 %v1338_v12, %v1363_v23  ;;  %v1251_v12 = vmul.f32 %v5540_v28, %v5540_v28 }
 0x274   :  { %v1364_v56 = vmul.f32 %v5608_v16, %v5608_v16 }
 0x275   :  { %v1763_v9 = vmul.f32 %v5470_v13, %v1737_v3  ;;  %v1413_v37 = vmax.f32 %v1388_v15, 0.0 }
 0x277   :  { %v5562_v40 = vpop.f32.mrf.mxu1  ;;  %v1789_v25 = vadd.f32 %v5484_v53, %v1763_v9  ;;  %v5591_v3 = vadd.f32 1e-05, %v1413_v37  ;;  %v955_v9 = vmax.f32 %v4379_v27, 0.0  ;;  %v1314_v37 = vsel %vm236_vm1, %v1251_v12, 0.0 }
 0x279   :  { %1321 = vadd.xlane.f32.xlu0 %v1320_v6  ;;  %v1814_v45 = vmax.f32 %v1789_v25, 0.0  ;;  %v1183_v6 = vsel %vm236_vm1, %v5456_v7, 0.0  ;;  %4130 = vrsqrt.f32 %v5591_v3  ;;  %v5598_v25 = vpop.permute.xlu2 %3563  ;;  %v5610_v22 = vpop.permute.xlu0 %3561  ;;  %vm1548_vm13 = vweird.f32 %v5591_v3 }
 0x27a   :  { %7602 = vst [vmem:[#allocation10_spill] sm:$0xff] %v5598_v25 }
 0x27b   :  { %v1836_v43 = vpack.c.bf16 %v1814_v45, %v1813_v63  ;;  %v5601_v63 = vadd.f32 %v5115_v10, %v1123_v42  ;;  %v1198_v45 = vsel %vm236_vm1, %v5565_v57, 0.0  ;;  %7603 = vst [vmem:[#allocation11_spill] sm:$0xff] %v5610_v22 }
 0x27d   :  { %3965 = vmatmul.msk.bf16.gmra.mxu2 %vm236_vm1, %v1836_v43  ;;  %v1161_v43 = vpop.xlane.xlu1 %1160 }
 0x27f   :  { %v1128_v11 = vpop.f32.mrf.mxu1  ;;  %v5605_v27 = vpop.eup %4130 }
 0x280   :  { %v1186_v11 = vsel %vm236_vm1, %v5574_v19, 0.0  ;;  %v1543_v10 = vmul.f32 %v5605_v27, %v5591_v3  ;;  %vm1549_vm12 = vweird.f32 %v5605_v27 }
 0x281   :  { %1324 = vadd.xlane.f32.xlu0 %v1323_v26  ;;  %v1255_v26 = vmul.f32 %v5601_v63, %v5601_v63  ;;  %vm5653_vm14 = vmor %vm1548_vm13, %vm1549_vm12 }
 0x282   :  { %v1544_v36 = vmul.f32 %v5605_v27, %v1543_v10  ;;  %v1252_v10 = vmul.f32 %v5548_v24, %v5548_v24 }
 0x283   :  { %v1326_v23 = vsel %vm236_vm1, %v1255_v26, 0.0 }
 0x289   :  { %1312 = vadd.xlane.f32.xlu1 %v1311_v20 }
 0x28d   :  { %1300 = vadd.xlane.f32.xlu2 %v1299_v4 }
 0x291   :  { %1196 = vadd.xlane.f32.xlu1 %v1195_v52  ;;  %v1164_v52 = vpop.xlane.xlu1 %1163 }
 0x295   :  { %1184 = vadd.xlane.f32.xlu2 %v1183_v6  ;;  %3569 = vrot.lane.b32.xlu0 %v955_v9, %s4282_s24  ;;  %v1545_v6 = vmul.f32 0.5, %v1544_v36 }
 0x299   :  { %1199 = vadd.xlane.f32.xlu1 %v1198_v45 }
 0x29d   :  { %1187 = vadd.xlane.f32.xlu2 %v1186_v11 }
 0x29f   :  { %v1280_v42 = vpop.xlane.xlu2 %1279 }
 0x2a0   :  { %v1339_v58 = vmul.f32 %v1280_v42, %v4548_v30  ;;  %v5635_v42 = vmul.f32 %v1161_v43, %v4548_v30 }
 0x2a1   :  { %1327 = vadd.xlane.f32.xlu1 %v1326_v23 }
 0x2a2   :  { %v1389_v20 = vsub.f32 %v1339_v58, %v1364_v56  ;;  %v1546_v58 = vsub.f32 1.5, %v1545_v6  ;;  %v1366_v36 = vmul.f32 %v5635_v42, %v5635_v42 }
 0x2a4   :  { %v1414_v15 = vmax.f32 %v1389_v20, 0.0  ;;  %v1158_v4 = vpop.xlane.xlu0 %1157  ;;  %v1317_v20 = vsel %vm236_vm1, %v1252_v10, 0.0  ;;  %v1547_v14 = vmul.f32 %v5605_v27, %v1546_v58 }
 0x2a5   :  { %v5627_v9 = vmul.f32 %v1158_v4, %v4548_v30  ;;  %1315 = vadd.xlane.f32.xlu2 %v1314_v37 }
 0x2a6   :  { %v1464_v41 = vadd.f32 1e-05, %v1414_v15  ;;  %v1292_v15 = vpop.xlane.xlu1 %1291 }
 0x2a7   :  { %v1365_v45 = vmul.f32 %v5627_v9, %v5627_v9  ;;  %v1283_v11 = vpop.xlane.xlu2 %1282  ;;  %v1343_v58 = vmul.f32 %v1292_v15, %v4548_v30 }
 0x2a8   :  { %4132 = vrsqrt.f32 %v1464_v41  ;;  %v1340_v26 = vmul.f32 %v1283_v11, %v4548_v30  ;;  %vm1558_vm2 = vweird.f32 %v1464_v41 }
 0x2aa   :  { %v1390_v56 = vsub.f32 %v1340_v26, %v1365_v45  ;;  %v5646_v26 = vmul.f32 %v1164_v52, %v4548_v30  ;;  %v1438_v52 = vsub.f32 %v5321_v0, %v5578_v33  ;;  %v1201_v0 = vsel %vm236_vm1, %v5601_v63, 0.0 }
 0x2ac   :  { %v1415_v23 = vmax.f32 %v1390_v56, 0.0  ;;  %v1286_v12 = vpop.xlane.xlu0 %1285  ;;  %v1367_v15 = vmul.f32 %v5646_v26, %v5646_v26 }
 0x2ad   :  { %v1341_v4 = vmul.f32 %v1286_v12, %v4548_v30  ;;  %1318 = vadd.xlane.f32.xlu2 %v1317_v20 }
 0x2ae   :  { %v4133_v37 = vpop.eup %4132  ;;  %v5641_v11 = vadd.f32 1e-05, %v1415_v23 }
 0x2af   :  { %v1553_v43 = vmul.f32 %v4133_v37, %v1464_v41  ;;  %v1391_v6 = vsub.f32 %v1341_v4, %v1366_v36  ;;  %v1167_v45 = vpop.xlane.xlu2 %1166  ;;  %v1551_v36 = vsel %vm5653_vm14, %v5605_v27, %v1547_v14  ;;  %vm1559_vm15 = vweird.f32 %v4133_v37 }
 0x2b0   :  { %4134 = vrsqrt.f32 %v5641_v11  ;;  %v5650_v10 = vmul.f32 %v1167_v45, %v4548_v30  ;;  %vm1560_vm3 = vmor %vm1558_vm2, %vm1559_vm15  ;;  %vm1568_vm5 = vweird.f32 %v5641_v11 }
 0x2b1   :  { %v1554_v56 = vmul.f32 %v4133_v37, %v1553_v43  ;;  %v1416_v23 = vmax.f32 %v1391_v6, 0.0  ;;  %v4272_v43 = vld [vmem:[%s7548_s2 + $0x3] ss:$0 sm:$0xff] }
 0x2b2   :  { %v1368_v20 = vmul.f32 %v5650_v10, %v5650_v10  ;;  %v5671_v6 = vadd.f32 %v4272_v43, %v5562_v40  ;;  %v1738_v40 = vmul.f32 %v1551_v36, %v1438_v52 }
 0x2b3   :  { %v1555_v4 = vmul.f32 0.5, %v1554_v56  ;;  %v5665_v3 = vadd.f32 1e-05, %v1416_v23  ;;  %v1295_v23 = vpop.xlane.xlu1 %1294 }
 0x2b4   :  { %v1393_v45 = vsub.f32 %v1343_v58, %v1368_v20  ;;  %v1289_v5 = vpop.xlane.xlu0 %1288  ;;  %v1256_v41 = vmul.f32 %v5671_v6, %v5671_v6 }
 0x2b5   :  { %v1556_v33 = vsub.f32 1.5, %v1555_v4  ;;  %4136 = vrsqrt.f32 %v5665_v3  ;;  %v1342_v14 = vmul.f32 %v1289_v5, %v4548_v30  ;;  %1202 = vadd.xlane.f32.xlu2 %v1201_v0  ;;  %v1439_v4 = vsub.f32 %v5331_v34, %v5608_v16 }
 0x2b6   :  { %v5679_v27 = vpop.eup %4134  ;;  %v1418_v56 = vmax.f32 %v1393_v45, 0.0  ;;  %v1344_v0 = vmul.f32 %v1295_v23, %v4548_v30  ;;  %v1764_v16 = vmul.f32 %v5470_v13, %v1738_v40  ;;  %vm1578_vm8 = vweird.f32 %v5665_v3 }
 0x2b7   :  { %v1557_v12 = vmul.f32 %v4133_v37, %v1556_v33  ;;  %v1563_v58 = vmul.f32 %v5679_v27, %v5641_v11  ;;  %v1392_v20 = vsub.f32 %v1342_v14, %v1367_v15  ;;  %v1170_v43 = vpop.xlane.xlu2 %1169  ;;  %vm1569_vm4 = vweird.f32 %v5679_v27 }
 0x2b8   :  { %v5685_v1 = vadd.f32 1e-05, %v1418_v56  ;;  %v5688_v5 = vmul.f32 %v1170_v43, %v4548_v30  ;;  %vm5721_vm6 = vmor %vm1568_vm5, %vm1569_vm4 }
 0x2b9   :  { %v1564_v45 = vmul.f32 %v5679_v27, %v1563_v58  ;;  %v1417_v52 = vmax.f32 %v1392_v20, 0.0  ;;  %v1561_v36 = vsel %vm1560_vm3, %v4133_v37, %v1557_v12  ;;  %v1204_v37 = vsel %vm236_vm1, %v5671_v6, 0.0 }
 0x2ba   :  { %4138 = vrsqrt.f32 %v5685_v1  ;;  %v1369_v34 = vmul.f32 %v5688_v5, %v5688_v5  ;;  %v1739_v56 = vmul.f32 %v1561_v36, %v1439_v4  ;;  %v1790_v4 = vadd.f32 %v5484_v53, %v1764_v16 }
 0x2bb   :  { %v4137_v15 = vpop.eup %4136  ;;  %v1565_v33 = vmul.f32 0.5, %v1564_v45  ;;  %v5698_v14 = vadd.f32 1e-05, %v1417_v52  ;;  %v1329_v45 = vsel %vm236_vm1, %v1256_v41, 0.0  ;;  %vm1598_vm14 = vweird.f32 %v5685_v1 }
 0x2bc   :  { %v1573_v58 = vmul.f32 %v4137_v15, %v5665_v3  ;;  %v1394_v20 = vsub.f32 %v1344_v0, %v1369_v34  ;;  %v1173_v43 = vpop.xlane.xlu0 %1172  ;;  %v1765_v52 = vmul.f32 %v5470_v13, %v1739_v56  ;;  %vm1579_vm7 = vweird.f32 %v4137_v15 }
 0x2bd   :  { %v1566_v23 = vsub.f32 1.5, %v1565_v33  ;;  %4140 = vrsqrt.f32 %v5698_v14  ;;  %v5705_v12 = vmul.f32 %v1173_v43, %v4548_v30  ;;  %1205 = vadd.xlane.f32.xlu2 %v1204_v37  ;;  %vm1580_vm9 = vmor %vm1578_vm8, %vm1579_vm7  ;;  %vm1588_vm12 = vweird.f32 %v5698_v14 }
 0x2be   :  { %v1574_v40 = vmul.f32 %v4137_v15, %v1573_v58  ;;  %v1419_v0 = vmax.f32 %v1394_v20, 0.0  ;;  %v1791_v41 = vadd.f32 %v5484_v53, %v1765_v52 }
 0x2bf   :  { %v1567_v36 = vmul.f32 %v5679_v27, %v1566_v23  ;;  %v1370_v34 = vmul.f32 %v5705_v12, %v5705_v12  ;;  %v1298_v33 = vpop.xlane.xlu2 %1297  ;;  %1330 = vadd.xlane.f32.xlu0 %v1329_v45  ;;  %v1815_v45 = vmax.f32 %v1790_v4, 0.0  ;;  %v1440_v4 = vsub.f32 %v5386_v44, %v5627_v9 }
 0x2c0   :  { %v5714_v43 = vpop.eup %4138  ;;  %v1575_v37 = vmul.f32 0.5, %v1574_v40  ;;  %v1345_v58 = vmul.f32 %v1298_v33, %v4548_v30  ;;  %v5726_v40 = vadd.f32 1e-05, %v1419_v0  ;;  %v1816_v33 = vmax.f32 %v1791_v41, 0.0 }
 0x2c1   :  { %v1593_v16 = vmul.f32 %v5714_v43, %v5685_v1  ;;  %v1571_v11 = vsel %vm5721_vm6, %v5679_v27, %v1567_v36  ;;  %vm1599_vm11 = vweird.f32 %v5714_v43  ;;  %v1443_v1 = vsub.f32 %v5354_v46, %v5650_v10 }
 0x2c2   :  { %v1576_v20 = vsub.f32 1.5, %v1575_v37  ;;  %v1395_v23 = vsub.f32 %v1345_v58, %v1370_v34  ;;  %v1441_v34 = vsub.f32 %v5338_v39, %v5635_v42  ;;  %v1837_v3 = vpack.c.bf16 %v1816_v33, %v1815_v45  ;;  %vm1600_vm15 = vmor %vm1598_vm14, %vm1599_vm11 }
 0x2c3   :  { %v4141_v55 = vpop.eup %4140  ;;  %v1594_v50 = vmul.f32 %v5714_v43, %v1593_v16  ;;  %4142 = vrsqrt.f32 %v5726_v40  ;;  %v1740_v27 = vmul.f32 %v1571_v11, %v1440_v4  ;;  %vm1608_vm6 = vweird.f32 %v5726_v40 }
 0x2c4   :  { %v1577_v52 = vmul.f32 %v4137_v15, %v1576_v20  ;;  %v1583_v25 = vmul.f32 %v4141_v55, %v5698_v14  ;;  %v1420_v22 = vmax.f32 %v1395_v23, 0.0  ;;  %3966 = vmatmul.msk.bf16.gmra.mxu2 %vm236_vm1, %v1837_v3  ;;  %vm1589_vm10 = vweird.f32 %v4141_v55  ;;  %v5764_v3 = vld [vmem:[%s7548_s2 + $0x6] ss:$0 sm:$0xff] }
 0x2c5   :  { %v1595_v41 = vmul.f32 0.5, %v1594_v50  ;;  %v1766_v44 = vmul.f32 %v5470_v13, %v1740_v27  ;;  %vm1590_vm13 = vmor %vm1588_vm12, %vm1589_vm10 }
 0x2c6   :  { %v1584_v0 = vmul.f32 %v4141_v55, %v1583_v25  ;;  %v5737_v37 = vadd.f32 1e-05, %v1420_v22  ;;  %v1581_v58 = vsel %vm1580_vm9, %v4137_v15, %v1577_v52 }
 0x2c7   :  { %v1741_v36 = vmul.f32 %v1581_v58, %v1441_v34  ;;  %v1596_v9 = vsub.f32 1.5, %v1595_v41  ;;  %v1792_v20 = vadd.f32 %v5484_v53, %v1766_v44  ;;  %v1442_v34 = vsub.f32 %v5347_v61, %v5646_v26 }
 0x2c8   :  { %v1585_v16 = vmul.f32 0.5, %v1584_v0  ;;  %4144 = vrsqrt.f32 %v5737_v37  ;;  %vm1618_vm4 = vweird.f32 %v5737_v37 }
 0x2c9   :  { %v1767_v39 = vmul.f32 %v5470_v13, %v1741_v36  ;;  %v5744_v25 = vpop.eup %4142  ;;  %v1597_v23 = vmul.f32 %v5714_v43, %v1596_v9  ;;  %v1817_v4 = vmax.f32 %v1792_v20, 0.0 }
 0x2ca   :  { %v1586_v42 = vsub.f32 1.5, %v1585_v16  ;;  %v1603_v45 = vmul.f32 %v5744_v25, %v5726_v40  ;;  %v5774_v16 = vpop.xlane.xlu0 %1175  ;;  %vm1609_vm3 = vweird.f32 %v5744_v25  ;;  %v1444_v40 = vsub.f32 %v5364_v31, %v5688_v5 }
 0x2cb   :  { %v1793_v22 = vadd.f32 %v5484_v53, %v1767_v39  ;;  %v1601_v14 = vsel %vm1600_vm15, %v5714_v43, %v1597_v23  ;;  %vm1610_vm7 = vmor %vm1608_vm6, %vm1609_vm3 }
 0x2cc   :  { %v1587_v56 = vmul.f32 %v4141_v55, %v1586_v42  ;;  %v1604_v0 = vmul.f32 %v5744_v25, %v1603_v45  ;;  %v1743_v41 = vmul.f32 %v1601_v14, %v1443_v1 }
 0x2cd   :  { %v1818_v33 = vmax.f32 %v1793_v22, 0.0 }
 0x2ce   :  { %v5747_v15 = vpop.eup %4144  ;;  %v1591_v52 = vsel %vm1590_vm13, %v4141_v55, %v1587_v56  ;;  %v1605_v26 = vmul.f32 0.5, %v1604_v0  ;;  %v1769_v42 = vmul.f32 %v5470_v13, %v1743_v41 }
 0x2cf   :  { %v1613_v50 = vmul.f32 %v5747_v15, %v5737_v37  ;;  %v1838_v58 = vpack.c.bf16 %v1818_v33, %v1817_v4  ;;  %v1742_v27 = vmul.f32 %v1591_v52, %v1442_v34  ;;  %vm1619_vm2 = vweird.f32 %v5747_v15  ;;  %v1179_v33 = vpop.xlane.xlu1 %1178 }
 0x2d0   :  { %v1606_v9 = vsub.f32 1.5, %v1605_v26  ;;  %v1795_v23 = vadd.f32 %v5484_v53, %v1769_v42  ;;  %vm5793_vm5 = vmor %vm1618_vm4, %vm1619_vm2  ;;  %v1445_v37 = vsub.f32 %v5463_v29, %v5705_v12 }
 0x2d1   :  { %v1614_v11 = vmul.f32 %v5747_v15, %v1613_v50  ;;  %v1768_v46 = vmul.f32 %v5470_v13, %v1742_v27  ;;  %v5809_v27 = vmul.f32 %v1179_v33, %v4548_v30 }
 0x2d2   :  { %v1607_v45 = vmul.f32 %v5744_v25, %v1606_v9  ;;  %v1304_v0 = vpop.xlane.xlu0 %1303  ;;  %v1820_v1 = vmax.f32 %v1795_v23, 0.0 }
 0x2d3   :  { %v1615_v55 = vmul.f32 0.5, %v1614_v11  ;;  %v1794_v22 = vadd.f32 %v5484_v53, %v1768_v46  ;;  %v1372_v12 = vmul.f32 %v5809_v27, %v5809_v27 }
 0x2d4   :  { %3967 = vmatmul.msk.bf16.gmra.mxu2 %vm236_vm1, %v1838_v58 }
 0x2d5   :  { %v1616_v10 = vsub.f32 1.5, %v1615_v55  ;;  %v1819_v34 = vmax.f32 %v1794_v22, 0.0  ;;  %v1611_v55 = vsel %vm1610_vm7, %v5744_v25, %v1607_v45 }
 0x2d7   :  { %v1617_v56 = vmul.f32 %v5747_v15, %v1616_v10  ;;  %v1182_v46 = vpop.xlane.xlu1 %1181 }
 0x2d8   :  { %v1929_v36 = vpop.f32.mrf.mxu2 }
 0x2d9   :  { %v5772_v61 = vadd.f32 %v5764_v3, %v1929_v36  ;;  %v1621_v14 = vsel %vm5793_vm5, %v5747_v15, %v1617_v56  ;;  %v1839_v36 = vpack.c.bf16 %v1820_v1, %v1819_v34  ;;  %v1347_v15 = vmul.f32 %v1304_v0, %v4548_v30 }
 0x2da   :  { %v1745_v41 = vmul.f32 %v1621_v14, %v1445_v37  ;;  %v1307_v23 = vpop.xlane.xlu0 %1306 }
 0x2db   :  { %v1995_v43 = vsel %vm121_vm0, %v5772_v61, 0.0  ;;  %v2102_v39 = vmul.f32 %v5772_v61, %v5772_v61  ;;  %v1348_v0 = vmul.f32 %v1307_v23, %v4548_v30 }
 0x2dc   :  { %1996 = vadd.xlane.f32.xlu1 %v1995_v43  ;;  %v1744_v43 = vmul.f32 %v1611_v55, %v1444_v40  ;;  %v1771_v5 = vmul.f32 %v5470_v13, %v1745_v41  ;;  %v5848_v55 = vpop.permute.xlu2 %3565 }
 0x2dd   :  { %v2127_v44 = vsel %vm121_vm0, %v2102_v39, 0.0  ;;  %v1397_v39 = vsub.f32 %v1347_v15, %v1372_v12  ;;  %7610 = vst [vmem:[#allocation12_spill] sm:$0xff] %v5848_v55 }
 0x2de   :  { %2128 = vadd.xlane.f32.xlu0 %v2127_v44  ;;  %v1770_v10 = vmul.f32 %v5470_v13, %v1744_v43  ;;  %v1797_v44 = vadd.f32 %v5484_v53, %v1771_v5 }
 0x2df   :  { %v1422_v9 = vmax.f32 %v1397_v39, 0.0 }
 0x2e0   :  { %v1931_v50 = vpop.f32.mrf.mxu2  ;;  %v1822_v33 = vmax.f32 %v1797_v44, 0.0 }
 0x2e1   :  { %v5787_v20 = vadd.f32 %v5764_v3, %v1931_v50  ;;  %v1796_v50 = vadd.f32 %v5484_v53, %v1770_v10  ;;  %v5840_v34 = vadd.f32 1e-05, %v1422_v9 }
 0x2e2   :  { %v1191_v12 = vpop.xlane.xlu0 %1190 }
 0x2e3   :  { %v1998_v52 = vsel %vm121_vm0, %v5787_v20, 0.0  ;;  %v2103_v4 = vmul.f32 %v5787_v20, %v5787_v20  ;;  %v1821_v14 = vmax.f32 %v1796_v50, 0.0  ;;  %4146 = vrsqrt.f32 %v5840_v34 }
 0x2e4   :  { %1999 = vadd.xlane.f32.xlu2 %v1998_v52  ;;  %3968 = vmatmul.msk.bf16.gmra.mxu2 %vm236_vm1, %v1839_v36  ;;  %v5838_v52 = vmul.f32 %v1182_v46, %v4548_v30  ;;  %vm1638_vm9 = vweird.f32 %v5840_v34 }
 0x2e5   :  { %v2130_v58 = vsel %vm121_vm0, %v2103_v4, 0.0  ;;  %v1310_v4 = vpop.xlane.xlu1 %1309  ;;  %v1840_v1 = vpack.c.bf16 %v1822_v33, %v1821_v14 }
 0x2e6   :  { %2131 = vadd.xlane.f32.xlu1 %v2130_v58  ;;  %v1373_v58 = vmul.f32 %v5838_v52, %v5838_v52 }
 0x2e8   :  { %v1934_v26 = vpop.f32.mrf.mxu2  ;;  %v1398_v40 = vsub.f32 %v1348_v0, %v1373_v58  ;;  %v1349_v58 = vmul.f32 %v1310_v4, %v4548_v30 }
 0x2e9   :  { %v5817_v29 = vadd.f32 %v5764_v3, %v1934_v26  ;;  %v5852_v41 = vpop.eup %4146  ;;  %v5856_v26 = vmul.f32 %v5774_v16, %v4548_v30 }
 0x2ea   :  { %v1423_v15 = vmax.f32 %v1398_v40, 0.0  ;;  %v1633_v43 = vmul.f32 %v5852_v41, %v5840_v34  ;;  %v5872_v33 = vpop.xlane.xlu0 %1193  ;;  %vm1639_vm8 = vweird.f32 %v5852_v41 }
 0x2eb   :  { %v2001_v25 = vsel %vm121_vm0, %v5817_v29, 0.0  ;;  %v2104_v31 = vmul.f32 %v5817_v29, %v5817_v29  ;;  %v1371_v5 = vmul.f32 %v5856_v26, %v5856_v26  ;;  %vm5906_vm10 = vmor %vm1638_vm9, %vm1639_vm8 }
 0x2ec   :  { %2002 = vadd.xlane.f32.xlu2 %v2001_v25  ;;  %v5860_v25 = vadd.f32 1e-05, %v1423_v15 }
 0x2ed   :  { %v2133_v42 = vsel %vm121_vm0, %v2104_v31, 0.0  ;;  %v5850_v36 = vpop.permute.xlu1 %3567 }
 0x2ee   :  { %2134 = vadd.xlane.f32.xlu1 %v2133_v42  ;;  %7611 = vst [vmem:[#allocation13_spill] sm:$0xff] %v5850_v36  ;;  %v1634_v42 = vmul.f32 %v5852_v41, %v1633_v43  ;;  %4148 = vrsqrt.f32 %v5860_v25  ;;  %vm1648_vm15 = vweird.f32 %v5860_v25 }
 0x2f0   :  { %v1936_v22 = vpop.f32.mrf.mxu2  ;;  %v1635_v50 = vmul.f32 0.5, %v1634_v42 }
 0x2f1   :  { %v5830_v56 = vadd.f32 %v5764_v3, %v1936_v22 }
 0x2f2   :  { %v1636_v40 = vsub.f32 1.5, %v1635_v50 }
 0x2f3   :  { %v2004_v45 = vsel %vm121_vm0, %v5830_v56, 0.0  ;;  %v2105_v11 = vmul.f32 %v5830_v56, %v5830_v56 }
 0x2f4   :  { %2005 = vadd.xlane.f32.xlu0 %v2004_v45  ;;  %3969 = vmatmul.msk.bf16.gmra.mxu2 %vm236_vm1, %v1840_v1  ;;  %v956_v1 = vmax.f32 %v4412_v47, 0.0  ;;  %v1637_v42 = vmul.f32 %v5852_v41, %v1636_v40 }
 0x2f5   :  { %v2136_v37 = vsel %vm121_vm0, %v2105_v11, 0.0 }
 0x2f6   :  { %2137 = vadd.xlane.f32.xlu2 %v2136_v37  ;;  %v5877_v37 = vpop.eup %4148 }
 0x2f7   :  { %vm1649_vm14 = vweird.f32 %v5877_v37 }
 0x2f8   :  { %vm5959_vm2 = vmor %vm1648_vm15, %vm1649_vm14 }
 0x2fc   :  { %v1313_v16 = vpop.xlane.xlu1 %1312 }
 0x300   :  { %v1301_v31 = vpop.xlane.xlu2 %1300  ;;  %v1939_v46 = vpop.f32.mrf.mxu2 }
 0x301   :  { %v1346_v39 = vmul.f32 %v1301_v31, %v4548_v30  ;;  %v5866_v10 = vadd.f32 %v5764_v3, %v1939_v46 }
 0x303   :  { %v1396_v44 = vsub.f32 %v1346_v39, %v1371_v5  ;;  %v2007_v9 = vsel %vm121_vm0, %v5866_v10, 0.0  ;;  %v1643_v5 = vmul.f32 %v5877_v37, %v5860_v25 }
 0x304   :  { %2008 = vadd.xlane.f32.xlu0 %v2007_v9  ;;  %v1197_v39 = vpop.xlane.xlu1 %1196 }
 0x305   :  { %v1421_v22 = vmax.f32 %v1396_v44, 0.0 }
 0x307   :  { %v1471_v23 = vadd.f32 1e-05, %v1421_v22  ;;  %v5897_v22 = vmul.f32 %v1197_v39, %v4548_v30 }
 0x308   :  { %v1185_v45 = vpop.xlane.xlu2 %1184  ;;  %v1941_v14 = vpop.f32.mrf.mxu2 }
 0x309   :  { %4150 = vrsqrt.f32 %v1471_v23  ;;  %v5875_v11 = vmul.f32 %v1185_v45, %v4548_v30  ;;  %v5880_v0 = vadd.f32 %v5764_v3, %v1941_v14  ;;  %v1644_v45 = vmul.f32 %v5877_v37, %v1643_v5 }
 0x30a   :  { %v1447_v5 = vsub.f32 %v5401_v2, %v5809_v27  ;;  %vm1628_vm12 = vweird.f32 %v1471_v23 }
 0x30b   :  { %v1374_v15 = vmul.f32 %v5875_v11, %v5875_v11  ;;  %v2010_v43 = vsel %vm121_vm0, %v5880_v0, 0.0  ;;  %v2107_v31 = vmul.f32 %v5880_v0, %v5880_v0 }
 0x30c   :  { %2011 = vadd.xlane.f32.xlu1 %v2010_v43  ;;  %v1322_v43 = vpop.xlane.xlu0 %1321 }
 0x30d   :  { %v1399_v46 = vsub.f32 %v1349_v58, %v1374_v15  ;;  %v2142_v47 = vsel %vm121_vm0, %v2107_v31, 0.0  ;;  %v1641_v15 = vsel %vm5906_vm10, %v5852_v41, %v1637_v42  ;;  %v1350_v31 = vmul.f32 %v1313_v16, %v4548_v30 }
 0x30e   :  { %3571 = vrot.lane.b32.xlu2 %v956_v1, %s4282_s24  ;;  %2143 = vadd.xlane.f32.xlu0 %v2142_v47  ;;  %v1645_v47 = vmul.f32 0.5, %v1644_v45  ;;  %v1353_v42 = vmul.f32 %v1322_v43, %v4548_v30  ;;  %v1446_v58 = vsub.f32 %v5493_v8, %v5856_v26 }
 0x30f   :  { %v4151_v4 = vpop.eup %4150  ;;  %v1424_v44 = vmax.f32 %v1399_v46, 0.0  ;;  %v1378_v46 = vmul.f32 %v5897_v22, %v5897_v22 }
 0x310   :  { %v1623_v9 = vmul.f32 %v4151_v4, %v1471_v23  ;;  %v1188_v50 = vpop.xlane.xlu2 %1187  ;;  %vm1629_vm11 = vweird.f32 %v4151_v4  ;;  %v1646_v55 = vsub.f32 1.5, %v1645_v47  ;;  %v5939_v47 = vmul.f32 %v5872_v33, %v4548_v30 }
 0x311   :  { %v5901_v14 = vadd.f32 1e-05, %v1424_v44  ;;  %v5904_v1 = vmul.f32 %v1188_v50, %v4548_v30  ;;  %v5922_v44 = vmul.f32 %v1191_v12, %v4548_v30  ;;  %v1403_v2 = vsub.f32 %v1353_v42, %v1378_v46  ;;  %vm1630_vm13 = vmor %vm1628_vm12, %vm1629_vm11 }
 0x312   :  { %v1624_v40 = vmul.f32 %v4151_v4, %v1623_v9  ;;  %v1747_v9 = vmul.f32 %v1641_v15, %v1447_v5  ;;  %v1647_v46 = vmul.f32 %v5877_v37, %v1646_v55 }
 0x313   :  { %4152 = vrsqrt.f32 %v5901_v14  ;;  %v1375_v34 = vmul.f32 %v5904_v1, %v5904_v1  ;;  %v1376_v12 = vmul.f32 %v5922_v44, %v5922_v44  ;;  %v1428_v23 = vmax.f32 %v1403_v2, 0.0 }
 0x314   :  { %v1625_v39 = vmul.f32 0.5, %v1624_v40  ;;  %vm1658_vm4 = vweird.f32 %v5901_v14 }
 0x315   :  { %v1400_v41 = vsub.f32 %v1350_v31, %v1375_v34  ;;  %v1773_v34 = vmul.f32 %v5470_v13, %v1747_v9  ;;  %v5944_v13 = vld [vmem:[%s7548_s2 + $0x4] ss:$0 sm:$0xff]  ;;  %v1448_v9 = vsub.f32 %v5431_v17, %v5838_v52  ;;  %v1377_v17 = vmul.f32 %v5939_v47, %v5939_v47 }
 0x316   :  { %v1626_v16 = vsub.f32 1.5, %v1625_v39  ;;  %v1200_v39 = vpop.xlane.xlu1 %1199 }
 0x317   :  { %v1425_v50 = vmax.f32 %v1400_v41, 0.0  ;;  %v1799_v42 = vadd.f32 %v5484_v53, %v1773_v34  ;;  %v1449_v34 = vsub.f32 %v5456_v7, %v5875_v11 }
 0x318   :  { %v1627_v36 = vmul.f32 %v4151_v4, %v1626_v16  ;;  %v1316_v27 = vpop.xlane.xlu2 %1315  ;;  %v5950_v16 = vmul.f32 %v1200_v39, %v4548_v30 }
 0x319   :  { %v4153_v40 = vpop.eup %4152  ;;  %v5929_v45 = vadd.f32 1e-05, %v1425_v50  ;;  %v1351_v43 = vmul.f32 %v1316_v27, %v4548_v30 }
 0x31a   :  { %v1631_v31 = vsel %vm1630_vm13, %v4151_v4, %v1627_v36  ;;  %v1653_v15 = vmul.f32 %v4153_v40, %v5901_v14  ;;  %vm1659_vm3 = vweird.f32 %v4153_v40 }
 0x31b   :  { %4154 = vrsqrt.f32 %v5929_v45  ;;  %v1401_v8 = vsub.f32 %v1351_v43, %v1376_v12  ;;  %v1746_v26 = vmul.f32 %v1631_v31, %v1446_v58  ;;  %v5963_v58 = vadd.f32 1e-05, %v1428_v23  ;;  %v1325_v12 = vpop.xlane.xlu0 %1324  ;;  %vm1660_vm5 = vmor %vm1658_vm4, %vm1659_vm3 }
 0x31c   :  { %v1654_v5 = vmul.f32 %v4153_v40, %v1653_v15  ;;  %v1824_v15 = vmax.f32 %v1799_v42, 0.0  ;;  %v1354_v14 = vmul.f32 %v1325_v12, %v4548_v30  ;;  %vm1668_vm9 = vweird.f32 %v5929_v45 }
 0x31d   :  { %v1426_v36 = vmax.f32 %v1401_v8, 0.0  ;;  %v1772_v4 = vmul.f32 %v5944_v13, %v1746_v26 }
 0x31e   :  { %v1655_v41 = vmul.f32 0.5, %v1654_v5 }
 0x31f   :  { %v5952_v55 = vadd.f32 1e-05, %v1426_v36  ;;  %v1798_v33 = vadd.f32 %v5484_v53, %v1772_v4  ;;  %v1651_v53 = vsel %vm5959_vm2, %v5877_v37, %v1647_v46  ;;  %v1379_v37 = vmul.f32 %v5950_v16, %v5950_v16 }
 0x320   :  { %v1656_v2 = vsub.f32 1.5, %v1655_v41  ;;  %v1319_v25 = vpop.xlane.xlu2 %1318  ;;  %v1748_v23 = vmul.f32 %v1651_v53, %v1448_v9  ;;  %vm1698_vm2 = vweird.f32 %v5963_v58 }
 0x321   :  { %v5965_v27 = vpop.eup %4154  ;;  %4156 = vrsqrt.f32 %v5952_v55  ;;  %v1352_v52 = vmul.f32 %v1319_v25, %v4548_v30  ;;  %v1823_v26 = vmax.f32 %v1798_v33, 0.0  ;;  %v1404_v42 = vsub.f32 %v1354_v14, %v1379_v37 }
 0x322   :  { %v1657_v43 = vmul.f32 %v4153_v40, %v1656_v2  ;;  %v1663_v31 = vmul.f32 %v5965_v27, %v5929_v45  ;;  %4158 = vrsqrt.f32 %v5963_v58  ;;  %v1774_v2 = vmul.f32 %v5944_v13, %v1748_v23 }
 0x323   :  { %v1402_v8 = vsub.f32 %v1352_v52, %v1377_v17  ;;  %v1841_v4 = vpack.c.bf16 %v1824_v15, %v1823_v26  ;;  %v5993_v53 = vpop.permute.xlu0 %3569  ;;  %v1429_v12 = vmax.f32 %v1404_v42, 0.0  ;;  %v2106_v14 = vmul.f32 %v5866_v10, %v5866_v10 }
 0x324   :  { %v1661_v5 = vsel %vm1660_vm5, %v4153_v40, %v1657_v43  ;;  %v1664_v39 = vmul.f32 %v5965_v27, %v1663_v31  ;;  %v1328_v40 = vpop.xlane.xlu1 %1327  ;;  %vm1669_vm7 = vweird.f32 %v5965_v27  ;;  %vm1678_vm8 = vweird.f32 %v5952_v55 }
 0x325   :  { %v1749_v46 = vmul.f32 %v1661_v5, %v1449_v34  ;;  %v1427_v36 = vmax.f32 %v1402_v8, 0.0  ;;  %3970 = vmatmul.msk.bf16.gmra.mxu2 %vm236_vm1, %v1841_v4  ;;  %v1355_v31 = vmul.f32 %v1328_v40, %v4548_v30  ;;  %v6006_v8 = vld [vmem:[%s7548_s2 + $0x5] ss:$0 sm:$0xff]  ;;  %v1451_v45 = vsub.f32 %v5540_v28, %v5922_v44  ;;  %vm1670_vm11 = vmor %vm1668_vm9, %vm1669_vm7 }
 0x326   :  { %v1665_v11 = vmul.f32 0.5, %v1664_v39  ;;  %v1800_v23 = vadd.f32 %v6006_v8, %v1774_v2 }
 0x327   :  { %v4157_v41 = vpop.eup %4156  ;;  %v5984_v7 = vadd.f32 1e-05, %v1427_v36  ;;  %v1775_v50 = vmul.f32 %v5944_v13, %v1749_v46  ;;  %v6014_v36 = vadd.f32 1e-05, %v1429_v12 }
 0x328   :  { %v1673_v33 = vmul.f32 %v4157_v41, %v5952_v55  ;;  %v1203_v9 = vpop.xlane.xlu2 %1202  ;;  %v5991_v25 = vpop.eup %4158  ;;  %v1666_v43 = vsub.f32 1.5, %v1665_v11  ;;  %vm1679_vm6 = vweird.f32 %v4157_v41 }
 0x329   :  { %4160 = vrsqrt.f32 %v5984_v7  ;;  %v5996_v52 = vmul.f32 %v1203_v9, %v4548_v30  ;;  %v1693_v37 = vmul.f32 %v5991_v25, %v5963_v58  ;;  %v1801_v26 = vadd.f32 %v6006_v8, %v1775_v50  ;;  %vm6024_vm10 = vmor %vm1678_vm8, %vm1679_vm6 }
 0x32a   :  { %v1674_v17 = vmul.f32 %v4157_v41, %v1673_v33  ;;  %v1667_v4 = vmul.f32 %v5965_v27, %v1666_v43  ;;  %vm1699_vm13 = vweird.f32 %v5991_v25  ;;  %vm1688_vm14 = vweird.f32 %v5984_v7 }
 0x32b   :  { %v1380_v34 = vmul.f32 %v5996_v52, %v5996_v52  ;;  %v1694_v50 = vmul.f32 %v5991_v25, %v1693_v37  ;;  %v1826_v40 = vmax.f32 %v1801_v26, 0.0  ;;  %v2139_v37 = vsel %vm121_vm0, %v2106_v14, 0.0  ;;  %vm1700_vm3 = vmor %vm1698_vm2, %vm1699_vm13 }
 0x32c   :  { %v1675_v15 = vmul.f32 0.5, %v1674_v17  ;;  %v1450_v26 = vsub.f32 %v5574_v19, %v5904_v1  ;;  %vm1708_vm9 = vweird.f32 %v6014_v36 }
 0x32d   :  { %v1405_v39 = vsub.f32 %v1355_v31, %v1380_v34  ;;  %v1825_v34 = vmax.f32 %v1800_v23, 0.0  ;;  %v1695_v44 = vmul.f32 0.5, %v1694_v50 }
 0x32e   :  { %v1676_v5 = vsub.f32 1.5, %v1675_v15  ;;  %v4283_v15 = vmov 32.0  }
 0x32f   :  { %v6012_v46 = vpop.eup %4160  ;;  %v1430_v33 = vmax.f32 %v1405_v39, 0.0  ;;  %4162 = vrcp.f32 %v4283_v15  ;;  %v1842_v28 = vpack.c.bf16 %v1826_v40, %v1825_v34 }
 0x330   :  { %v1677_v42 = vmul.f32 %v4157_v41, %v1676_v5  ;;  %v1683_v11 = vmul.f32 %v6012_v46, %v5984_v7  ;;  %v1206_v9 = vpop.xlane.xlu2 %1205  ;;  %vm1689_vm12 = vweird.f32 %v6012_v46 }
 0x331   :  { %v6029_v55 = vmul.f32 %v1206_v9, %v4548_v30  ;;  %v6034_v43 = vadd.f32 1e-05, %v1430_v33  ;;  %vm1690_vm15 = vmor %vm1688_vm14, %vm1689_vm12 }
 0x332   :  { %v1681_v17 = vsel %vm6024_vm10, %v4157_v41, %v1677_v42  ;;  %v1684_v12 = vmul.f32 %v6012_v46, %v1683_v11  ;;  %v1331_v31 = vpop.xlane.xlu0 %1330  ;;  %v1671_v41 = vsel %vm1670_vm11, %v5965_v27, %v1667_v4  ;;  %v1696_v4 = vsub.f32 1.5, %v1695_v44 }
 0x333   :  { %v1381_v5 = vmul.f32 %v6029_v55, %v6029_v55  ;;  %v1356_v39 = vmul.f32 %v1331_v31, %v4548_v30  ;;  %v1751_v42 = vmul.f32 %v1681_v17, %v1451_v45  ;;  %4164 = vrsqrt.f32 %v6034_v43 }
 0x334   :  { %v1685_v11 = vmul.f32 0.5, %v1684_v12  ;;  %4166 = vrsqrt.f32 %v6014_v36  ;;  %v1750_v23 = vmul.f32 %v1671_v41, %v1450_v26  ;;  %v1697_v12 = vmul.f32 %v5991_v25, %v1696_v4 }
 0x335   :  { %3971 = vmatmul.msk.bf16.gmra.mxu2 %vm236_vm1, %v1842_v28  ;;  %v4163_v19 = vpop.eup %4162  ;;  %v1406_v1 = vsub.f32 %v1356_v39, %v1381_v5  ;;  %v1777_v14 = vmul.f32 %v5944_v13, %v1751_v42  ;;  %v1452_v5 = vsub.f32 %v5548_v24, %v5939_v47  ;;  %v1453_v44 = vsub.f32 %v5551_v59, %v5897_v22 }
 0x336   :  { %v1686_v27 = vsub.f32 1.5, %v1685_v11  ;;  %v1776_v30 = vmul.f32 %v5944_v13, %v1750_v23  ;;  %v2071_v9 = vmul.f32 32.0, %v4163_v19  ;;  %v1701_v42 = vsel %vm1700_vm3, %v5991_v25, %v1697_v12 }
 0x337   :  { %2140 = vadd.xlane.f32.xlu2 %v2139_v37  ;;  %v1431_v40 = vmax.f32 %v1406_v1, 0.0  ;;  %v1803_v17 = vadd.f32 %v6006_v8, %v1777_v14  ;;  %vm2075_vm4 = vweird.f32 %v4163_v19  ;;  %vm1718_vm7 = vweird.f32 %v6034_v43 }
 0x338   :  { %v1687_v50 = vmul.f32 %v6012_v46, %v1686_v27  ;;  %v1802_v45 = vadd.f32 %v6006_v8, %v1776_v30  ;;  %v2072_v34 = vsub.f32 1.0, %v2071_v9 }
 0x339   :  { %v6051_v33 = vpop.eup %4164  ;;  %v6067_v37 = vadd.f32 1e-05, %v1431_v40  ;;  %v1828_v41 = vmax.f32 %v1803_v17, 0.0 }
 0x33a   :  { %v6054_v2 = vpop.eup %4166  ;;  %v1713_v31 = vmul.f32 %v6051_v33, %v6034_v43  ;;  %v1691_v26 = vsel %vm1690_vm15, %v6012_v46, %v1687_v50  ;;  %v1827_v7 = vmax.f32 %v1802_v45, 0.0  ;;  %v2073_v28 = vmul.f32 %v4163_v19, %v2072_v34 }
 0x33b   :  { %v1703_v15 = vmul.f32 %v6054_v2, %v6014_v36  ;;  %v1752_v23 = vmul.f32 %v1691_v26, %v1452_v5  ;;  %4168 = vrsqrt.f32 %v6067_v37  ;;  %v1753_v46 = vmul.f32 %v1701_v42, %v1453_v44 }
 0x33c   :  { %v1714_v39 = vmul.f32 %v6051_v33, %v1713_v31  ;;  %v1843_v58 = vpack.c.bf16 %v1828_v41, %v1827_v7  ;;  %v2074_v24 = vadd.f32 %v4163_v19, %v2073_v28  ;;  %vm1719_vm5 = vweird.f32 %v6051_v33 }
 0x33d   :  { %v1704_v11 = vmul.f32 %v6054_v2, %v1703_v15  ;;  %v1778_v47 = vmul.f32 %v5944_v13, %v1752_v23  ;;  %v1779_v14 = vmul.f32 %v5944_v13, %v1753_v46  ;;  %vm1709_vm6 = vweird.f32 %v6054_v2  ;;  %vm1720_vm8 = vmor %vm1718_vm7, %vm1719_vm5 }
 0x33e   :  { %v1715_v1 = vmul.f32 0.5, %v1714_v39  ;;  %v6087_v9 = vsel %vm2075_vm4, %v4163_v19, %v2074_v24  ;;  %vm1710_vm10 = vmor %vm1708_vm9, %vm1709_vm6  ;;  %v1455_v43 = vsub.f32 %v5601_v63, %v5996_v52  ;;  %v1454_v46 = vsub.f32 %v5565_v57, %v5950_v16 }
 0x33f   :  { %v1705_v27 = vmul.f32 0.5, %v1704_v11  ;;  %v1804_v40 = vadd.f32 %v6006_v8, %v1778_v47  ;;  %v1805_v15 = vadd.f32 %v6006_v8, %v1779_v14  ;;  %vm1728_vm12 = vweird.f32 %v6067_v37 }
 0x340   :  { %v1716_v4 = vsub.f32 1.5, %v1715_v1 }
 0x341   :  { %v6081_v25 = vpop.eup %4168  ;;  %v1706_v59 = vsub.f32 1.5, %v1705_v27  ;;  %v1829_v42 = vmax.f32 %v1804_v40, 0.0  ;;  %v1830_v7 = vmax.f32 %v1805_v15, 0.0 }
 0x342   :  { %v1723_v50 = vmul.f32 %v6081_v25, %v6067_v37  ;;  %v1717_v45 = vmul.f32 %v6051_v33, %v1716_v4  ;;  %vm1729_vm11 = vweird.f32 %v6081_v25  ;;  %v1456_v37 = vsub.f32 %v5671_v6, %v6029_v55 }
 0x343   :  { %v1707_v34 = vmul.f32 %v6054_v2, %v1706_v59  ;;  %v1844_v36 = vpack.c.bf16 %v1830_v7, %v1829_v42  ;;  %vm1730_vm13 = vmor %vm1728_vm12, %vm1729_vm11 }
 0x344   :  { %v1724_v11 = vmul.f32 %v6081_v25, %v1723_v50  ;;  %v1721_v28 = vsel %vm1720_vm8, %v6051_v33, %v1717_v45 }
 0x345   :  { %3972 = vmatmul.msk.bf16.gmra.mxu2 %vm236_vm1, %v1843_v58  ;;  %v1711_v1 = vsel %vm1710_vm10, %v6054_v2, %v1707_v34  ;;  %v1755_v24 = vmul.f32 %v1721_v28, %v1455_v43 }
 0x346   :  { %v1725_v33 = vmul.f32 0.5, %v1724_v11  ;;  %v1754_v57 = vmul.f32 %v1711_v1, %v1454_v46 }
 0x347   :  { %v1944_v30 = vpop.f32.mrf.mxu2  ;;  %v1781_v59 = vmul.f32 %v5944_v13, %v1755_v24 }
 0x348   :  { %v6085_v22 = vadd.f32 %v5764_v3, %v1944_v30  ;;  %v1726_v40 = vsub.f32 1.5, %v1725_v33  ;;  %v4041_v33 = vld [vmem:[%s7546_s1 + $0x58] sm:$0xff] }
 0x349   :  { %v1807_v45 = vadd.f32 %v6006_v8, %v1781_v59  ;;  %2780 = vmatpush.bf16.msrb.mxu3 %v4041_v33 }
 0x34a   :  { %v2013_v17 = vsel %vm121_vm0, %v6085_v22, 0.0  ;;  %v2108_v12 = vmul.f32 %v6085_v22, %v6085_v22  ;;  %v1727_v34 = vmul.f32 %v6081_v25, %v1726_v40 }
 0x34b   :  { %2014 = vadd.xlane.f32.xlu1 %v2013_v17  ;;  %v1832_v46 = vmax.f32 %v1807_v45, 0.0 }
 0x34c   :  { %v2145_v26 = vsel %vm121_vm0, %v2108_v12, 0.0  ;;  %v1780_v12 = vmul.f32 %v5944_v13, %v1754_v57  ;;  %v1731_v1 = vsel %vm1730_vm13, %v6081_v25, %v1727_v34  ;;  %v4040_v25 = vld [vmem:[%s7546_s1 + $0x50] sm:$0xff] }
 0x34d   :  { %2146 = vadd.xlane.f32.xlu0 %v2145_v26  ;;  %v1756_v57 = vmul.f32 %v1731_v1, %v1456_v37  ;;  %2781 = vmatpush.bf16.msrb.mxu3 %v4040_v25 }
 0x34e   :  { %v1806_v11 = vadd.f32 %v6006_v8, %v1780_v12 }
 0x34f   :  { %v1997_v31 = vpop.xlane.xlu1 %1996  ;;  %v1946_v44 = vpop.f32.mrf.mxu2 }
 0x350   :  { %v6100_v19 = vmul.f32 %v6087_v9, %v1997_v31  ;;  %v6117_v58 = vadd.f32 %v5764_v3, %v1946_v44 }
 0x351   :  { %v2129_v41 = vpop.xlane.xlu0 %2128 }
 0x352   :  { %v2227_v5 = vmul.f32 %v6100_v19, %v6100_v19  ;;  %v2202_v39 = vmul.f32 %v2129_v41, %v6087_v9  ;;  %v2016_v47 = vsel %vm121_vm0, %v6117_v58, 0.0  ;;  %v2109_v14 = vmul.f32 %v6117_v58, %v6117_v58 }
 0x353   :  { %2017 = vadd.xlane.f32.xlu2 %v2016_v47  ;;  %v1831_v47 = vmax.f32 %v1806_v11, 0.0 }
 0x354   :  { %v2252_v23 = vsub.f32 %v2202_v39, %v2227_v5  ;;  %v2148_v16 = vsel %vm121_vm0, %v2109_v14, 0.0 }
 0x355   :  { %3973 = vmatmul.msk.bf16.gmra.mxu2 %vm236_vm1, %v1844_v36  ;;  %2149 = vadd.xlane.f32.xlu1 %v2148_v16 }
 0x356   :  { %v2277_v27 = vmax.f32 %v2252_v23, 0.0 }
 0x357   :  { %v2000_v4 = vpop.xlane.xlu2 %1999  ;;  %v1949_v17 = vpop.f32.mrf.mxu2 }
 0x358   :  { %v6126_v63 = vadd.f32 1e-05, %v2277_v27  ;;  %v6129_v52 = vmul.f32 %v6087_v9, %v2000_v4  ;;  %v6140_v31 = vadd.f32 %v5764_v3, %v1949_v17 }
 0x359   :  { %v2132_v2 = vpop.xlane.xlu1 %2131 }
 0x35a   :  { %4170 = vrsqrt.f32 %v6126_v63  ;;  %v2228_v30 = vmul.f32 %v6129_v52, %v6129_v52  ;;  %v2203_v50 = vmul.f32 %v2132_v2, %v6087_v9  ;;  %v2019_v41 = vsel %vm121_vm0, %v6140_v31, 0.0 }
 0x35b   :  { %2020 = vadd.xlane.f32.xlu2 %v2019_v41  ;;  %vm2358_vm15 = vweird.f32 %v6126_v63 }
 0x35c   :  { %v2253_v15 = vsub.f32 %v2203_v50, %v2228_v30  ;;  %v1845_v30 = vpack.c.bf16 %v1832_v46, %v1831_v47  ;;  %v957_v47 = vmax.f32 %v4416_v49, 0.0 }
 0x35e   :  { %v2278_v26 = vmax.f32 %v2253_v15, 0.0 }
 0x35f   :  { %v2003_v5 = vpop.xlane.xlu2 %2002  ;;  %v1951_v36 = vpop.f32.mrf.mxu2 }
 0x360   :  { %v4171_v39 = vpop.eup %4170  ;;  %v6148_v42 = vmul.f32 %v6087_v9, %v2003_v5  ;;  %v6153_v28 = vadd.f32 1e-05, %v2278_v26  ;;  %v6166_v4 = vadd.f32 %v5764_v3, %v1951_v36  ;;  %v1782_v26 = vmul.f32 %v5944_v13, %v1756_v57  ;;  %v6203_v36 = vld [vmem:[%s7548_s2 + $0x7] ss:$0 sm:$0xff] }
 0x361   :  { %v2353_v7 = vmul.f32 %v4171_v39, %v6126_v63  ;;  %v2135_v44 = vpop.xlane.xlu1 %2134  ;;  %vm2359_vm14 = vweird.f32 %v4171_v39  ;;  %v2302_v63 = vsub.f32 %v5772_v61, %v6100_v19 }
 0x362   :  { %v2229_v23 = vmul.f32 %v6148_v42, %v6148_v42  ;;  %v2204_v43 = vmul.f32 %v2135_v44, %v6087_v9  ;;  %4172 = vrsqrt.f32 %v6153_v28  ;;  %v2022_v6 = vsel %vm121_vm0, %v6166_v4, 0.0  ;;  %vm2360_vm2 = vmor %vm2358_vm15, %vm2359_vm14 }
 0x363   :  { %v2354_v27 = vmul.f32 %v4171_v39, %v2353_v7  ;;  %v2111_v55 = vmul.f32 %v6166_v4, %v6166_v4  ;;  %2023 = vadd.xlane.f32.xlu0 %v2022_v6  ;;  %v1808_v13 = vadd.f32 %v6006_v8, %v1782_v26  ;;  %vm2368_vm4 = vweird.f32 %v6153_v28  ;;  %v6216_v6 = vld [vmem:[%s7548_s2 + $0x8] ss:$0 sm:$0xff] }
 0x364   :  { %v2254_v24 = vsub.f32 %v2204_v43, %v2229_v23 }
 0x365   :  { %v2355_v14 = vmul.f32 0.5, %v2354_v27  ;;  %v2154_v15 = vsel %vm121_vm0, %v2111_v55, 0.0  ;;  %3974 = vmatmul.msk.bf16.gmra.mxu2 %vm236_vm1, %v1845_v30  ;;  %v1833_v57 = vmax.f32 %v1808_v13, 0.0 }
 0x366   :  { %v2279_v16 = vmax.f32 %v2254_v24, 0.0  ;;  %2155 = vadd.xlane.f32.xlu2 %v2154_v15 }
 0x367   :  { %v2356_v2 = vsub.f32 1.5, %v2355_v14  ;;  %v2006_v59 = vpop.xlane.xlu0 %2005  ;;  %v1954_v44 = vpop.f32.mrf.mxu2 }
 0x368   :  { %v6175_v40 = vadd.f32 1e-05, %v2279_v16  ;;  %v6178_v50 = vmul.f32 %v6087_v9, %v2006_v59  ;;  %v4173_v17 = vpop.eup %4172  ;;  %v6193_v23 = vadd.f32 %v5764_v3, %v1954_v44  ;;  %v2303_v16 = vsub.f32 %v5787_v20, %v6129_v52 }
 0x369   :  { %v2357_v12 = vmul.f32 %v4171_v39, %v2356_v2  ;;  %v2138_v45 = vpop.xlane.xlu2 %2137  ;;  %v2363_v34 = vmul.f32 %v4173_v17, %v6153_v28  ;;  %vm2369_vm3 = vweird.f32 %v4173_v17  ;;  %v1846_v20 = vpack.c.bf16 %v1833_v57, %v1833_v57 }
 0x36a   :  { %4174 = vrsqrt.f32 %v6175_v40  ;;  %v2230_v41 = vmul.f32 %v6178_v50, %v6178_v50  ;;  %v2205_v5 = vmul.f32 %v2138_v45, %v6087_v9  ;;  %v2025_v37 = vsel %vm121_vm0, %v6193_v23, 0.0  ;;  %vm2370_vm5 = vmor %vm2368_vm4, %vm2369_vm3 }
 0x36b   :  { %v2361_v11 = vsel %vm2360_vm2, %v4171_v39, %v2357_v12  ;;  %v2364_v7 = vmul.f32 %v4173_v17, %v2363_v34  ;;  %v2112_v39 = vmul.f32 %v6193_v23, %v6193_v23  ;;  %2026 = vadd.xlane.f32.xlu0 %v2025_v37  ;;  %vm2378_vm7 = vweird.f32 %v6175_v40 }
 0x36c   :  { %v2255_v43 = vsub.f32 %v2205_v5, %v2230_v41  ;;  %v2602_v1 = vmul.f32 %v2361_v11, %v2302_v63 }
 0x36d   :  { %v2365_v46 = vmul.f32 0.5, %v2364_v7  ;;  %v2157_v33 = vsel %vm121_vm0, %v2112_v39, 0.0 }
 0x36e   :  { %v2280_v27 = vmax.f32 %v2255_v43, 0.0  ;;  %2158 = vadd.xlane.f32.xlu2 %v2157_v33  ;;  %3573 = vrot.lane.b32.xlu1 %v957_v47, %s4282_s24  ;;  %v2628_v2 = vmul.f32 %v6203_v36, %v2602_v1  ;;  %v2304_v1 = vsub.f32 %v5817_v29, %v6148_v42  ;;  %v6244_v47 = vld [vmem:[%s7548_s2 + $0x6] ss:$0 sm:$0xff] }
 0x36f   :  { %v2366_v19 = vsub.f32 1.5, %v2365_v46  ;;  %v1956_v55 = vpop.f32.mrf.mxu2 }
 0x370   :  { %v4175_v61 = vpop.eup %4174  ;;  %v2330_v8 = vadd.f32 1e-05, %v2280_v27  ;;  %v6219_v59 = vadd.f32 %v5764_v3, %v1956_v55  ;;  %v2654_v45 = vadd.f32 %v6216_v6, %v2628_v2 }
 0x371   :  { %v2373_v24 = vmul.f32 %v4175_v61, %v6175_v40  ;;  %v2367_v14 = vmul.f32 %v4173_v17, %v2366_v19  ;;  %vm2379_vm6 = vweird.f32 %v4175_v61 }
 0x372   :  { %4176 = vrsqrt.f32 %v2330_v8  ;;  %v2113_v12 = vmul.f32 %v6219_v59, %v6219_v59  ;;  %v2679_v11 = vmax.f32 %v2654_v45, 0.0  ;;  %vm2380_vm8 = vmor %vm2378_vm7, %vm2379_vm6  ;;  %vm2388_vm9 = vweird.f32 %v2330_v8 }
 0x373   :  { %v2374_v25 = vmul.f32 %v4175_v61, %v2373_v24  ;;  %v2371_v49 = vsel %vm2370_vm5, %v4173_v17, %v2367_v14 }
 0x374   :  { %v2603_v28 = vmul.f32 %v2371_v49, %v2303_v16  ;;  %v2160_v17 = vsel %vm121_vm0, %v2113_v12, 0.0 }
 0x375   :  { %v2375_v30 = vmul.f32 0.5, %v2374_v25  ;;  %3975 = vmatmul.msk.bf16.gmra.mxu2 %vm236_vm1, %v1846_v20  ;;  %2161 = vadd.xlane.f32.xlu0 %v2160_v17 }
 0x376   :  { %v2629_v15 = vmul.f32 %v6203_v36, %v2603_v28 }
 0x377   :  { %v2376_v52 = vsub.f32 1.5, %v2375_v30  ;;  %v1959_v63 = vpop.f32.mrf.mxu2  ;;  %v2009_v29 = vpop.xlane.xlu0 %2008 }
 0x378   :  { %v4177_v34 = vpop.eup %4176  ;;  %v2655_v41 = vadd.f32 %v6216_v6, %v2629_v15  ;;  %v6230_v46 = vadd.f32 %v5764_v3, %v1959_v63  ;;  %v2305_v3 = vsub.f32 %v5830_v56, %v6178_v50  ;;  %v958_v15 = vmax.f32 %v4465_v21, 0.0 }
 0x379   :  { %v2377_v26 = vmul.f32 %v4175_v61, %v2376_v52  ;;  %v2383_v5 = vmul.f32 %v4177_v34, %v2330_v8  ;;  %vm2389_vm1 = vweird.f32 %v4177_v34  ;;  %v2081_v21 = vmul.f32 %v6087_v9, %v2009_v29 }
 0x37a   :  { %v2680_v7 = vmax.f32 %v2655_v41, 0.0  ;;  %v2114_v37 = vmul.f32 %v6230_v46, %v6230_v46  ;;  %vm2390_vm10 = vmor %vm2388_vm9, %vm2389_vm1  ;;  %v6266_v41 = vpop.permute.xlu2 %3571 }
 0x37b   :  { %v2384_v44 = vmul.f32 %v4177_v34, %v2383_v5  ;;  %v2381_v43 = vsel %vm2380_vm8, %v4175_v61, %v2377_v26  ;;  %v2028_v5 = vsel %vm121_vm0, %v6219_v59, 0.0  ;;  %v2231_v63 = vmul.f32 %v2081_v21, %v2081_v21 }
 0x37c   :  { %v2704_v13 = vpack.c.bf16 %v2680_v7, %v2679_v11  ;;  %v2604_v39 = vmul.f32 %v2381_v43, %v2304_v1  ;;  %v2163_v19 = vsel %vm121_vm0, %v2114_v37, 0.0  ;;  %v2031_v1 = vsel %vm121_vm0, %v6230_v46, 0.0 }
 0x37d   :  { %v2385_v27 = vmul.f32 0.5, %v2384_v44  ;;  %2164 = vadd.xlane.f32.xlu0 %v2163_v19 }
 0x37e   :  { %3984 = vmatmul.msk.bf16.vlgmr.msrb.gmra.mxu3 %vm121_vm0, %v2704_v13  ;;  %v2630_v33 = vmul.f32 %v6203_v36, %v2604_v39 }
 0x37f   :  { %v2386_v40 = vsub.f32 1.5, %v2385_v27  ;;  %v1961_v42 = vpop.f32.mrf.mxu2  ;;  %v2012_v16 = vpop.xlane.xlu1 %2011 }
 0x380   :  { %v6247_v14 = vadd.f32 %v6244_v47, %v1961_v42  ;;  %v2656_v50 = vadd.f32 %v6216_v6, %v2630_v33  ;;  %v6255_v2 = vmul.f32 %v6087_v9, %v2012_v16 }
 0x381   :  { %v2387_v24 = vmul.f32 %v4177_v34, %v2386_v40  ;;  %v2144_v49 = vpop.xlane.xlu0 %2143 }
 0x382   :  { %v2034_v8 = vsel %vm121_vm0, %v6247_v14, 0.0  ;;  %v2681_v55 = vmax.f32 %v2656_v50, 0.0  ;;  %v2232_v20 = vmul.f32 %v6255_v2, %v6255_v2  ;;  %v2207_v52 = vmul.f32 %v2144_v49, %v6087_v9 }
 0x383   :  { %v2391_v61 = vsel %vm2390_vm10, %v4177_v34, %v2387_v24  ;;  %2035 = vadd.xlane.f32.xlu2 %v2034_v8  ;;  %v2110_v34 = vmul.f32 %v6140_v31, %v6140_v31 }
 0x384   :  { %v2605_v57 = vmul.f32 %v2391_v61, %v2305_v3  ;;  %v2257_v12 = vsub.f32 %v2207_v52, %v2232_v20  ;;  %v2115_v3 = vmul.f32 %v6247_v14, %v6247_v14  ;;  %v2307_v52 = vsub.f32 %v5880_v0, %v6255_v2 }
 0x385   :  { %v2151_v17 = vsel %vm121_vm0, %v2110_v34, 0.0  ;;  %v2306_v0 = vsub.f32 %v5866_v10, %v2081_v21 }
 0x386   :  { %v2631_v56 = vmul.f32 %v6203_v36, %v2605_v57  ;;  %v2282_v45 = vmax.f32 %v2257_v12, 0.0  ;;  %v2166_v42 = vsel %vm121_vm0, %v2115_v3, 0.0 }
 0x388   :  { %v2657_v25 = vadd.f32 %v6216_v6, %v2631_v56  ;;  %v2332_v26 = vadd.f32 1e-05, %v2282_v45 }
 0x38a   :  { %v2682_v28 = vmax.f32 %v2657_v25, 0.0  ;;  %4178 = vrsqrt.f32 %v2332_v26  ;;  %vm2408_vm12 = vweird.f32 %v2332_v26 }
 0x38c   :  { %v2705_v30 = vpack.c.bf16 %v2682_v28, %v2681_v55 }
 0x38e   :  { %3985 = vmatmul.msk.bf16.gmra.mxu3 %vm121_vm0, %v2705_v30 }
 0x390   :  { %v4179_v11 = vpop.eup %4178 }
 0x391   :  { %3575 = vrot.lane.b32.xlu0 %v958_v15, %s4282_s24  ;;  %v2403_v7 = vmul.f32 %v4179_v11, %v2332_v26  ;;  %vm2409_vm11 = vweird.f32 %v4179_v11 }
 0x392   :  { %vm2410_vm13 = vmor %vm2408_vm12, %vm2409_vm11 }
 0x393   :  { %v2404_v13 = vmul.f32 %v4179_v11, %v2403_v7 }
 0x395   :  { %v2405_v24 = vmul.f32 0.5, %v2404_v13 }
 0x397   :  { %v2406_v29 = vsub.f32 1.5, %v2405_v24 }
 0x398   :  { %2152 = vadd.xlane.f32.xlu1 %v2151_v17 }
 0x399   :  { %v2407_v16 = vmul.f32 %v4179_v11, %v2406_v29 }
 0x39b   :  { %v2411_v55 = vsel %vm2410_vm13, %v4179_v11, %v2407_v16 }
 0x39c   :  { %v2607_v26 = vmul.f32 %v2411_v55, %v2307_v52 }
 0x39e   :  { %v2633_v7 = vmul.f32 %v6203_v36, %v2607_v26 }
 0x3a0   :  { %2029 = vadd.xlane.f32.xlu1 %v2028_v5  ;;  %v2659_v24 = vadd.f32 %v6216_v6, %v2633_v7 }
 0x3a2   :  { %v2684_v16 = vmax.f32 %v2659_v24, 0.0 }
 0x3a8   :  { %v1964_v27 = vpop.f32.mrf.mxu2  ;;  %2032 = vadd.xlane.f32.xlu1 %v2031_v1 }
 0x3a9   :  { %v6275_v37 = vadd.f32 %v6244_v47, %v1964_v27 }
 0x3aa   :  { %v2141_v44 = vpop.xlane.xlu2 %2140 }
 0x3ab   :  { %v2206_v43 = vmul.f32 %v2141_v44, %v6087_v9  ;;  %v2037_v19 = vsel %vm121_vm0, %v6275_v37, 0.0  ;;  %v2116_v56 = vmul.f32 %v6275_v37, %v6275_v37 }
 0x3ac   :  { %2038 = vadd.xlane.f32.xlu2 %v2037_v19 }
 0x3ad   :  { %v2256_v40 = vsub.f32 %v2206_v43, %v2231_v63  ;;  %v2169_v30 = vsel %vm121_vm0, %v2116_v56, 0.0 }
 0x3af   :  { %v2281_v39 = vmax.f32 %v2256_v40, 0.0 }
 0x3b0   :  { %v1966_v33 = vpop.f32.mrf.mxu2  ;;  %2167 = vadd.xlane.f32.xlu1 %v2166_v42 }
 0x3b1   :  { %v2331_v61 = vadd.f32 1e-05, %v2281_v39  ;;  %v6283_v57 = vadd.f32 %v6244_v47, %v1966_v33 }
 0x3b3   :  { %4180 = vrsqrt.f32 %v2331_v61  ;;  %v2117_v8 = vmul.f32 %v6283_v57, %v6283_v57  ;;  %v2040_v45 = vsel %vm121_vm0, %v6283_v57, 0.0  ;;  %vm2398_vm15 = vweird.f32 %v2331_v61 }
 0x3b5   :  { %v2172_v25 = vsel %vm121_vm0, %v2117_v8, 0.0 }
 0x3b6   :  { %2173 = vadd.xlane.f32.xlu2 %v2172_v25 }
 0x3b8   :  { %v1969_v20 = vpop.f32.mrf.mxu2  ;;  %2170 = vadd.xlane.f32.xlu1 %v2169_v30 }
 0x3b9   :  { %v4181_v50 = vpop.eup %4180  ;;  %v6294_v12 = vadd.f32 %v6244_v47, %v1969_v20 }
 0x3ba   :  { %v2393_v49 = vmul.f32 %v4181_v50, %v2331_v61  ;;  %vm2399_vm14 = vweird.f32 %v4181_v50 }
 0x3bb   :  { %v2118_v34 = vmul.f32 %v6294_v12, %v6294_v12  ;;  %2041 = vadd.xlane.f32.xlu0 %v2040_v45  ;;  %vm2400_vm2 = vmor %vm2398_vm15, %vm2399_vm14  ;;  %v2043_v10 = vsel %vm121_vm0, %v6294_v12, 0.0 }
 0x3bc   :  { %v2394_v28 = vmul.f32 %v4181_v50, %v2393_v49 }
 0x3bd   :  { %v2175_v5 = vsel %vm121_vm0, %v2118_v34, 0.0 }
 0x3be   :  { %v2395_v15 = vmul.f32 0.5, %v2394_v28  ;;  %2176 = vadd.xlane.f32.xlu2 %v2175_v5  ;;  %v2015_v2 = vpop.xlane.xlu1 %2014 }
 0x3bf   :  { %v6304_v63 = vmul.f32 %v6087_v9, %v2015_v2 }
 0x3c0   :  { %v2396_v17 = vsub.f32 1.5, %v2395_v15  ;;  %v1971_v43 = vpop.f32.mrf.mxu2  ;;  %v2147_v1 = vpop.xlane.xlu0 %2146 }
 0x3c1   :  { %v6307_v13 = vadd.f32 %v6244_v47, %v1971_v43  ;;  %v2233_v40 = vmul.f32 %v6304_v63, %v6304_v63  ;;  %v2208_v39 = vmul.f32 %v2147_v1, %v6087_v9 }
 0x3c2   :  { %v2397_v11 = vmul.f32 %v4181_v50, %v2396_v17 }
 0x3c3   :  { %v2046_v21 = vsel %vm121_vm0, %v6307_v13, 0.0  ;;  %v2258_v3 = vsub.f32 %v2208_v39, %v2233_v40  ;;  %2044 = vadd.xlane.f32.xlu0 %v2043_v10  ;;  %v2119_v33 = vmul.f32 %v6307_v13, %v6307_v13 }
 0x3c4   :  { %v2401_v44 = vsel %vm2400_vm2, %v4181_v50, %v2397_v11  ;;  %2047 = vadd.xlane.f32.xlu1 %v2046_v21 }
 0x3c5   :  { %v2606_v27 = vmul.f32 %v2401_v44, %v2306_v0  ;;  %v2283_v29 = vmax.f32 %v2258_v3, 0.0  ;;  %v2178_v52 = vsel %vm121_vm0, %v2119_v33, 0.0 }
 0x3c6   :  { %v2018_v42 = vpop.xlane.xlu2 %2017 }
 0x3c7   :  { %v2632_v19 = vmul.f32 %v6203_v36, %v2606_v27  ;;  %v2333_v56 = vadd.f32 1e-05, %v2283_v29  ;;  %v6322_v50 = vmul.f32 %v6087_v9, %v2018_v42 }
 0x3c8   :  { %v1974_v25 = vpop.f32.mrf.mxu2  ;;  %v2150_v49 = vpop.xlane.xlu1 %2149 }
 0x3c9   :  { %v2658_v61 = vadd.f32 %v6216_v6, %v2632_v19  ;;  %v6325_v55 = vadd.f32 %v6244_v47, %v1974_v25  ;;  %4182 = vrsqrt.f32 %v2333_v56  ;;  %v2234_v30 = vmul.f32 %v6322_v50, %v6322_v50 }
 0x3ca   :  { %v2209_v20 = vmul.f32 %v2150_v49, %v6087_v9  ;;  %vm2418_vm4 = vweird.f32 %v2333_v56 }
 0x3cb   :  { %v2683_v8 = vmax.f32 %v2658_v61, 0.0  ;;  %v2049_v15 = vsel %vm121_vm0, %v6325_v55, 0.0  ;;  %2179 = vadd.xlane.f32.xlu0 %v2178_v52  ;;  %v2120_v26 = vmul.f32 %v6325_v55, %v6325_v55  ;;  %v2309_v52 = vsub.f32 %v6117_v58, %v6322_v50 }
 0x3cc   :  { %2050 = vadd.xlane.f32.xlu1 %v2049_v15  ;;  %v2259_v45 = vsub.f32 %v2209_v20, %v2234_v30 }
 0x3cd   :  { %v2706_v28 = vpack.c.bf16 %v2684_v16, %v2683_v8  ;;  %v2181_v44 = vsel %vm121_vm0, %v2120_v26, 0.0  ;;  %v2308_v8 = vsub.f32 %v6085_v22, %v6304_v63 }
 0x3ce   :  { %v2284_v34 = vmax.f32 %v2259_v45, 0.0 }
 0x3cf   :  { %3986 = vmatmul.msk.bf16.gmra.mxu3 %vm121_vm0, %v2706_v28  ;;  %v4183_v17 = vpop.eup %4182 }
 0x3d0   :  { %v1976_v5 = vpop.f32.mrf.mxu2  ;;  %v2413_v11 = vmul.f32 %v4183_v17, %v2333_v56  ;;  %v2334_v0 = vadd.f32 1e-05, %v2284_v34  ;;  %vm2419_vm3 = vweird.f32 %v4183_v17  ;;  %v2021_v34 = vpop.xlane.xlu2 %2020 }
 0x3d1   :  { %v6337_v2 = vadd.f32 %v6244_v47, %v1976_v5  ;;  %vm2420_vm5 = vmor %vm2418_vm4, %vm2419_vm3 }
 0x3d2   :  { %v2414_v7 = vmul.f32 %v4183_v17, %v2413_v11  ;;  %4184 = vrsqrt.f32 %v2334_v0  ;;  %vm2428_vm7 = vweird.f32 %v2334_v0 }
 0x3d3   :  { %v2052_v43 = vsel %vm121_vm0, %v6337_v2, 0.0  ;;  %2182 = vadd.xlane.f32.xlu0 %v2181_v44  ;;  %v2121_v1 = vmul.f32 %v6337_v2, %v6337_v2 }
 0x3d4   :  { %2053 = vadd.xlane.f32.xlu2 %v2052_v43  ;;  %v2415_v27 = vmul.f32 0.5, %v2414_v7 }
 0x3d5   :  { %v2184_v40 = vsel %vm121_vm0, %v2121_v1, 0.0 }
 0x3d6   :  { %v2416_v39 = vsub.f32 1.5, %v2415_v27  ;;  %2185 = vadd.xlane.f32.xlu1 %v2184_v40  ;;  %v2024_v11 = vpop.xlane.xlu0 %2023 }
 0x3d7   :  { %v6377_v40 = vmul.f32 %v6087_v9, %v2024_v11  ;;  %v960_v11 = vmax.f32 %v4478_v32, 0.0 }
 0x3d8   :  { %v1979_v10 = vpop.f32.mrf.mxu2  ;;  %v4185_v21 = vpop.eup %4184  ;;  %v2417_v19 = vmul.f32 %v4183_v17, %v2416_v39 }
 0x3d9   :  { %v6346_v24 = vadd.f32 %v6244_v47, %v1979_v10  ;;  %v2423_v3 = vmul.f32 %v4185_v21, %v2334_v0  ;;  %vm2429_vm6 = vweird.f32 %v4185_v21  ;;  %v2156_v39 = vpop.xlane.xlu2 %2155 }
 0x3da   :  { %v2421_v42 = vsel %vm2420_vm5, %v4183_v17, %v2417_v19  ;;  %vm2430_vm8 = vmor %vm2428_vm7, %vm2429_vm6  ;;  %v2236_v19 = vmul.f32 %v6377_v40, %v6377_v40 }
 0x3db   :  { %v2055_v61 = vsel %vm121_vm0, %v6346_v24, 0.0  ;;  %v2122_v29 = vmul.f32 %v6346_v24, %v6346_v24  ;;  %v2424_v33 = vmul.f32 %v4185_v21, %v2423_v3  ;;  %v2608_v49 = vmul.f32 %v2421_v42, %v2308_v8 }
 0x3dc   :  { %2056 = vadd.xlane.f32.xlu2 %v2055_v61  ;;  %v2211_v3 = vmul.f32 %v2156_v39, %v6087_v9 }
 0x3dd   :  { %v2187_v16 = vsel %vm121_vm0, %v2122_v29, 0.0  ;;  %v2425_v25 = vmul.f32 0.5, %v2424_v33  ;;  %v2634_v15 = vmul.f32 %v6203_v36, %v2608_v49 }
 0x3de   :  { %2188 = vadd.xlane.f32.xlu1 %v2187_v16  ;;  %v2261_v8 = vsub.f32 %v2211_v3, %v2236_v19  ;;  %v2027_v49 = vpop.xlane.xlu0 %2026  ;;  %v7618_v19 = vld [vmem:[#allocation2_spill] sm:$0xff] }
 0x3df   :  { %v2426_v56 = vsub.f32 1.5, %v2425_v25  ;;  %v2660_v58 = vadd.f32 %v6216_v6, %v2634_v15  ;;  %v959_v3 = vmax.f32 %v7618_v19, 0.0 }
 0x3e0   :  { %v1981_v28 = vpop.f32.mrf.mxu2  ;;  %v2286_v25 = vmax.f32 %v2261_v8, 0.0 }
 0x3e1   :  { %v6356_v30 = vadd.f32 %v6244_v47, %v1981_v28  ;;  %v2427_v20 = vmul.f32 %v4185_v21, %v2426_v56  ;;  %v2685_v43 = vmax.f32 %v2660_v58, 0.0  ;;  %v6395_v28 = vmul.f32 %v6087_v9, %v2027_v49 }
 0x3e3   :  { %v2058_v22 = vsel %vm121_vm0, %v6356_v30, 0.0  ;;  %v2123_v63 = vmul.f32 %v6356_v30, %v6356_v30  ;;  %v2431_v45 = vsel %vm2430_vm8, %v4185_v21, %v2427_v20  ;;  %v6400_v20 = vld [vmem:[%s7548_s2 + $0x9] ss:$0 sm:$0xff]  ;;  %v2237_v15 = vmul.f32 %v6395_v28, %v6395_v28 }
 0x3e4   :  { %2059 = vadd.xlane.f32.xlu0 %v2058_v22  ;;  %v2609_v17 = vmul.f32 %v2431_v45, %v2309_v52  ;;  %v2336_v52 = vadd.f32 1e-05, %v2286_v25  ;;  %v2159_v22 = vpop.xlane.xlu2 %2158 }
 0x3e5   :  { %v2190_v26 = vsel %vm121_vm0, %v2123_v63, 0.0  ;;  %v2212_v45 = vmul.f32 %v2159_v22, %v6087_v9 }
 0x3e6   :  { %2191 = vadd.xlane.f32.xlu2 %v2190_v26  ;;  %v2635_v5 = vmul.f32 %v6203_v36, %v2609_v17  ;;  %4186 = vrsqrt.f32 %v2336_v52  ;;  %vm2448_vm9 = vweird.f32 %v2336_v52 }
 0x3e7   :  { %v2262_v58 = vsub.f32 %v2212_v45, %v2237_v15 }
 0x3e8   :  { %v1984_v50 = vpop.f32.mrf.mxu2  ;;  %v2661_v7 = vadd.f32 %v6216_v6, %v2635_v5  ;;  %v2162_v22 = vpop.xlane.xlu0 %2161 }
 0x3e9   :  { %v6369_v0 = vadd.f32 %v6244_v47, %v1984_v50  ;;  %v6410_v50 = vpop.permute.xlu1 %3573 }
 0x3ea   :  { %v2686_v1 = vmax.f32 %v2661_v7, 0.0 }
 0x3eb   :  { %v2061_v44 = vsel %vm121_vm0, %v6369_v0, 0.0  ;;  %v2124_v27 = vmul.f32 %v6369_v0, %v6369_v0 }
 0x3ec   :  { %2062 = vadd.xlane.f32.xlu0 %v2061_v44  ;;  %v2707_v10 = vpack.c.bf16 %v2686_v1, %v2685_v43  ;;  %v4187_v7 = vpop.eup %4186  ;;  %v2287_v43 = vmax.f32 %v2262_v58, 0.0 }
 0x3ed   :  { %v2193_v21 = vsel %vm121_vm0, %v2124_v27, 0.0  ;;  %v6418_v27 = vmul.f32 %v6087_v9, %v2021_v34  ;;  %v2443_v39 = vmul.f32 %v4187_v7, %v2336_v52  ;;  %vm2449_vm1 = vweird.f32 %v4187_v7 }
 0x3ee   :  { %2194 = vadd.xlane.f32.xlu2 %v2193_v21  ;;  %3987 = vmatmul.msk.bf16.gmra.mxu3 %vm121_vm0, %v2707_v10  ;;  %v6422_v21 = vadd.f32 1e-05, %v2287_v43  ;;  %v2213_v43 = vmul.f32 %v2162_v22, %v6087_v9  ;;  %vm2450_vm10 = vmor %vm2448_vm9, %vm2449_vm1 }
 0x3f0   :  { %v1986_v61 = vpop.f32.mrf.mxu2  ;;  %4188 = vrsqrt.f32 %v6422_v21  ;;  %vm2458_vm15 = vweird.f32 %v6422_v21 }
 0x3f1   :  { %v6385_v29 = vadd.f32 %v6244_v47, %v1986_v61 }
 0x3f3   :  { %v2064_v42 = vsel %vm121_vm0, %v6385_v29, 0.0  ;;  %v2125_v33 = vmul.f32 %v6385_v29, %v6385_v29 }
 0x3f4   :  { %2065 = vadd.xlane.f32.xlu1 %v2064_v42  ;;  %v2235_v42 = vmul.f32 %v6418_v27, %v6418_v27 }
 0x3f5   :  { %v2196_v16 = vsel %vm121_vm0, %v2125_v33, 0.0  ;;  %v2444_v33 = vmul.f32 %v4187_v7, %v2443_v39 }
 0x3f6   :  { %2197 = vadd.xlane.f32.xlu0 %v2196_v16  ;;  %v6437_v58 = vpop.eup %4188 }
 0x3f7   :  { %v2445_v49 = vmul.f32 0.5, %v2444_v33  ;;  %vm2459_vm14 = vweird.f32 %v6437_v58 }
 0x3f8   :  { %v6392_v56 = vpop.f32.mrf.mxu2  ;;  %vm6490_vm2 = vmor %vm2458_vm15, %vm2459_vm14 }
 0x400   :  { %v1991_v17 = vpop.f32.mrf.mxu2 }
 0x401   :  { %v2783_v63 = vpop.f32.mrf.mxu3 }
 0x402   :  { %v6406_v26 = vadd.f32 %v6400_v20, %v2783_v63 }
 0x404   :  { %v2849_v5 = vsel %vm121_vm0, %v6406_v26, 0.0 }
 0x405   :  { %2850 = vadd.xlane.f32.xlu0 %v2849_v5 }
 0x406   :  { %3579 = vrot.lane.b32.xlu2 %v960_v11, %s4282_s24  ;;  %v2446_v11 = vsub.f32 1.5, %v2445_v49 }
 0x408   :  { %v2447_v19 = vmul.f32 %v4187_v7, %v2446_v11 }
 0x409   :  { %v2785_v44 = vpop.f32.mrf.mxu3 }
 0x40a   :  { %v6415_v1 = vadd.f32 %v6400_v20, %v2785_v44  ;;  %v2451_v49 = vsel %vm2450_vm10, %v4187_v7, %v2447_v19 }
 0x40b   :  { %v2153_v61 = vpop.xlane.xlu1 %2152 }
 0x40c   :  { %v2950_v10 = vmul.f32 %v6415_v1, %v6415_v1  ;;  %v2210_v8 = vmul.f32 %v2153_v61, %v6087_v9  ;;  %v2165_v61 = vpop.xlane.xlu0 %2164 }
 0x40d   :  { %3577 = vrot.lane.b32.xlu1 %v959_v3, %s4282_s24  ;;  %v2214_v52 = vmul.f32 %v2165_v61, %v6087_v9 }
 0x40e   :  { %v2977_v32 = vsel %vm121_vm0, %v2950_v10, 0.0  ;;  %v2260_v34 = vsub.f32 %v2210_v8, %v2235_v42  ;;  %v2453_v10 = vmul.f32 %v6437_v58, %v6422_v21  ;;  %v2036_v8 = vpop.xlane.xlu2 %2035 }
 0x40f   :  { %2978 = vadd.xlane.f32.xlu0 %v2977_v32  ;;  %v6460_v7 = vmul.f32 %v6087_v9, %v2036_v8 }
 0x410   :  { %v2285_v63 = vmax.f32 %v2260_v34, 0.0  ;;  %v2454_v33 = vmul.f32 %v6437_v58, %v2453_v10 }
 0x411   :  { %v2788_v16 = vpop.f32.mrf.mxu3 }
 0x412   :  { %v6432_v25 = vadd.f32 %v6400_v20, %v2788_v16  ;;  %v2335_v45 = vadd.f32 1e-05, %v2285_v63  ;;  %v2455_v11 = vmul.f32 0.5, %v2454_v33  ;;  %v2310_v33 = vsub.f32 %v6140_v31, %v6418_v27 }
 0x413   :  { %v2030_v17 = vpop.xlane.xlu1 %2029 }
 0x414   :  { %v2951_v15 = vmul.f32 %v6432_v25, %v6432_v25  ;;  %4190 = vrsqrt.f32 %v2335_v45  ;;  %v6440_v44 = vmul.f32 %v6087_v9, %v2030_v17  ;;  %vm2438_vm12 = vweird.f32 %v2335_v45 }
 0x416   :  { %v2980_v5 = vsel %vm121_vm0, %v2951_v15, 0.0  ;;  %v2238_v39 = vmul.f32 %v6440_v44, %v6440_v44  ;;  %v2311_v15 = vsub.f32 %v6166_v4, %v6377_v40 }
 0x417   :  { %2981 = vadd.xlane.f32.xlu0 %v2980_v5 }
 0x418   :  { %v2263_v3 = vsub.f32 %v2213_v43, %v2238_v39  ;;  %v2611_v39 = vmul.f32 %v2451_v49, %v2311_v15  ;;  %v2240_v49 = vmul.f32 %v6460_v7, %v6460_v7 }
 0x41a   :  { %v4191_v32 = vpop.eup %4190  ;;  %v2288_v42 = vmax.f32 %v2263_v3, 0.0 }
 0x41b   :  { %v2433_v34 = vmul.f32 %v4191_v32, %v2335_v45  ;;  %v2033_v16 = vpop.xlane.xlu1 %2032  ;;  %vm2439_vm11 = vweird.f32 %v4191_v32 }
 0x41c   :  { %v6448_v22 = vadd.f32 1e-05, %v2288_v42  ;;  %v6451_v63 = vmul.f32 %v6087_v9, %v2033_v16  ;;  %v2456_v42 = vsub.f32 1.5, %v2455_v11  ;;  %vm2440_vm13 = vmor %vm2438_vm12, %vm2439_vm11 }
 0x41d   :  { %v2434_v17 = vmul.f32 %v4191_v32, %v2433_v34  ;;  %v2637_v34 = vmul.f32 %v6203_v36, %v2611_v39 }
 0x41e   :  { %4192 = vrsqrt.f32 %v6448_v22  ;;  %v2239_v5 = vmul.f32 %v6451_v63, %v6451_v63  ;;  %v2457_v11 = vmul.f32 %v6437_v58, %v2456_v42  ;;  %vm2468_vm4 = vweird.f32 %v6448_v22 }
 0x41f   :  { %v2435_v43 = vmul.f32 0.5, %v2434_v17  ;;  %v2039_v40 = vpop.xlane.xlu2 %2038  ;;  %v6472_v17 = vadd.f32 %v6244_v47, %v6392_v56  ;;  %v2663_v39 = vadd.f32 %v6216_v6, %v2637_v34 }
 0x420   :  { %v2264_v10 = vsub.f32 %v2214_v52, %v2239_v5  ;;  %v6475_v5 = vpop.permute.xlu0 %3575 }
 0x421   :  { %v2436_v19 = vsub.f32 1.5, %v2435_v43  ;;  %7619 = vst [vmem:[#allocation2_spill] sm:$0xff] %v6475_v5 }
 0x422   :  { %v2289_v3 = vmax.f32 %v2264_v10, 0.0  ;;  %v6482_v10 = vmul.f32 %v6087_v9, %v2039_v40 }
 0x423   :  { %v2437_v4 = vmul.f32 %v4191_v32, %v2436_v19  ;;  %v2168_v61 = vpop.xlane.xlu1 %2167  ;;  %v2126_v19 = vmul.f32 %v6472_v17, %v6472_v17 }
 0x424   :  { %v4193_v16 = vpop.eup %4192  ;;  %v6467_v8 = vadd.f32 1e-05, %v2289_v3  ;;  %v2215_v15 = vmul.f32 %v2168_v61, %v6087_v9  ;;  %v2312_v3 = vsub.f32 %v6193_v23, %v6395_v28  ;;  %v2461_v61 = vsel %vm6490_vm2, %v6437_v58, %v2457_v11 }
 0x425   :  { %v2441_v45 = vsel %vm2440_vm13, %v4191_v32, %v2437_v4  ;;  %v2463_v52 = vmul.f32 %v4193_v16, %v6448_v22  ;;  %vm2469_vm3 = vweird.f32 %v4193_v16  ;;  %v2241_v23 = vmul.f32 %v6482_v10, %v6482_v10 }
 0x426   :  { %4194 = vrsqrt.f32 %v6467_v8  ;;  %v2265_v31 = vsub.f32 %v2215_v15, %v2240_v49  ;;  %v2610_v27 = vmul.f32 %v2441_v45, %v2310_v33  ;;  %v2688_v49 = vmax.f32 %v2663_v39, 0.0  ;;  %vm2470_vm5 = vmor %vm2468_vm4, %vm2469_vm3 }
 0x427   :  { %v2464_v43 = vmul.f32 %v4193_v16, %v2463_v52  ;;  %v2612_v22 = vmul.f32 %v2461_v61, %v2312_v3  ;;  %vm2478_vm8 = vweird.f32 %v6467_v8 }
 0x428   :  { %v2290_v47 = vmax.f32 %v2265_v31, 0.0  ;;  %v2636_v56 = vmul.f32 %v6203_v36, %v2610_v27  ;;  %v2199_v31 = vsel %vm121_vm0, %v2126_v19, 0.0  ;;  %v2313_v27 = vsub.f32 %v6219_v59, %v6440_v44 }
 0x429   :  { %v2465_v32 = vmul.f32 0.5, %v2464_v43  ;;  %v2174_v34 = vpop.xlane.xlu2 %2173  ;;  %v2949_v44 = vmul.f32 %v6406_v26, %v6406_v26 }
 0x42a   :  { %v6494_v4 = vadd.f32 1e-05, %v2290_v47  ;;  %v2662_v40 = vadd.f32 %v6216_v6, %v2636_v56 }
 0x42b   :  { %v2466_v21 = vsub.f32 1.5, %v2465_v32  ;;  %v2171_v33 = vpop.xlane.xlu1 %2170 }
 0x42c   :  { %v6500_v15 = vpop.eup %4194  ;;  %4196 = vrsqrt.f32 %v6494_v4  ;;  %v2216_v28 = vmul.f32 %v2171_v33, %v6087_v9  ;;  %v2687_v45 = vmax.f32 %v2662_v40, 0.0  ;;  %vm2488_vm1 = vweird.f32 %v6494_v4 }
 0x42d   :  { %v2467_v52 = vmul.f32 %v4193_v16, %v2466_v21  ;;  %v2473_v58 = vmul.f32 %v6500_v15, %v6467_v8  ;;  %v2217_v21 = vmul.f32 %v2174_v34, %v6087_v9  ;;  %v2067_v34 = vsel %vm121_vm0, %v6472_v17, 0.0 }
 0x42e   :  { %v2266_v11 = vsub.f32 %v2216_v28, %v2241_v23  ;;  %v2042_v43 = vpop.xlane.xlu0 %2041  ;;  %v2708_v39 = vpack.c.bf16 %v2688_v49, %v2687_v45  ;;  %v2638_v23 = vmul.f32 %v6203_v36, %v2612_v22  ;;  %v2790_v28 = vpop.f32.mrf.mxu3  ;;  %vm2479_vm6 = vweird.f32 %v6500_v15 }
 0x42f   :  { %2200 = vadd.xlane.f32.xlu2 %v2199_v31  ;;  %v2471_v47 = vsel %vm2470_vm5, %v4193_v16, %v2467_v52  ;;  %v2474_v56 = vmul.f32 %v6500_v15, %v2473_v58  ;;  %v6514_v32 = vmul.f32 %v6087_v9, %v2042_v43  ;;  %vm6551_vm9 = vmor %vm2478_vm8, %vm2479_vm6  ;;  %v2852_v8 = vsel %vm121_vm0, %v6415_v1, 0.0 }
 0x430   :  { %v2613_v42 = vmul.f32 %v2471_v47, %v2313_v27  ;;  %v2291_v40 = vmax.f32 %v2266_v11, 0.0  ;;  %3988 = vmatmul.msk.bf16.gmra.mxu3 %vm121_vm0, %v2708_v39  ;;  %v2974_v27 = vsel %vm121_vm0, %v2949_v44, 0.0 }
 0x431   :  { %v2475_v19 = vmul.f32 0.5, %v2474_v56  ;;  %v2242_v59 = vmul.f32 %v6514_v32, %v6514_v32  ;;  %v2177_v31 = vpop.xlane.xlu2 %2176 }
 0x432   :  { %v4197_v16 = vpop.eup %4196  ;;  %v2639_v33 = vmul.f32 %v6203_v36, %v2613_v42  ;;  %v6523_v49 = vadd.f32 1e-05, %v2291_v40  ;;  %v2664_v42 = vadd.f32 %v6216_v6, %v2638_v23  ;;  %v6539_v40 = vadd.f32 %v6400_v20, %v2790_v28 }
 0x433   :  { %v2483_v3 = vmul.f32 %v4197_v16, %v6494_v4  ;;  %v2267_v61 = vsub.f32 %v2217_v21, %v2242_v59  ;;  %v2476_v45 = vsub.f32 1.5, %v2475_v19  ;;  %vm2489_vm7 = vweird.f32 %v4197_v16 }
 0x434   :  { %4198 = vrsqrt.f32 %v6523_v49  ;;  %v2665_v39 = vadd.f32 %v6216_v6, %v2639_v33  ;;  %v2218_v19 = vmul.f32 %v2177_v31, %v6087_v9  ;;  %vm2490_vm10 = vmor %vm2488_vm1, %vm2489_vm7  ;;  %v2858_v4 = vsel %vm121_vm0, %v6539_v40, 0.0 }
 0x435   :  { %v2484_v52 = vmul.f32 %v4197_v16, %v2483_v3  ;;  %v2292_v58 = vmax.f32 %v2267_v61, 0.0  ;;  %v2477_v21 = vmul.f32 %v6500_v15, %v2476_v45  ;;  %vm2498_vm15 = vweird.f32 %v6523_v49 }
 0x436   :  { %v2045_v11 = vpop.xlane.xlu0 %2044  ;;  %v2690_v3 = vmax.f32 %v2665_v39, 0.0 }
 0x437   :  { %v2048_v43 = vpop.xlane.xlu1 %2047  ;;  %2068 = vadd.xlane.f32.xlu1 %v2067_v34  ;;  %2975 = vadd.xlane.f32.xlu2 %v2974_v27  ;;  %v2485_v47 = vmul.f32 0.5, %v2484_v52  ;;  %v6532_v56 = vadd.f32 1e-05, %v2292_v58  ;;  %v6535_v22 = vmul.f32 %v6087_v9, %v2045_v11  ;;  %v2315_v52 = vsub.f32 %v6247_v14, %v6460_v7 }
 0x438   :  { %v6558_v45 = vmul.f32 %v6087_v9, %v2048_v43  ;;  %v2689_v58 = vmax.f32 %v2664_v42, 0.0  ;;  %v2481_v31 = vsel %vm6551_vm9, %v6500_v15, %v2477_v21  ;;  %v2314_v14 = vsub.f32 %v6230_v46, %v6451_v63 }
 0x439   :  { %v2486_v59 = vsub.f32 1.5, %v2485_v47  ;;  %4200 = vrsqrt.f32 %v6532_v56  ;;  %v2243_v44 = vmul.f32 %v6535_v22, %v6535_v22  ;;  %vm2508_vm13 = vweird.f32 %v6532_v56 }
 0x43a   :  { %v6547_v33 = vpop.eup %4198  ;;  %v2709_v39 = vpack.c.bf16 %v2690_v3, %v2689_v58  ;;  %v2244_v42 = vmul.f32 %v6558_v45, %v6558_v45  ;;  %v2855_v58 = vsel %vm121_vm0, %v6432_v25, 0.0 }
 0x43b   :  { %v2487_v23 = vmul.f32 %v4197_v16, %v2486_v59  ;;  %v2493_v34 = vmul.f32 %v6547_v33, %v6523_v49  ;;  %v2268_v28 = vsub.f32 %v2218_v19, %v2243_v44  ;;  %vm2499_vm12 = vweird.f32 %v6547_v33 }
 0x43c   :  { %vm6621_vm2 = vmor %vm2498_vm15, %vm2499_vm12  ;;  %v2316_v49 = vsub.f32 %v6275_v37, %v6482_v10 }
 0x43d   :  { %v2491_v27 = vsel %vm2490_vm10, %v4197_v16, %v2487_v23  ;;  %v2494_v11 = vmul.f32 %v6547_v33, %v2493_v34  ;;  %v2293_v43 = vmax.f32 %v2268_v28, 0.0  ;;  %v2614_v16 = vmul.f32 %v2481_v31, %v2314_v14 }
 0x43e   :  { %v2180_v7 = vpop.xlane.xlu0 %2179  ;;  %v2615_v47 = vmul.f32 %v2491_v27, %v2315_v52 }
 0x43f   :  { %2853 = vadd.xlane.f32.xlu1 %v2852_v8  ;;  %2859 = vadd.xlane.f32.xlu2 %v2858_v4  ;;  %v4201_v19 = vpop.eup %4200  ;;  %v6573_v59 = vadd.f32 1e-05, %v2293_v43  ;;  %v2219_v15 = vmul.f32 %v2180_v7, %v6087_v9  ;;  %v2051_v44 = vpop.xlane.xlu1 %2050  ;;  %v2495_v46 = vmul.f32 0.5, %v2494_v11  ;;  %v2640_v28 = vmul.f32 %v6203_v36, %v2614_v16 }
 0x440   :  { %v2503_v21 = vmul.f32 %v4201_v19, %v6532_v56  ;;  %3989 = vmatmul.msk.bf16.gmra.mxu3 %vm121_vm0, %v2709_v39  ;;  %v2641_v61 = vmul.f32 %v6203_v36, %v2615_v47  ;;  %v6583_v34 = vmul.f32 %v6087_v9, %v2051_v44  ;;  %vm2509_vm11 = vweird.f32 %v4201_v19 }
 0x441   :  { %4202 = vrsqrt.f32 %v6573_v59  ;;  %v2269_v63 = vsub.f32 %v2219_v15, %v2244_v42  ;;  %v2496_v8 = vsub.f32 1.5, %v2495_v46  ;;  %v2952_v43 = vmul.f32 %v6539_v40, %v6539_v40  ;;  %vm6611_vm14 = vmor %vm2508_vm13, %vm2509_vm11 }
 0x442   :  { %v2504_v3 = vmul.f32 %v4201_v19, %v2503_v21  ;;  %v2667_v14 = vadd.f32 %v6216_v6, %v2641_v61  ;;  %v2245_v36 = vmul.f32 %v6583_v34, %v6583_v34  ;;  %v2666_v15 = vadd.f32 %v6216_v6, %v2640_v28 }
 0x443   :  { %v2294_v23 = vmax.f32 %v2269_v63, 0.0  ;;  %v2497_v16 = vmul.f32 %v6547_v33, %v2496_v8  ;;  %vm2518_vm6 = vweird.f32 %v6573_v59 }
 0x444   :  { %v2505_v52 = vmul.f32 0.5, %v2504_v3  ;;  %v2692_v56 = vmax.f32 %v2667_v14, 0.0 }
 0x445   :  { %v6586_v4 = vadd.f32 1e-05, %v2294_v23 }
 0x446   :  { %v2506_v31 = vsub.f32 1.5, %v2505_v52  ;;  %v2183_v27 = vpop.xlane.xlu0 %2182  ;;  %v2317_v52 = vsub.f32 %v6283_v57, %v6514_v32 }
 0x447   :  { %v2054_v11 = vpop.xlane.xlu2 %2053  ;;  %2856 = vadd.xlane.f32.xlu1 %v2855_v58  ;;  %v6593_v7 = vpop.eup %4202  ;;  %4204 = vrsqrt.f32 %v6586_v4  ;;  %v2220_v39 = vmul.f32 %v2183_v27, %v6087_v9  ;;  %v2983_v58 = vsel %vm121_vm0, %v2952_v43, 0.0  ;;  %vm2528_vm3 = vweird.f32 %v6586_v4 }
 0x448   :  { %v6600_v47 = vmul.f32 %v6087_v9, %v2054_v11  ;;  %v2507_v42 = vmul.f32 %v4201_v19, %v2506_v31  ;;  %v2513_v21 = vmul.f32 %v6593_v7, %v6573_v59  ;;  %v2691_v31 = vmax.f32 %v2666_v15, 0.0 }
 0x449   :  { %v2270_v44 = vsub.f32 %v2220_v39, %v2245_v36  ;;  %v2186_v63 = vpop.xlane.xlu1 %2185  ;;  %vm2519_vm5 = vweird.f32 %v6593_v7 }
 0x44a   :  { %v2246_v46 = vmul.f32 %v6600_v47, %v6600_v47  ;;  %v2221_v61 = vmul.f32 %v2186_v63, %v6087_v9  ;;  %v2511_v6 = vsel %vm6611_vm14, %v4201_v19, %v2507_v42  ;;  %v2501_v19 = vsel %vm6621_vm2, %v6547_v33, %v2497_v16  ;;  %vm2520_vm8 = vmor %vm2518_vm6, %vm2519_vm5 }
 0x44b   :  { %v2295_v23 = vmax.f32 %v2270_v44, 0.0  ;;  %v2514_v11 = vmul.f32 %v6593_v7, %v2513_v21  ;;  %v2617_v39 = vmul.f32 %v2511_v6, %v2317_v52  ;;  %v2710_v42 = vpack.c.bf16 %v2692_v56, %v2691_v31 }
 0x44c   :  { %v2271_v8 = vsub.f32 %v2221_v61, %v2246_v46  ;;  %v2616_v16 = vmul.f32 %v2501_v19, %v2316_v49  ;;  %v6660_v61 = vld [vmem:[%s7548_s2 + $0x7] ss:$0 sm:$0xff] }
 0x44d   :  { %v6628_v27 = vpop.eup %4204  ;;  %v6636_v14 = vadd.f32 1e-05, %v2295_v23  ;;  %v2515_v21 = vmul.f32 0.5, %v2514_v11  ;;  %v2643_v56 = vmul.f32 %v6660_v61, %v2617_v39  ;;  %v6675_v39 = vld [vmem:[%s7548_s2 + $0x8] ss:$0 sm:$0xff] }
 0x44e   :  { %v2523_v57 = vmul.f32 %v6628_v27, %v6586_v4  ;;  %v2296_v32 = vmax.f32 %v2271_v8, 0.0  ;;  %v2642_v8 = vmul.f32 %v6660_v61, %v2616_v16  ;;  %vm2529_vm4 = vweird.f32 %v6628_v27 }
 0x44f   :  { %v2057_v43 = vpop.xlane.xlu2 %2056  ;;  %2984 = vadd.xlane.f32.xlu1 %v2983_v58  ;;  %4206 = vrsqrt.f32 %v6636_v14  ;;  %v2516_v58 = vsub.f32 1.5, %v2515_v21  ;;  %vm6700_vm7 = vmor %vm2528_vm3, %vm2529_vm4  ;;  %v2319_v4 = vsub.f32 %v6307_v13, %v6558_v45  ;;  %vm2538_vm12 = vweird.f32 %v6636_v14 }
 0x450   :  { %v6641_v15 = vmul.f32 %v6087_v9, %v2057_v43  ;;  %v2524_v10 = vmul.f32 %v6628_v27, %v2523_v57  ;;  %v6648_v33 = vadd.f32 1e-05, %v2296_v32  ;;  %3990 = vmatmul.msk.bf16.gmra.mxu3 %vm121_vm0, %v2710_v42  ;;  %v2669_v57 = vadd.f32 %v6675_v39, %v2643_v56 }
 0x451   :  { %v2189_v46 = vpop.xlane.xlu1 %2188 }
 0x452   :  { %v2793_v36 = vpop.f32.mrf.mxu3  ;;  %v2247_v44 = vmul.f32 %v6641_v15, %v6641_v15  ;;  %v2525_v6 = vmul.f32 0.5, %v2524_v10  ;;  %4208 = vrsqrt.f32 %v6648_v33  ;;  %v2222_v23 = vmul.f32 %v2189_v46, %v6087_v9 }
 0x453   :  { %v6644_v37 = vadd.f32 %v6400_v20, %v2793_v36  ;;  %v2668_v46 = vadd.f32 %v6675_v39, %v2642_v8  ;;  %vm2548_vm10 = vweird.f32 %v6648_v33 }
 0x454   :  { %v2526_v52 = vsub.f32 1.5, %v2525_v6  ;;  %v2272_v31 = vsub.f32 %v2222_v23, %v2247_v44 }
 0x455   :  { %v2861_v63 = vsel %vm121_vm0, %v6644_v37, 0.0  ;;  %v2953_v3 = vmul.f32 %v6644_v37, %v6644_v37  ;;  %v6667_v19 = vpop.eup %4206 }
 0x456   :  { %2862 = vadd.xlane.f32.xlu2 %v2861_v63  ;;  %v2527_v32 = vmul.f32 %v6628_v27, %v2526_v52  ;;  %v2297_v10 = vmax.f32 %v2272_v31, 0.0  ;;  %v2517_v63 = vmul.f32 %v6593_v7, %v2516_v58  ;;  %vm2539_vm9 = vweird.f32 %v6667_v19 }
 0x457   :  { %v2986_v28 = vsel %vm121_vm0, %v2953_v3, 0.0  ;;  %v2060_v11 = vpop.xlane.xlu0 %2059  ;;  %v2533_v3 = vmul.f32 %v6667_v19, %v6636_v14  ;;  %vm2540_vm13 = vmor %vm2538_vm12, %vm2539_vm9  ;;  %v2320_v14 = vsub.f32 %v6325_v55, %v6583_v34 }
 0x458   :  { %2987 = vadd.xlane.f32.xlu1 %v2986_v28  ;;  %v6682_v43 = vmul.f32 %v6087_v9, %v2060_v11  ;;  %v6684_v42 = vpop.eup %4208  ;;  %v2694_v28 = vmax.f32 %v2669_v57, 0.0  ;;  %v2531_v52 = vsel %vm6700_vm7, %v6628_v27, %v2527_v32  ;;  %v6714_v31 = vadd.f32 1e-05, %v2297_v10 }
 0x459   :  { %v2192_v16 = vpop.xlane.xlu2 %2191  ;;  %v2543_v56 = vmul.f32 %v6684_v42, %v6648_v33  ;;  %v2521_v11 = vsel %vm2520_vm8, %v6593_v7, %v2517_v63  ;;  %v2534_v57 = vmul.f32 %v6667_v19, %v2533_v3  ;;  %v2318_v27 = vsub.f32 %v6294_v12, %v6535_v22 }
 0x45a   :  { %v2795_v49 = vpop.f32.mrf.mxu3  ;;  %v2248_v23 = vmul.f32 %v6682_v43, %v6682_v43  ;;  %v2223_v58 = vmul.f32 %v2192_v16, %v6087_v9  ;;  %v2619_v32 = vmul.f32 %v2531_v52, %v2319_v4  ;;  %4210 = vrsqrt.f32 %v6714_v31 }
 0x45b   :  { %v6670_v36 = vadd.f32 %v6400_v20, %v2795_v49  ;;  %v2544_v8 = vmul.f32 %v6684_v42, %v2543_v56  ;;  %v2693_v49 = vmax.f32 %v2668_v46, 0.0  ;;  %v2618_v13 = vmul.f32 %v2521_v11, %v2318_v27 }
 0x45c   :  { %v2535_v7 = vmul.f32 0.5, %v2534_v57  ;;  %v2645_v46 = vmul.f32 %v6660_v61, %v2619_v32  ;;  %vm2549_vm1 = vweird.f32 %v6684_v42  ;;  %vm2558_vm4 = vweird.f32 %v6714_v31 }
 0x45d   :  { %v2864_v21 = vsel %vm121_vm0, %v6670_v36, 0.0  ;;  %v2954_v44 = vmul.f32 %v6670_v36, %v6670_v36  ;;  %v2711_v56 = vpack.c.bf16 %v2694_v28, %v2693_v49  ;;  %v2644_v3 = vmul.f32 %v6660_v61, %v2618_v13  ;;  %vm2550_vm11 = vmor %vm2548_vm10, %vm2549_vm1 }
 0x45e   :  { %2865 = vadd.xlane.f32.xlu0 %v2864_v21  ;;  %v2273_v21 = vsub.f32 %v2223_v58, %v2248_v23  ;;  %v2536_v28 = vsub.f32 1.5, %v2535_v7  ;;  %v2671_v58 = vadd.f32 %v6675_v39, %v2645_v46  ;;  %v2321_v7 = vsub.f32 %v6337_v2, %v6600_v47 }
 0x45f   :  { %v2989_v59 = vsel %vm121_vm0, %v2954_v44, 0.0  ;;  %v2063_v16 = vpop.xlane.xlu0 %2062  ;;  %v2545_v44 = vmul.f32 0.5, %v2544_v8  ;;  %v2670_v49 = vadd.f32 %v6675_v39, %v2644_v3 }
 0x460   :  { %2990 = vadd.xlane.f32.xlu2 %v2989_v59  ;;  %v2298_v6 = vmax.f32 %v2273_v21, 0.0  ;;  %v6721_v5 = vmul.f32 %v6087_v9, %v2063_v16  ;;  %3991 = vmatmul.msk.bf16.gmra.mxu3 %vm121_vm0, %v2711_v56  ;;  %v6733_v52 = vpop.eup %4210  ;;  %v2537_v27 = vmul.f32 %v6667_v19, %v2536_v28 }
 0x461   :  { %v2195_v45 = vpop.xlane.xlu2 %2194  ;;  %v2546_v63 = vsub.f32 1.5, %v2545_v44  ;;  %v2553_v32 = vmul.f32 %v6733_v52, %v6714_v31  ;;  %vm2559_vm15 = vweird.f32 %v6733_v52  ;;  %v2322_v31 = vsub.f32 %v6346_v24, %v6641_v15 }
 0x462   :  { %v6725_v10 = vadd.f32 1e-05, %v2298_v6  ;;  %v2249_v12 = vmul.f32 %v6721_v5, %v6721_v5  ;;  %v2224_v22 = vmul.f32 %v2195_v45, %v6087_v9  ;;  %v2696_v6 = vmax.f32 %v2671_v58, 0.0  ;;  %vm2560_vm5 = vmor %vm2558_vm4, %vm2559_vm15 }
 0x463   :  { %v2547_v59 = vmul.f32 %v6684_v42, %v2546_v63  ;;  %v2695_v45 = vmax.f32 %v2670_v49, 0.0  ;;  %v2541_v46 = vsel %vm2540_vm13, %v6667_v19, %v2537_v27  ;;  %v2554_v63 = vmul.f32 %v6733_v52, %v2553_v32 }
 0x464   :  { %4212 = vrsqrt.f32 %v6725_v10  ;;  %v2274_v23 = vsub.f32 %v2224_v22, %v2249_v12  ;;  %v2620_v58 = vmul.f32 %v2541_v46, %v2320_v14  ;;  %vm2568_vm2 = vweird.f32 %v6725_v10 }
 0x465   :  { %v2551_v33 = vsel %vm2550_vm11, %v6684_v42, %v2547_v59  ;;  %v2555_v2 = vmul.f32 0.5, %v2554_v63 }
 0x466   :  { %v2299_v11 = vmax.f32 %v2274_v23, 0.0  ;;  %v2621_v42 = vmul.f32 %v2551_v33, %v2321_v7  ;;  %v2712_v23 = vpack.c.bf16 %v2696_v6, %v2695_v45  ;;  %v2646_v49 = vmul.f32 %v6660_v61, %v2620_v58 }
 0x467   :  { %v2066_v8 = vpop.xlane.xlu1 %2065 }
 0x468   :  { %v6739_v4 = vmul.f32 %v6087_v9, %v2066_v8  ;;  %v6761_v22 = vadd.f32 1e-05, %v2299_v11  ;;  %v2647_v59 = vmul.f32 %v6660_v61, %v2621_v42  ;;  %v2556_v11 = vsub.f32 1.5, %v2555_v2 }
 0x469   :  { %v2198_v57 = vpop.xlane.xlu0 %2197  ;;  %v2672_v6 = vadd.f32 %v6675_v39, %v2646_v49 }
 0x46a   :  { %v6744_v21 = vpop.eup %4212  ;;  %v2250_v16 = vmul.f32 %v6739_v4, %v6739_v4  ;;  %v2225_v56 = vmul.f32 %v2198_v57, %v6087_v9  ;;  %4214 = vrsqrt.f32 %v6761_v22  ;;  %v2673_v27 = vadd.f32 %v6675_v39, %v2647_v59 }
 0x46b   :  { %v2563_v44 = vmul.f32 %v6744_v21, %v6725_v10  ;;  %vm2569_vm14 = vweird.f32 %v6744_v21  ;;  %v2557_v33 = vmul.f32 %v6733_v52, %v2556_v11  ;;  %v2697_v42 = vmax.f32 %v2672_v6, 0.0 }
 0x46c   :  { %v2275_v13 = vsub.f32 %v2225_v56, %v2250_v16  ;;  %vm2570_vm3 = vmor %vm2568_vm2, %vm2569_vm14  ;;  %vm2578_vm9 = vweird.f32 %v6761_v22 }
 0x46d   :  { %v2564_v12 = vmul.f32 %v6744_v21, %v2563_v44 }
 0x46e   :  { %v2300_v3 = vmax.f32 %v2275_v13, 0.0 }
 0x46f   :  { %v2565_v28 = vmul.f32 0.5, %v2564_v12  ;;  %v2698_v12 = vmax.f32 %v2673_v27, 0.0 }
 0x470   :  { %v6767_v8 = vadd.f32 1e-05, %v2300_v3  ;;  %3992 = vmatmul.msk.bf16.gmra.mxu3 %vm121_vm0, %v2712_v23  ;;  %v4215_v57 = vpop.eup %4214  ;;  %v2323_v3 = vsub.f32 %v6356_v30, %v6682_v43  ;;  %v2561_v23 = vsel %vm2560_vm5, %v6733_v52, %v2557_v33 }
 0x471   :  { %v2798_v47 = vpop.f32.mrf.mxu3  ;;  %v2566_v55 = vsub.f32 1.5, %v2565_v28  ;;  %v2573_v13 = vmul.f32 %v4215_v57, %v6761_v22  ;;  %v2713_v2 = vpack.c.bf16 %v2698_v12, %v2697_v42  ;;  %v2622_v30 = vmul.f32 %v2561_v23, %v2322_v31 }
 0x472   :  { %4216 = vrsqrt.f32 %v6767_v8  ;;  %v6773_v19 = vadd.f32 %v6400_v20, %v2798_v47  ;;  %vm2579_vm7 = vweird.f32 %v4215_v57  ;;  %vm2588_vm8 = vweird.f32 %v6767_v8 }
 0x473   :  { %v2567_v16 = vmul.f32 %v6744_v21, %v2566_v55  ;;  %v2574_v28 = vmul.f32 %v4215_v57, %v2573_v13  ;;  %vm2580_vm10 = vmor %vm2578_vm9, %vm2579_vm7  ;;  %v2324_v13 = vsub.f32 %v6369_v0, %v6721_v5 }
 0x474   :  { %v2867_v34 = vsel %vm121_vm0, %v6773_v19, 0.0  ;;  %v2955_v44 = vmul.f32 %v6773_v19, %v6773_v19 }
 0x475   :  { %2868 = vadd.xlane.f32.xlu2 %v2867_v34  ;;  %v2571_v46 = vsel %vm2570_vm3, %v6744_v21, %v2567_v16  ;;  %v2575_v43 = vmul.f32 0.5, %v2574_v28  ;;  %v2648_v34 = vmul.f32 %v6660_v61, %v2622_v30 }
 0x476   :  { %v2992_v14 = vsel %vm121_vm0, %v2955_v44, 0.0  ;;  %v2623_v58 = vmul.f32 %v2571_v46, %v2323_v3  ;;  %v2325_v44 = vsub.f32 %v6385_v29, %v6739_v4  ;;  %v6822_v3 = vpop.permute.xlu2 %3579 }
 0x477   :  { %v2576_v49 = vsub.f32 1.5, %v2575_v43  ;;  %v2674_v11 = vadd.f32 %v6675_v39, %v2648_v34 }
 0x478   :  { %v4217_v32 = vpop.eup %4216  ;;  %v2649_v59 = vmul.f32 %v6660_v61, %v2623_v58 }
 0x479   :  { %v2583_v56 = vmul.f32 %v4217_v32, %v6767_v8  ;;  %v2800_v45 = vpop.f32.mrf.mxu3  ;;  %vm2589_vm6 = vweird.f32 %v4217_v32  ;;  %v2577_v27 = vmul.f32 %v4215_v57, %v2576_v49  ;;  %v2699_v6 = vmax.f32 %v2674_v11, 0.0 }
 0x47a   :  { %v6791_v7 = vadd.f32 %v6400_v20, %v2800_v45  ;;  %v2675_v24 = vadd.f32 %v6675_v39, %v2649_v59  ;;  %vm2590_vm1 = vmor %vm2588_vm8, %vm2589_vm6 }
 0x47b   :  { %v2584_v63 = vmul.f32 %v4217_v32, %v2583_v56  ;;  %v2581_v33 = vsel %vm2580_vm10, %v4215_v57, %v2577_v27 }
 0x47c   :  { %v2956_v10 = vmul.f32 %v6791_v7, %v6791_v7  ;;  %v2870_v52 = vsel %vm121_vm0, %v6791_v7, 0.0  ;;  %v2700_v16 = vmax.f32 %v2675_v24, 0.0  ;;  %v2624_v46 = vmul.f32 %v2581_v33, %v2324_v13 }
 0x47d   :  { %2993 = vadd.xlane.f32.xlu2 %v2992_v14  ;;  %v2585_v47 = vmul.f32 0.5, %v2584_v63  ;;  %v2851_v14 = vpop.xlane.xlu0 %2850 }
 0x47e   :  { %v2995_v21 = vsel %vm121_vm0, %v2956_v10, 0.0  ;;  %v2714_v12 = vpack.c.bf16 %v2700_v16, %v2699_v6  ;;  %v2650_v63 = vmul.f32 %v6660_v61, %v2624_v46  ;;  %v6828_v10 = vmul.f32 %v2851_v14, %v6087_v9 }
 0x47f   :  { %2996 = vadd.xlane.f32.xlu0 %v2995_v21  ;;  %v2586_v55 = vsub.f32 1.5, %v2585_v47  ;;  %v6825_v0 = vpop.permute.xlu1 %3577 }
 0x480   :  { %3993 = vmatmul.msk.bf16.gmra.mxu3 %vm121_vm0, %v2713_v2  ;;  %v3074_v28 = vmul.f32 %v6828_v10, %v6828_v10 }
 0x481   :  { %v2587_v15 = vmul.f32 %v4217_v32, %v2586_v55 }
 0x483   :  { %v2591_v56 = vsel %vm2590_vm1, %v4217_v32, %v2587_v15  ;;  %v2676_v32 = vadd.f32 %v6675_v39, %v2650_v63 }
 0x484   :  { %v2625_v45 = vmul.f32 %v2591_v56, %v2325_v44 }
 0x485   :  { %2871 = vadd.xlane.f32.xlu2 %v2870_v52  ;;  %v2701_v4 = vmax.f32 %v2676_v32, 0.0  ;;  %v2979_v59 = vpop.xlane.xlu0 %2978 }
 0x486   :  { %v2651_v8 = vmul.f32 %v6660_v61, %v2625_v45  ;;  %v3050_v11 = vmul.f32 %v2979_v59, %v6087_v9 }
 0x488   :  { %v2677_v22 = vadd.f32 %v6675_v39, %v2651_v8 }
 0x48a   :  { %v2702_v29 = vmax.f32 %v2677_v22, 0.0 }
 0x48c   :  { %v2715_v57 = vpack.c.bf16 %v2702_v29, %v2701_v4 }
 0x48d   :  { %v2982_v45 = vpop.xlane.xlu0 %2981 }
 0x48e   :  { %v3051_v14 = vmul.f32 %v2982_v45, %v6087_v9 }
 0x490   :  { %3994 = vmatmul.msk.bf16.gmra.mxu3 %vm121_vm0, %v2714_v12 }
 0x4a0   :  { %3995 = vmatmul.msk.bf16.gmra.mxu3 %vm121_vm0, %v2715_v57 }
 0x4a2   :  { %v2201_v5 = vpop.xlane.xlu2 %2200 }
 0x4a3   :  { %v2226_v21 = vmul.f32 %v2201_v5, %v6087_v9 }
 0x4aa   :  { %v2069_v42 = vpop.xlane.xlu1 %2068  ;;  %v2976_v23 = vpop.xlane.xlu2 %2975 }
 0x4ab   :  { %v6833_v31 = vmul.f32 %v6087_v9, %v2069_v42  ;;  %v3049_v58 = vmul.f32 %v2976_v23, %v6087_v9  ;;  %v4043_v23 = vld [vmem:[%s7546_s1 + $0x68] sm:$0xff] }
 0x4ac   :  { %3752 = vmatpush.bf16.msrb.mxu0 %v4043_v23 }
 0x4ad   :  { %v2251_v2 = vmul.f32 %v6833_v31, %v6833_v31  ;;  %v3099_v47 = vsub.f32 %v3049_v58, %v3074_v28 }
 0x4af   :  { %v2276_v30 = vsub.f32 %v2226_v21, %v2251_v2  ;;  %v3124_v43 = vmax.f32 %v3099_v47, 0.0 }
 0x4b1   :  { %v2301_v55 = vmax.f32 %v2276_v30, 0.0  ;;  %v3174_v52 = vadd.f32 1e-05, %v3124_v43 }
 0x4b2   :  { %v2854_v34 = vpop.xlane.xlu1 %2853  ;;  %v2860_v57 = vpop.xlane.xlu2 %2859 }
 0x4b3   :  { %v6839_v49 = vadd.f32 1e-05, %v2301_v55  ;;  %4218 = vrsqrt.f32 %v3174_v52  ;;  %v6842_v24 = vmul.f32 %v2854_v34, %v6087_v9  ;;  %v2803_v15 = vpop.f32.mrf.mxu3  ;;  %v6873_v2 = vmul.f32 %v2860_v57, %v6087_v9 }
 0x4b4   :  { %v6849_v16 = vadd.f32 %v6400_v20, %v2803_v15  ;;  %vm3205_vm12 = vweird.f32 %v3174_v52 }
 0x4b5   :  { %4220 = vrsqrt.f32 %v6839_v49  ;;  %v3075_v27 = vmul.f32 %v6842_v24, %v6842_v24  ;;  %vm2598_vm15 = vweird.f32 %v6839_v49 }
 0x4b6   :  { %v2873_v44 = vsel %vm121_vm0, %v6849_v16, 0.0  ;;  %v2957_v6 = vmul.f32 %v6849_v16, %v6849_v16 }
 0x4b7   :  { %v3100_v56 = vsub.f32 %v3050_v11, %v3075_v27  ;;  %2874 = vadd.xlane.f32.xlu1 %v2873_v44 }
 0x4b8   :  { %v2998_v46 = vsel %vm121_vm0, %v2957_v6, 0.0  ;;  %v3149_v6 = vsub.f32 %v6406_v26, %v6828_v10 }
 0x4b9   :  { %v4219_v33 = vpop.eup %4218  ;;  %v3125_v13 = vmax.f32 %v3100_v56, 0.0  ;;  %2999 = vadd.xlane.f32.xlu0 %v2998_v46 }
 0x4ba   :  { %v3200_v12 = vmul.f32 %v4219_v33, %v3174_v52  ;;  %v2857_v8 = vpop.xlane.xlu1 %2856  ;;  %vm3206_vm11 = vweird.f32 %v4219_v33  ;;  %v3077_v52 = vmul.f32 %v6873_v2, %v6873_v2 }
 0x4bb   :  { %v4221_v63 = vpop.eup %4220  ;;  %v6856_v22 = vadd.f32 1e-05, %v3125_v13  ;;  %v6859_v32 = vmul.f32 %v2857_v8, %v6087_v9  ;;  %v2805_v5 = vpop.f32.mrf.mxu3  ;;  %vm6886_vm14 = vmor %vm3205_vm12, %vm3206_vm11 }
 0x4bc   :  { %v2593_v29 = vmul.f32 %v4221_v63, %v6839_v49  ;;  %v3201_v4 = vmul.f32 %v4219_v33, %v3200_v12  ;;  %v6870_v21 = vadd.f32 %v6400_v20, %v2805_v5  ;;  %v4042_v20 = vld [vmem:[%s7546_s1 + $0x60] sm:$0xff]  ;;  %vm2599_vm13 = vweird.f32 %v4221_v63  ;;  %v6906_v49 = vld [vmem:[%s7548_s2 + $0xa] ss:$0 sm:$0xff] }
 0x4bd   :  { %4222 = vrsqrt.f32 %v6856_v22  ;;  %v3076_v42 = vmul.f32 %v6859_v32, %v6859_v32  ;;  %3753 = vmatpush.bf16.msrb.mxu0 %v4042_v20  ;;  %vm2600_vm2 = vmor %vm2598_vm15, %vm2599_vm13  ;;  %vm3215_vm4 = vweird.f32 %v6856_v22 }
 0x4be   :  { %v2594_v28 = vmul.f32 %v4221_v63, %v2593_v29  ;;  %v3202_v58 = vmul.f32 0.5, %v3201_v4  ;;  %v2876_v59 = vsel %vm121_vm0, %v6870_v21, 0.0  ;;  %v2958_v55 = vmul.f32 %v6870_v21, %v6870_v21 }
 0x4bf   :  { %v3101_v47 = vsub.f32 %v3051_v14, %v3076_v42  ;;  %2877 = vadd.xlane.f32.xlu2 %v2876_v59  ;;  %v2326_v29 = vsub.f32 %v6472_v17, %v6833_v31 }
 0x4c0   :  { %v2595_v30 = vmul.f32 0.5, %v2594_v28  ;;  %v3203_v43 = vsub.f32 1.5, %v3202_v58  ;;  %v3001_v27 = vsel %vm121_vm0, %v2958_v55, 0.0  ;;  %v6931_v55 = vld [vmem:[%s7548_s2 + $0xb] ss:$0 sm:$0xff] }
 0x4c1   :  { %v3126_v34 = vmax.f32 %v3101_v47, 0.0  ;;  %3002 = vadd.xlane.f32.xlu0 %v3001_v27 }
 0x4c2   :  { %v2596_v15 = vsub.f32 1.5, %v2595_v30  ;;  %v3204_v11 = vmul.f32 %v4219_v33, %v3203_v43  ;;  %v2985_v56 = vpop.xlane.xlu1 %2984 }
 0x4c3   :  { %v4223_v44 = vpop.eup %4222  ;;  %v6892_v45 = vadd.f32 1e-05, %v3126_v34  ;;  %v3052_v12 = vmul.f32 %v2985_v56, %v6087_v9  ;;  %v2808_v8 = vpop.f32.mrf.mxu3 }
 0x4c4   :  { %v2597_v46 = vmul.f32 %v4221_v63, %v2596_v15  ;;  %v3208_v26 = vsel %vm6886_vm14, %v4219_v33, %v3204_v11  ;;  %v3210_v10 = vmul.f32 %v4223_v44, %v6856_v22  ;;  %v6911_v33 = vld [vmem:[%s7548_s2 + $0x9] ss:$0 sm:$0xff]  ;;  %vm3216_vm3 = vweird.f32 %v4223_v44 }
 0x4c5   :  { %4224 = vrsqrt.f32 %v6892_v45  ;;  %v3102_v4 = vsub.f32 %v3052_v12, %v3077_v52  ;;  %v3449_v5 = vmul.f32 %v3208_v26, %v3149_v6  ;;  %v6914_v17 = vadd.f32 %v6911_v33, %v2808_v8  ;;  %vm3217_vm5 = vmor %vm3215_vm4, %vm3216_vm3 }
 0x4c6   :  { %v2601_v57 = vsel %vm2600_vm2, %v4221_v63, %v2597_v46  ;;  %v3211_v14 = vmul.f32 %v4223_v44, %v3210_v10  ;;  %v3150_v12 = vsub.f32 %v6415_v1, %v6842_v24  ;;  %vm3225_vm7 = vweird.f32 %v6892_v45 }
 0x4c7   :  { %v2626_v42 = vmul.f32 %v2601_v57, %v2326_v29  ;;  %v3127_v23 = vmax.f32 %v3102_v4, 0.0  ;;  %v2879_v58 = vsel %vm121_vm0, %v6914_v17, 0.0  ;;  %v2959_v47 = vmul.f32 %v6914_v17, %v6914_v17 }
 0x4c8   :  { %v3212_v28 = vmul.f32 0.5, %v3211_v14  ;;  %2880 = vadd.xlane.f32.xlu2 %v2879_v58  ;;  %v3475_v11 = vmul.f32 %v6906_v49, %v3449_v5 }
 0x4c9   :  { %v2863_v31 = vpop.xlane.xlu2 %2862  ;;  %v2652_v30 = vmul.f32 %v6660_v61, %v2626_v42  ;;  %v6924_v43 = vadd.f32 1e-05, %v3127_v23  ;;  %v3004_v20 = vsel %vm121_vm0, %v2959_v47, 0.0 }
 0x4ca   :  { %v6917_v63 = vmul.f32 %v2863_v31, %v6087_v9  ;;  %v3213_v34 = vsub.f32 1.5, %v3212_v28  ;;  %3005 = vadd.xlane.f32.xlu0 %v3004_v20  ;;  %v3501_v22 = vadd.f32 %v6931_v55, %v3475_v11 }
 0x4cb   :  { %v2988_v15 = vpop.xlane.xlu1 %2987  ;;  %v4225_v27 = vpop.eup %4224  ;;  %4226 = vrsqrt.f32 %v6924_v43  ;;  %v2678_v56 = vadd.f32 %v6675_v39, %v2652_v30  ;;  %vm3235_vm9 = vweird.f32 %v6924_v43 }
 0x4cc   :  { %v3078_v59 = vmul.f32 %v6917_v63, %v6917_v63  ;;  %v3053_v61 = vmul.f32 %v2988_v15, %v6087_v9  ;;  %v3214_v6 = vmul.f32 %v4223_v44, %v3213_v34  ;;  %v3220_v13 = vmul.f32 %v4225_v27, %v6892_v45  ;;  %v2810_v52 = vpop.f32.mrf.mxu3 }
 0x4cd   :  { %v6943_v26 = vadd.f32 %v6911_v33, %v2810_v52  ;;  %v2703_v10 = vmax.f32 %v2678_v56, 0.0  ;;  %vm3226_vm6 = vweird.f32 %v4225_v27  ;;  %v3626_v20 = vadd.f32 %v5361_v51, %v3501_v22 }
 0x4ce   :  { %v3103_v46 = vsub.f32 %v3053_v61, %v3078_v59  ;;  %v3218_v29 = vsel %vm3217_vm5, %v4223_v44, %v3214_v6  ;;  %v3221_v4 = vmul.f32 %v4225_v27, %v3220_v13  ;;  %v3151_v13 = vsub.f32 %v6432_v25, %v6859_v32  ;;  %vm3227_vm8 = vmor %vm3225_vm7, %vm3226_vm6 }
 0x4cf   :  { %v3450_v57 = vmul.f32 %v3218_v29, %v3150_v12  ;;  %v2882_v14 = vsel %vm121_vm0, %v6943_v26, 0.0  ;;  %v2960_v1 = vmul.f32 %v6943_v26, %v6943_v26  ;;  %v2716_v31 = vpack.c.bf16 %v2703_v10, %v2703_v10 }
 0x4d0   :  { %v3128_v5 = vmax.f32 %v3103_v46, 0.0  ;;  %v3222_v24 = vmul.f32 0.5, %v3221_v4  ;;  %2883 = vadd.xlane.f32.xlu2 %v2882_v14 }
 0x4d1   :  { %v2866_v8 = vpop.xlane.xlu0 %2865  ;;  %v4227_v23 = vpop.eup %4226  ;;  %v3476_v28 = vmul.f32 %v6906_v49, %v3450_v57  ;;  %v3007_v47 = vsel %vm121_vm0, %v2960_v1, 0.0  ;;  %3996 = vmatmul.msk.bf16.gmra.mxu3 %vm121_vm0, %v2716_v31 }
 0x4d2   :  { %v6946_v39 = vmul.f32 %v2866_v8, %v6087_v9  ;;  %v3178_v58 = vadd.f32 1e-05, %v3128_v5  ;;  %v3223_v59 = vsub.f32 1.5, %v3222_v24  ;;  %v3230_v34 = vmul.f32 %v4227_v23, %v6924_v43  ;;  %3008 = vadd.xlane.f32.xlu1 %v3007_v47 }
 0x4d3   :  { %v2991_v44 = vpop.xlane.xlu2 %2990  ;;  %v3502_v15 = vadd.f32 %v6931_v55, %v3476_v28  ;;  %v3651_v8 = vmax.f32 %v3626_v20, 0.0  ;;  %vm3236_vm1 = vweird.f32 %v4227_v23  ;;  %v3153_v20 = vsub.f32 %v6644_v37, %v6917_v63 }
 0x4d4   :  { %v3079_v42 = vmul.f32 %v6946_v39, %v6946_v39  ;;  %v3054_v30 = vmul.f32 %v2991_v44, %v6087_v9  ;;  %4228 = vrsqrt.f32 %v3178_v58  ;;  %v3224_v61 = vmul.f32 %v4225_v27, %v3223_v59  ;;  %v2813_v6 = vpop.f32.mrf.mxu3  ;;  %vm3237_vm10 = vmor %vm3235_vm9, %vm3236_vm1 }
 0x4d5   :  { %v3231_v56 = vmul.f32 %v4227_v23, %v3230_v34  ;;  %v6966_v12 = vadd.f32 %v6911_v33, %v2813_v6  ;;  %v3627_v46 = vadd.f32 %v5349_v18, %v3502_v15  ;;  %v3152_v18 = vsub.f32 %v6539_v40, %v6873_v2 }
 0x4d6   :  { %v3104_v11 = vsub.f32 %v3054_v30, %v3079_v42  ;;  %v3228_v51 = vsel %vm3227_vm8, %v4225_v27, %v3224_v61  ;;  %v962_v44 = vmax.f32 %v4498_v48, 0.0  ;;  %vm3245_vm12 = vweird.f32 %v3178_v58 }
 0x4d7   :  { %v3232_v10 = vmul.f32 0.5, %v3231_v56  ;;  %v3451_v29 = vmul.f32 %v3228_v51, %v3151_v13  ;;  %v2885_v45 = vsel %vm121_vm0, %v6966_v12, 0.0  ;;  %v3652_v22 = vmax.f32 %v3627_v46, 0.0 }
 0x4d8   :  { %v3129_v52 = vmax.f32 %v3104_v11, 0.0  ;;  %2886 = vadd.xlane.f32.xlu2 %v2885_v45  ;;  %v3154_v51 = vsub.f32 %v6670_v36, %v6946_v39 }
 0x4d9   :  { %v3233_v57 = vsub.f32 1.5, %v3232_v10  ;;  %v3676_v25 = vpack.c.bf16 %v3652_v22, %v3651_v8  ;;  %v3477_v27 = vmul.f32 %v6906_v49, %v3451_v29 }
 0x4da   :  { %v3179_v4 = vadd.f32 1e-05, %v3129_v52  ;;  %v4229_v5 = vpop.eup %4228  ;;  %v963_v52 = vmax.f32 %v4556_v35, 0.0 }
 0x4db   :  { %v3234_v32 = vmul.f32 %v4227_v23, %v3233_v57  ;;  %v3240_v14 = vmul.f32 %v4229_v5, %v3178_v58  ;;  %4005 = vmatmul.msk.bf16.vlgmr.msrb.gmra.mxu0 %vm121_vm0, %v3676_v25  ;;  %v3503_v40 = vadd.f32 %v6931_v55, %v3477_v27  ;;  %vm3246_vm11 = vweird.f32 %v4229_v5  ;;  %v7632_v27 = vld [vmem:[#allocation11_spill] sm:$0xff] }
 0x4dc   :  { %4230 = vrsqrt.f32 %v3179_v4  ;;  %v6976_v31 = vpop.f32.mrf.mxu3  ;;  %vm3247_vm13 = vmor %vm3245_vm12, %vm3246_vm11  ;;  %vm3255_vm15 = vweird.f32 %v3179_v4 }
 0x4dd   :  { %v3238_v1 = vsel %vm3237_vm10, %v4227_v23, %v3234_v32  ;;  %v3241_v24 = vmul.f32 %v4229_v5, %v3240_v14  ;;  %v3628_v48 = vadd.f32 %v5383_v62, %v3503_v40 }
 0x4de   :  { %v3452_v42 = vmul.f32 %v3238_v1, %v3152_v18  ;;  %3583 = vrot.lane.b32.xlu0 %v962_v44, %s4282_s24 }
 0x4df   :  { %v3242_v28 = vmul.f32 0.5, %v3241_v24  ;;  %v3653_v62 = vmax.f32 %v3628_v48, 0.0 }
 0x4e0   :  { %v3478_v43 = vmul.f32 %v6906_v49, %v3452_v42 }
 0x4e1   :  { %v3243_v2 = vsub.f32 1.5, %v3242_v28 }
 0x4e2   :  { %v4231_v47 = vpop.eup %4230  ;;  %v3504_v59 = vadd.f32 %v6931_v55, %v3478_v43 }
 0x4e3   :  { %v3250_v30 = vmul.f32 %v4231_v47, %v3179_v4  ;;  %v3244_v23 = vmul.f32 %v4229_v5, %v3243_v2  ;;  %vm3256_vm14 = vweird.f32 %v4231_v47 }
 0x4e4   :  { %v3629_v15 = vadd.f32 %v5358_v60, %v3504_v59  ;;  %v2818_v56 = vpop.f32.mrf.mxu3  ;;  %v961_v60 = vmax.f32 %v4487_v38, 0.0  ;;  %vm3257_vm2 = vmor %vm3255_vm15, %vm3256_vm14 }
 0x4e5   :  { %v3251_v34 = vmul.f32 %v4231_v47, %v3250_v30  ;;  %v3248_v11 = vsel %vm3247_vm13, %v4229_v5, %v3244_v23  ;;  %v6988_v13 = vadd.f32 %v6911_v33, %v2818_v56 }
 0x4e6   :  { %v3453_v6 = vmul.f32 %v3248_v11, %v3153_v20  ;;  %v3654_v46 = vmax.f32 %v3629_v15, 0.0  ;;  %3585 = vrot.lane.b32.xlu0 %v963_v52, %s4282_s24 }
 0x4e7   :  { %v3252_v61 = vmul.f32 0.5, %v3251_v34  ;;  %v2963_v37 = vmul.f32 %v6988_v13, %v6988_v13 }
 0x4e8   :  { %v2869_v10 = vpop.xlane.xlu2 %2868  ;;  %v3677_v8 = vpack.c.bf16 %v3654_v46, %v3653_v62  ;;  %v3479_v29 = vmul.f32 %v6906_v49, %v3453_v6 }
 0x4e9   :  { %v3253_v58 = vsub.f32 1.5, %v3252_v61  ;;  %v3016_v35 = vsel %vm121_vm0, %v2963_v37, 0.0  ;;  %v2930_v57 = vmul.f32 %v2869_v10, %v6087_v9 }
 0x4ea   :  { %3017 = vadd.xlane.f32.xlu2 %v3016_v35  ;;  %v3505_v39 = vadd.f32 %v6931_v55, %v3479_v29 }
 0x4eb   :  { %v3254_v63 = vmul.f32 %v4231_v47, %v3253_v58  ;;  %3581 = vrot.lane.b32.xlu1 %v961_v60, %s4282_s24  ;;  %4006 = vmatmul.msk.bf16.gmra.mxu0 %vm121_vm0, %v3677_v8  ;;  %v3080_v24 = vmul.f32 %v2930_v57, %v2930_v57  ;;  %v7026_v8 = vadd.f32 %v6911_v33, %v6976_v31 }
 0x4ec   :  { %v2820_v4 = vpop.f32.mrf.mxu3  ;;  %v3630_v18 = vadd.f32 %v5369_v54, %v3505_v39  ;;  %v3155_v29 = vsub.f32 %v6773_v19, %v2930_v57  ;;  %v2961_v31 = vmul.f32 %v6966_v12, %v6966_v12 }
 0x4ed   :  { %v3258_v45 = vsel %vm3257_vm2, %v4231_v47, %v3254_v63  ;;  %v7002_v38 = vadd.f32 %v6911_v33, %v2820_v4 }
 0x4ee   :  { %v3454_v22 = vmul.f32 %v3258_v45, %v3154_v51  ;;  %v3655_v43 = vmax.f32 %v3630_v18, 0.0 }
 0x4ef   :  { %v2964_v5 = vmul.f32 %v7002_v38, %v7002_v38 }
 0x4f0   :  { %v3480_v36 = vmul.f32 %v6906_v49, %v3454_v22  ;;  %v2994_v32 = vpop.xlane.xlu2 %2993 }
 0x4f1   :  { %v3019_v14 = vsel %vm121_vm0, %v2964_v5, 0.0  ;;  %v3055_v42 = vmul.f32 %v2994_v32, %v6087_v9 }
 0x4f2   :  { %v3506_v25 = vadd.f32 %v6931_v55, %v3480_v36  ;;  %3020 = vadd.xlane.f32.xlu2 %v3019_v14  ;;  %v2997_v59 = vpop.xlane.xlu0 %2996 }
 0x4f3   :  { %v3105_v28 = vsub.f32 %v3055_v42, %v3080_v24  ;;  %v3056_v54 = vmul.f32 %v2997_v59, %v6087_v9  ;;  %v2962_v24 = vmul.f32 %v7026_v8, %v7026_v8 }
 0x4f4   :  { %v3631_v1 = vadd.f32 %v7632_v27, %v3506_v25  ;;  %v7014_v47 = vpop.f32.mrf.mxu3  ;;  %v2888_v25 = vsel %vm121_vm0, %v7026_v8, 0.0 }
 0x4f5   :  { %v3130_v40 = vmax.f32 %v3105_v28, 0.0 }
 0x4f6   :  { %v3656_v44 = vmax.f32 %v3631_v1, 0.0  ;;  %v3010_v1 = vsel %vm121_vm0, %v2961_v31, 0.0 }
 0x4f7   :  { %v3180_v30 = vadd.f32 1e-05, %v3130_v40 }
 0x4f8   :  { %v3678_v2 = vpack.c.bf16 %v3656_v44, %v3655_v43  ;;  %v2872_v23 = vpop.xlane.xlu2 %2871 }
 0x4f9   :  { %4232 = vrsqrt.f32 %v3180_v30  ;;  %v2931_v34 = vmul.f32 %v2872_v23, %v6087_v9  ;;  %vm3265_vm4 = vweird.f32 %v3180_v30 }
 0x4fb   :  { %4007 = vmatmul.msk.bf16.gmra.mxu0 %vm121_vm0, %v3678_v2  ;;  %v3081_v20 = vmul.f32 %v2931_v34, %v2931_v34  ;;  %v3156_v18 = vsub.f32 %v6791_v7, %v2931_v34  ;;  %v3013_v2 = vsel %vm121_vm0, %v2962_v24, 0.0 }
 0x4fc   :  { %v2825_v48 = vpop.f32.mrf.mxu3 }
 0x4fd   :  { %v7020_v15 = vadd.f32 %v6911_v33, %v2825_v48  ;;  %v3106_v11 = vsub.f32 %v3056_v54, %v3081_v20  ;;  %v2891_v54 = vsel %vm121_vm0, %v6988_v13, 0.0  ;;  %v7634_v20 = vld [vmem:[#allocation12_spill] sm:$0xff] }
 0x4ff   :  { %v2900_v61 = vsel %vm121_vm0, %v7020_v15, 0.0  ;;  %v4233_v56 = vpop.eup %4232  ;;  %v3131_v6 = vmax.f32 %v3106_v11, 0.0  ;;  %v2966_v24 = vmul.f32 %v7020_v15, %v7020_v15 }
 0x500   :  { %2901 = vadd.xlane.f32.xlu2 %v2900_v61  ;;  %v3260_v52 = vmul.f32 %v4233_v56, %v3180_v30  ;;  %vm3266_vm3 = vweird.f32 %v4233_v56  ;;  %v7633_v30 = vld [vmem:[#allocation10_spill] sm:$0xff] }
 0x501   :  { %v3181_v46 = vadd.f32 1e-05, %v3131_v6  ;;  %vm3267_vm5 = vmor %vm3265_vm4, %vm3266_vm3  ;;  %vm3819_vm3 = vcmask 7168  }
 0x502   :  { %v3261_v58 = vmul.f32 %v4233_v56, %v3260_v52  ;;  %v2894_v52 = vsel %vm121_vm0, %v7002_v38, 0.0 }
 0x503   :  { %4234 = vrsqrt.f32 %v3181_v46  ;;  %vm3275_vm7 = vweird.f32 %v3181_v46 }
 0x504   :  { %v2828_v37 = vpop.f32.mrf.mxu3  ;;  %v3262_v62 = vmul.f32 0.5, %v3261_v58  ;;  %v7067_v58 = vadd.f32 %v6911_v33, %v7014_v47 }
 0x505   :  { %v7060_v6 = vadd.f32 %v6911_v33, %v2828_v37 }
 0x506   :  { %v3263_v63 = vsub.f32 1.5, %v3262_v62 }
 0x507   :  { %v2903_v37 = vsel %vm121_vm0, %v7060_v6, 0.0 }
 0x508   :  { %v3264_v60 = vmul.f32 %v4233_v56, %v3263_v63 }
 0x509   :  { %v4235_v51 = vpop.eup %4234 }
 0x50a   :  { %v3268_v10 = vsel %vm3267_vm5, %v4233_v56, %v3264_v60  ;;  %v3270_v35 = vmul.f32 %v4235_v51, %v3181_v46  ;;  %vm3276_vm6 = vweird.f32 %v4235_v51 }
 0x50b   :  { %v3455_v36 = vmul.f32 %v3268_v10, %v3155_v29  ;;  %vm3277_vm8 = vmor %vm3275_vm7, %vm3276_vm6  ;;  %v2897_v10 = vsel %vm121_vm0, %v7067_v58, 0.0 }
 0x50c   :  { %v2830_v45 = vpop.f32.mrf.mxu3  ;;  %v3271_v22 = vmul.f32 %v4235_v51, %v3270_v35 }
 0x50d   :  { %v7030_v4 = vadd.f32 %v6911_v33, %v2830_v45  ;;  %v3481_v19 = vmul.f32 %v6906_v49, %v3455_v36  ;;  %v2965_v36 = vmul.f32 %v7067_v58, %v7067_v58 }
 0x50e   :  { %v3272_v39 = vmul.f32 0.5, %v3271_v22 }
 0x50f   :  { %v2906_v5 = vsel %vm121_vm0, %v7030_v4, 0.0  ;;  %v2968_v14 = vmul.f32 %v7030_v4, %v7030_v4  ;;  %v3507_v28 = vadd.f32 %v6931_v55, %v3481_v19 }
 0x510   :  { %2907 = vadd.xlane.f32.xlu2 %v2906_v5  ;;  %v3273_v32 = vsub.f32 1.5, %v3272_v39  ;;  %2889 = vadd.xlane.f32.xlu0 %v2888_v25 }
 0x511   :  { %v3031_v43 = vsel %vm121_vm0, %v2968_v14, 0.0  ;;  %v3632_v59 = vadd.f32 %v7633_v30, %v3507_v28 }
 0x512   :  { %v3274_v57 = vmul.f32 %v4235_v51, %v3273_v32 }
 0x513   :  { %v3657_v11 = vmax.f32 %v3632_v59, 0.0 }
 0x514   :  { %v2833_v27 = vpop.f32.mrf.mxu3  ;;  %v3278_v42 = vsel %vm3277_vm8, %v4235_v51, %v3274_v57  ;;  %v3022_v57 = vsel %vm121_vm0, %v2965_v36, 0.0 }
 0x515   :  { %3011 = vadd.xlane.f32.xlu1 %v3010_v1  ;;  %v3456_v44 = vmul.f32 %v3278_v42, %v3156_v18  ;;  %v7052_v23 = vadd.f32 %v6911_v33, %v2833_v27 }
 0x517   :  { %v3482_v40 = vmul.f32 %v6906_v49, %v3456_v44  ;;  %v2909_v56 = vsel %vm121_vm0, %v7052_v23, 0.0  ;;  %v2969_v36 = vmul.f32 %v7052_v23, %v7052_v23 }
 0x518   :  { %3032 = vadd.xlane.f32.xlu2 %v3031_v43  ;;  %3014 = vadd.xlane.f32.xlu0 %v3013_v2 }
 0x519   :  { %v3508_v7 = vadd.f32 %v6931_v55, %v3482_v40 }
 0x51b   :  { %v3633_v48 = vadd.f32 %v7634_v20, %v3508_v7  ;;  %v3025_v7 = vsel %vm121_vm0, %v2966_v24, 0.0 }
 0x51c   :  { %v2835_v34 = vpop.f32.mrf.mxu3 }
 0x51d   :  { %2892 = vadd.xlane.f32.xlu1 %v2891_v54  ;;  %v3658_v61 = vmax.f32 %v3633_v48, 0.0  ;;  %v7070_v62 = vadd.f32 %v6911_v33, %v2835_v34  ;;  %v2967_v54 = vmul.f32 %v7060_v6, %v7060_v6 }
 0x51f   :  { %v3679_v46 = vpack.c.bf16 %v3658_v61, %v3657_v11  ;;  %v2970_v47 = vmul.f32 %v7070_v62, %v7070_v62 }
 0x520   :  { %2910 = vadd.xlane.f32.xlu2 %v2909_v56  ;;  %2895 = vadd.xlane.f32.xlu0 %v2894_v52 }
 0x521   :  { %4008 = vmatmul.msk.bf16.gmra.mxu0 %vm121_vm0, %v3679_v46  ;;  %v3037_v22 = vsel %vm121_vm0, %v2970_v47, 0.0 }
 0x524   :  { %v2838_v63 = vpop.f32.mrf.mxu3 }
 0x525   :  { %v7075_v60 = vadd.f32 %v6911_v33, %v2838_v63  ;;  %2904 = vadd.xlane.f32.xlu1 %v2903_v37  ;;  %v3028_v37 = vsel %vm121_vm0, %v2967_v54, 0.0 }
 0x527   :  { %v2915_v51 = vsel %vm121_vm0, %v7075_v60, 0.0  ;;  %v2971_v35 = vmul.f32 %v7075_v60, %v7075_v60 }
 0x528   :  { %2916 = vadd.xlane.f32.xlu2 %v2915_v51  ;;  %2898 = vadd.xlane.f32.xlu0 %v2897_v10 }
 0x529   :  { %v3040_v19 = vsel %vm121_vm0, %v2971_v35, 0.0 }
 0x52a   :  { %v2875_v29 = vpop.xlane.xlu1 %2874 }
 0x52b   :  { %v7089_v39 = vmul.f32 %v2875_v29, %v6087_v9 }
 0x52c   :  { %v2840_v45 = vpop.f32.mrf.mxu3  ;;  %v3000_v5 = vpop.xlane.xlu0 %2999 }
 0x52d   :  { %3038 = vadd.xlane.f32.xlu1 %v3037_v22  ;;  %v3082_v25 = vmul.f32 %v7089_v39, %v7089_v39  ;;  %v7094_v31 = vadd.f32 %v6911_v33, %v2840_v45  ;;  %v3057_v32 = vmul.f32 %v3000_v5, %v6087_v9  ;;  %v7635_v45 = vld [vmem:[#allocation3_spill] sm:$0xff] }
 0x52e   :  { %v964_v22 = vmax.f32 %v7635_v45, 0.0 }
 0x52f   :  { %v3107_v14 = vsub.f32 %v3057_v32, %v3082_v25  ;;  %v2972_v27 = vmul.f32 %v7094_v31, %v7094_v31 }
 0x530   :  { %3041 = vadd.xlane.f32.xlu2 %v3040_v19  ;;  %3023 = vadd.xlane.f32.xlu0 %v3022_v57 }
 0x531   :  { %v3132_v18 = vmax.f32 %v3107_v14, 0.0  ;;  %v3043_v40 = vsel %vm121_vm0, %v2972_v27, 0.0  ;;  %v3157_v27 = vsub.f32 %v6849_v16, %v7089_v39 }
 0x532   :  { %v2878_v1 = vpop.xlane.xlu2 %2877 }
 0x533   :  { %v3182_v42 = vadd.f32 1e-05, %v3132_v18  ;;  %v7104_v44 = vmul.f32 %v2878_v1, %v6087_v9 }
 0x534   :  { %v3003_v28 = vpop.xlane.xlu0 %3002 }
 0x535   :  { %4236 = vrsqrt.f32 %v3182_v42  ;;  %v3083_v43 = vmul.f32 %v7104_v44, %v7104_v44  ;;  %v3058_v2 = vmul.f32 %v3003_v28, %v6087_v9  ;;  %vm3285_vm9 = vweird.f32 %v3182_v42 }
 0x536   :  { %v3034_v28 = vsel %vm121_vm0, %v2969_v36, 0.0 }
 0x537   :  { %v3108_v30 = vsub.f32 %v3058_v2, %v3083_v43 }
 0x538   :  { %3044 = vadd.xlane.f32.xlu2 %v3043_v40  ;;  %3026 = vadd.xlane.f32.xlu0 %v3025_v7 }
 0x539   :  { %v3133_v59 = vmax.f32 %v3108_v30, 0.0 }
 0x53b   :  { %v2881_v34 = vpop.xlane.xlu2 %2880  ;;  %v4237_v20 = vpop.eup %4236  ;;  %v3183_v61 = vadd.f32 1e-05, %v3133_v59 }
 0x53c   :  { %v7114_v48 = vmul.f32 %v2881_v34, %v6087_v9  ;;  %v3280_v11 = vmul.f32 %v4237_v20, %v3182_v42  ;;  %vm3286_vm1 = vweird.f32 %v4237_v20 }
 0x53d   :  { %v3006_v56 = vpop.xlane.xlu0 %3005  ;;  %4238 = vrsqrt.f32 %v3183_v61  ;;  %vm3287_vm10 = vmor %vm3285_vm9, %vm3286_vm1  ;;  %vm3295_vm12 = vweird.f32 %v3183_v61 }
 0x53e   :  { %v3084_v52 = vmul.f32 %v7114_v48, %v7114_v48  ;;  %v3059_v46 = vmul.f32 %v3006_v56, %v6087_v9  ;;  %v3281_v63 = vmul.f32 %v4237_v20, %v3280_v11  ;;  %v7636_v11 = vld [vmem:[#allocation4_spill] sm:$0xff] }
 0x53f   :  { %v965_v56 = vmax.f32 %v7636_v11, 0.0 }
 0x540   :  { %v3109_v51 = vsub.f32 %v3059_v46, %v3084_v52  ;;  %3029 = vadd.xlane.f32.xlu0 %v3028_v37  ;;  %v3282_v10 = vmul.f32 0.5, %v3281_v63  ;;  %v2912_v46 = vsel %vm121_vm0, %v7070_v62, 0.0 }
 0x542   :  { %v3134_v47 = vmax.f32 %v3109_v51, 0.0  ;;  %v3283_v35 = vsub.f32 1.5, %v3282_v10 }
 0x543   :  { %v2884_v29 = vpop.xlane.xlu2 %2883  ;;  %v4239_v19 = vpop.eup %4238 }
 0x544   :  { %v3184_v5 = vadd.f32 1e-05, %v3134_v47  ;;  %v7124_v25 = vmul.f32 %v2884_v29, %v6087_v9  ;;  %v3284_v57 = vmul.f32 %v4237_v20, %v3283_v35  ;;  %v3290_v18 = vmul.f32 %v4239_v19, %v3183_v61 }
 0x545   :  { %v3009_v32 = vpop.xlane.xlu1 %3008  ;;  %vm3296_vm11 = vweird.f32 %v4239_v19 }
 0x546   :  { %v3060_v14 = vmul.f32 %v3009_v32, %v6087_v9  ;;  %3587 = vrot.lane.b32.xlu1 %v964_v22, %s4282_s24  ;;  %4240 = vrsqrt.f32 %v3184_v5  ;;  %v3288_v1 = vsel %vm3287_vm10, %v4237_v20, %v3284_v57  ;;  %v3085_v24 = vmul.f32 %v7124_v25, %v7124_v25  ;;  %vm3297_vm13 = vmor %vm3295_vm12, %vm3296_vm11  ;;  %v7637_v22 = vld [vmem:[#allocation13_spill] sm:$0xff] }
 0x547   :  { %v3291_v43 = vmul.f32 %v4239_v19, %v3290_v18  ;;  %v3457_v40 = vmul.f32 %v3288_v1, %v3157_v27  ;;  %v3158_v20 = vsub.f32 %v6870_v21, %v7104_v44  ;;  %v7145_v21 = vld [vmem:[%s7548_s2 + $0xc] ss:$0 sm:$0xff]  ;;  %vm3305_vm15 = vweird.f32 %v3184_v5 }
 0x548   :  { %3035 = vadd.xlane.f32.xlu0 %v3034_v28  ;;  %v3110_v42 = vsub.f32 %v3060_v14, %v3085_v24  ;;  %v3159_v57 = vsub.f32 %v6914_v17, %v7114_v48 }
 0x549   :  { %v3292_v2 = vmul.f32 0.5, %v3291_v43  ;;  %v3483_v16 = vmul.f32 %v6906_v49, %v3457_v40 }
 0x54a   :  { %v3135_v7 = vmax.f32 %v3110_v42, 0.0 }
 0x54b   :  { %v3293_v59 = vsub.f32 1.5, %v3292_v2  ;;  %v3509_v10 = vadd.f32 %v6931_v55, %v3483_v16 }
 0x54c   :  { %v4241_v30 = vpop.eup %4240  ;;  %v3185_v54 = vadd.f32 1e-05, %v3135_v7  ;;  %v3160_v7 = vsub.f32 %v6943_v26, %v7124_v25 }
 0x54d   :  { %v3300_v34 = vmul.f32 %v4241_v30, %v3184_v5  ;;  %v3294_v39 = vmul.f32 %v4239_v19, %v3293_v59  ;;  %vm3306_vm14 = vweird.f32 %v4241_v30  ;;  %v3634_v36 = vadd.f32 %v7637_v22, %v3509_v10 }
 0x54e   :  { %4242 = vrsqrt.f32 %v3185_v54  ;;  %vm3307_vm2 = vmor %vm3305_vm15, %vm3306_vm14  ;;  %vm3315_vm5 = vweird.f32 %v3185_v54 }
 0x54f   :  { %v3301_v52 = vmul.f32 %v4241_v30, %v3300_v34  ;;  %v3298_v63 = vsel %vm3297_vm13, %v4239_v19, %v3294_v39  ;;  %v2918_v19 = vsel %vm121_vm0, %v7094_v31, 0.0  ;;  %v3659_v28 = vmax.f32 %v3634_v36, 0.0 }
 0x550   :  { %3589 = vrot.lane.b32.xlu2 %v965_v56, %s4282_s24  ;;  %2913 = vadd.xlane.f32.xlu0 %v2912_v46  ;;  %v3458_v37 = vmul.f32 %v3298_v63, %v3158_v20 }
 0x551   :  { %v3302_v51 = vmul.f32 0.5, %v3301_v52 }
 0x552   :  { %v3484_v61 = vmul.f32 %v6906_v49, %v3458_v37  ;;  %v7638_v37 = vld [vmem:[#allocation5_spill] sm:$0xff] }
 0x553   :  { %v3303_v47 = vsub.f32 1.5, %v3302_v51  ;;  %v966_v51 = vmax.f32 %v7638_v37, 0.0 }
 0x554   :  { %v2843_v35 = vpop.f32.mrf.mxu3  ;;  %v4243_v44 = vpop.eup %4242  ;;  %v3510_v45 = vadd.f32 %v6931_v55, %v3484_v61 }
 0x555   :  { %v3304_v29 = vmul.f32 %v4241_v30, %v3303_v47  ;;  %v3310_v32 = vmul.f32 %v4243_v44, %v3185_v54  ;;  %vm3316_vm4 = vweird.f32 %v4243_v44  ;;  %v7175_v63 = vadd.f32 %v6911_v33, %v2843_v35  ;;  %v7187_v61 = vpop.permute.xlu0 %3583  ;;  %v7639_v35 = vld [vmem:[#allocation6_spill] sm:$0xff] }
 0x556   :  { %v3635_v27 = vadd.f32 %v5993_v53, %v3510_v45  ;;  %vm3317_vm6 = vmor %vm3315_vm5, %vm3316_vm4 }
 0x557   :  { %v3308_v14 = vsel %vm3307_vm2, %v4241_v30, %v3304_v29  ;;  %v3311_v1 = vmul.f32 %v4243_v44, %v3310_v32  ;;  %v2973_v29 = vmul.f32 %v7175_v63, %v7175_v63 }
 0x558   :  { %v3755_v18 = vpop.f32.mrf.mxu0  ;;  %2919 = vadd.xlane.f32.xlu0 %v2918_v19  ;;  %v3459_v24 = vmul.f32 %v3308_v14, %v3159_v57  ;;  %v3660_v43 = vmax.f32 %v3635_v27, 0.0  ;;  %v7640_v19 = vld [vmem:[#allocation7_spill] sm:$0xff] }
 0x559   :  { %v3756_v5 = vadd.f32 %v7145_v21, %v3755_v18  ;;  %v3312_v40 = vmul.f32 0.5, %v3311_v1  ;;  %v3046_v22 = vsel %vm121_vm0, %v2973_v29, 0.0  ;;  %v968_v57 = vmax.f32 %v7640_v19, 0.0 }
 0x55a   :  { %v3680_v42 = vpack.c.bf16 %v3660_v43, %v3659_v28  ;;  %v3485_v53 = vmul.f32 %v6906_v49, %v3459_v24  ;;  %v7641_v24 = vld [vmem:[#allocation8_spill] sm:$0xff] }
 0x55b   :  { %3820 = vst.msk [vmem:[%s7549_s3] sm:$0xff] %vm3819_vm3, %v3756_v5  ;;  %v3313_v17 = vsub.f32 1.5, %v3312_v40  ;;  %v969_v28 = vmax.f32 %v7641_v24, 0.0 }
 0x55c   :  { %4009 = vmatmul.msk.bf16.gmra.mxu0 %vm121_vm0, %v3680_v42  ;;  %v2845_v48 = vpop.f32.mrf.mxu3  ;;  %v3511_v56 = vadd.f32 %v6931_v55, %v3485_v53  ;;  %v7642_v42 = vld [vmem:[#allocation9_spill] sm:$0xff] }
 0x55d   :  { %v3314_v2 = vmul.f32 %v4243_v44, %v3313_v17  ;;  %v7204_v14 = vpop.permute.xlu0 %3585  ;;  %v7207_v18 = vpop.permute.xlu1 %3581  ;;  %v970_v17 = vmax.f32 %v7642_v42, 0.0 }
 0x55e   :  { %v3636_v39 = vadd.f32 %v6266_v41, %v3511_v56  ;;  %v2887_v41 = vpop.xlane.xlu2 %2886 }
 0x55f   :  { %v3318_v59 = vsel %vm3317_vm6, %v4243_v44, %v3314_v2  ;;  %v967_v44 = vmax.f32 %v7639_v35, 0.0  ;;  %v7216_v40 = vmul.f32 %v2887_v41, %v6087_v9 }
 0x560   :  { %v3757_v30 = vpop.f32.mrf.mxu0  ;;  %v3460_v11 = vmul.f32 %v3318_v59, %v3160_v7  ;;  %v3661_v52 = vmax.f32 %v3636_v39, 0.0 }
 0x561   :  { %v3758_v34 = vadd.f32 %v7145_v21, %v3757_v30  ;;  %v3086_v2 = vmul.f32 %v7216_v40, %v7216_v40 }
 0x562   :  { %v3486_v16 = vmul.f32 %v6906_v49, %v3460_v11 }
 0x563   :  { %3821 = vst.msk [vmem:[%s7549_s3 + $0x8] sm:$0xff] %vm3819_vm3, %v3758_v34 }
 0x564   :  { %v3512_v54 = vadd.f32 %v6931_v55, %v3486_v16 }
 0x566   :  { %v3637_v25 = vadd.f32 %v6410_v50, %v3512_v54  ;;  %v2921_v50 = vsel %vm121_vm0, %v7175_v63, 0.0  ;;  %v3018_v45 = vpop.xlane.xlu2 %3017 }
 0x568   :  { %v3760_v26 = vpop.f32.mrf.mxu0  ;;  %v3662_v46 = vmax.f32 %v3637_v25, 0.0 }
 0x569   :  { %v3761_v20 = vadd.f32 %v7145_v21, %v3760_v26 }
 0x56a   :  { %v3681_v10 = vpack.c.bf16 %v3662_v46, %v3661_v52  ;;  %v3063_v46 = vmul.f32 %v3018_v45, %v6087_v9 }
 0x56b   :  { %3822 = vst.msk [vmem:[%s7549_s3 + $0x10] sm:$0xff] %vm3819_vm3, %v3761_v20 }
 0x56c   :  { %3591 = vrot.lane.b32.xlu0 %v966_v51, %s4282_s24  ;;  %4010 = vmatmul.msk.bf16.gmra.mxu0 %vm121_vm0, %v3681_v10 }
 0x56e   :  { %v3021_v27 = vpop.xlane.xlu2 %3020 }
 0x570   :  { %2922 = vadd.xlane.f32.xlu1 %v2921_v50  ;;  %v3762_v47 = vpop.f32.mrf.mxu0 }
 0x571   :  { %v3763_v33 = vadd.f32 %v7145_v21, %v3762_v47 }
 0x573   :  { %3823 = vst.msk [vmem:[%s7549_s3 + $0x18] sm:$0xff] %vm3819_vm3, %v3763_v33  ;;  %v3064_v33 = vmul.f32 %v3021_v27, %v6087_v9 }
 0x574   :  { %3593 = vrot.lane.b32.xlu0 %v967_v44, %s4282_s24 }
 0x576   :  { %v7220_v48 = vpop.xlane.xlu2 %2901 }
 0x578   :  { %v3765_v36 = vpop.f32.mrf.mxu0 }
 0x579   :  { %3047 = vadd.xlane.f32.xlu2 %v3046_v22  ;;  %v3766_v32 = vadd.f32 %v7145_v21, %v3765_v36 }
 0x57b   :  { %3824 = vst.msk [vmem:[%s7549_s3 + $0x20] sm:$0xff] %vm3819_vm3, %v3766_v32 }
 0x57c   :  { %3595 = vrot.lane.b32.xlu0 %v968_v57, %s4282_s24 }
 0x580   :  { %v3767_v1 = vpop.f32.mrf.mxu0 }
 0x581   :  { %v3768_v5 = vadd.f32 %v7145_v21, %v3767_v1 }
 0x583   :  { %3825 = vst.msk [vmem:[%s7549_s3 + $0x28] sm:$0xff] %vm3819_vm3, %v3768_v5  ;;  %v2890_v43 = vpop.xlane.xlu0 %2889  ;;  %v2908_v26 = vpop.xlane.xlu2 %2907 }
 0x584   :  { %3597 = vrot.lane.b32.xlu0 %v969_v28, %s4282_s24  ;;  %v7225_v7 = vmul.f32 %v2890_v43, %v6087_v9  ;;  %v7247_v57 = vmul.f32 %v2908_v26, %v6087_v9 }
 0x586   :  { %v3087_v11 = vmul.f32 %v7225_v7, %v7225_v7 }
 0x588   :  { %v3012_v53 = vpop.xlane.xlu1 %3011 }
 0x589   :  { %v3061_v30 = vmul.f32 %v3012_v53, %v6087_v9  ;;  %3599 = vrot.lane.b32.xlu1 %v970_v17, %s4282_s24  ;;  %v3093_v53 = vmul.f32 %v7247_v57, %v7247_v57 }
 0x58b   :  { %v3111_v59 = vsub.f32 %v3061_v30, %v3086_v2  ;;  %v3015_v34 = vpop.xlane.xlu0 %3014  ;;  %v3033_v32 = vpop.xlane.xlu2 %3032 }
 0x58c   :  { %v3062_v16 = vmul.f32 %v3015_v34, %v6087_v9  ;;  %v3068_v28 = vmul.f32 %v3033_v32, %v6087_v9 }
 0x58d   :  { %v3136_v56 = vmax.f32 %v3111_v59, 0.0 }
 0x58e   :  { %v3112_v39 = vsub.f32 %v3062_v16, %v3087_v11  ;;  %v3161_v11 = vsub.f32 %v6966_v12, %v7216_v40 }
 0x58f   :  { %v3186_v54 = vadd.f32 1e-05, %v3136_v56  ;;  %v3118_v56 = vsub.f32 %v3068_v28, %v3093_v53 }
 0x590   :  { %v2893_v25 = vpop.xlane.xlu1 %2892  ;;  %v3137_v20 = vmax.f32 %v3112_v39, 0.0 }
 0x591   :  { %4244 = vrsqrt.f32 %v3186_v54  ;;  %v7233_v52 = vmul.f32 %v2893_v25, %v6087_v9  ;;  %vm3325_vm8 = vweird.f32 %v3186_v54 }
 0x592   :  { %v3187_v37 = vadd.f32 1e-05, %v3137_v20 }
 0x593   :  { %v3088_v51 = vmul.f32 %v7233_v52, %v7233_v52  ;;  %v2896_v10 = vpop.xlane.xlu0 %2895 }
 0x594   :  { %4246 = vrsqrt.f32 %v3187_v37  ;;  %v7239_v50 = vmul.f32 %v2896_v10, %v6087_v9  ;;  %vm3335_vm10 = vweird.f32 %v3187_v37 }
 0x595   :  { %v3113_v41 = vsub.f32 %v3063_v46, %v3088_v51  ;;  %v3162_v51 = vsub.f32 %v7026_v8, %v7225_v7 }
 0x596   :  { %v3089_v44 = vmul.f32 %v7239_v50, %v7239_v50 }
 0x597   :  { %v4245_v47 = vpop.eup %4244  ;;  %v3138_v35 = vmax.f32 %v3113_v41, 0.0 }
 0x598   :  { %v3320_v29 = vmul.f32 %v4245_v47, %v3186_v54  ;;  %v3114_v45 = vsub.f32 %v3064_v33, %v3089_v44  ;;  %vm3326_vm7 = vweird.f32 %v4245_v47 }
 0x599   :  { %v7244_v22 = vadd.f32 1e-05, %v3138_v35  ;;  %vm3327_vm1 = vmor %vm3325_vm8, %vm3326_vm7  ;;  %v3143_v35 = vmax.f32 %v3118_v56, 0.0 }
 0x59a   :  { %v3321_v36 = vmul.f32 %v4245_v47, %v3320_v29  ;;  %v4247_v19 = vpop.eup %4246  ;;  %v3139_v24 = vmax.f32 %v3114_v45, 0.0 }
 0x59b   :  { %4248 = vrsqrt.f32 %v7244_v22  ;;  %v3330_v5 = vmul.f32 %v4247_v19, %v3187_v37  ;;  %v2899_v27 = vpop.xlane.xlu0 %2898  ;;  %vm3336_vm9 = vweird.f32 %v4247_v19  ;;  %v7291_v28 = vadd.f32 1e-05, %v3143_v35 }
 0x59c   :  { %v3322_v1 = vmul.f32 0.5, %v3321_v36  ;;  %v7251_v17 = vadd.f32 1e-05, %v3139_v24  ;;  %v7261_v16 = vmul.f32 %v2899_v27, %v6087_v9  ;;  %vm3337_vm11 = vmor %vm3335_vm10, %vm3336_vm9  ;;  %v7289_v27 = vmul.f32 %v7220_v48, %v6087_v9 }
 0x59d   :  { %v3331_v42 = vmul.f32 %v4247_v19, %v3330_v5  ;;  %vm3345_vm13 = vweird.f32 %v7244_v22 }
 0x59e   :  { %v3323_v43 = vsub.f32 1.5, %v3322_v1  ;;  %v3770_v2 = vpop.f32.mrf.mxu0  ;;  %4250 = vrsqrt.f32 %v7251_v17  ;;  %v3090_v10 = vmul.f32 %v7261_v16, %v7261_v16  ;;  %vm3355_vm2 = vweird.f32 %v7251_v17 }
 0x59f   :  { %v3332_v59 = vmul.f32 0.5, %v3331_v42  ;;  %v3771_v39 = vadd.f32 %v7145_v21, %v3770_v2  ;;  %v2911_v42 = vpop.xlane.xlu2 %2910 }
 0x5a0   :  { %v3324_v30 = vmul.f32 %v4245_v47, %v3323_v43 }
 0x5a1   :  { %v7256_v34 = vpop.eup %4248  ;;  %v3333_v25 = vsub.f32 1.5, %v3332_v59  ;;  %3826 = vst.msk [vmem:[%s7549_s3 + $0x30] sm:$0xff] %vm3819_vm3, %v3771_v39 }
 0x5a2   :  { %v3328_v26 = vsel %vm3327_vm1, %v4245_v47, %v3324_v30  ;;  %v3340_v54 = vmul.f32 %v7256_v34, %v7244_v22  ;;  %vm3346_vm12 = vweird.f32 %v7256_v34  ;;  %v3091_v22 = vmul.f32 %v7289_v27, %v7289_v27 }
 0x5a3   :  { %v3461_v20 = vmul.f32 %v3328_v26, %v3161_v11  ;;  %v3334_v12 = vmul.f32 %v4247_v19, %v3333_v25  ;;  %v3024_v46 = vpop.xlane.xlu0 %3023  ;;  %vm7300_vm14 = vmor %vm3345_vm13, %vm3346_vm12  ;;  %v7645_v11 = vld [vmem:[#allocation2_spill] sm:$0xff]  ;;  %v2905_v25 = vpop.xlane.xlu1 %2904  ;;  %vm3395_vm12 = vweird.f32 %v7291_v28 }
 0x5a4   :  { %v3341_v40 = vmul.f32 %v7256_v34, %v3340_v54  ;;  %v3065_v41 = vmul.f32 %v3024_v46, %v6087_v9  ;;  %v4251_v33 = vpop.eup %4250 }
 0x5a5   :  { %v3487_v47 = vmul.f32 %v6906_v49, %v3461_v20  ;;  %v3338_v44 = vsel %vm3337_vm11, %v4247_v19, %v3334_v12  ;;  %v3350_v37 = vmul.f32 %v4251_v33, %v7251_v17  ;;  %v7284_v49 = vld [vmem:[%s7548_s2 + $0xa] ss:$0 sm:$0xff]  ;;  %vm3356_vm15 = vweird.f32 %v4251_v33 }
 0x5a6   :  { %v3342_v29 = vmul.f32 0.5, %v3341_v40  ;;  %v3462_v45 = vmul.f32 %v3338_v44, %v3162_v51  ;;  %v3115_v36 = vsub.f32 %v3065_v41, %v3090_v10  ;;  %v3772_v32 = vpop.f32.mrf.mxu0  ;;  %v3164_v12 = vsub.f32 %v7002_v38, %v7239_v50  ;;  %vm3357_vm4 = vmor %vm3355_vm2, %vm3356_vm15 }
 0x5a7   :  { %v3773_v8 = vadd.f32 %v7145_v21, %v3772_v32  ;;  %v3513_v7 = vadd.f32 %v6931_v55, %v3487_v47  ;;  %v3351_v5 = vmul.f32 %v4251_v33, %v3350_v37  ;;  %v2917_v37 = vpop.xlane.xlu2 %2916 }
 0x5a8   :  { %v3343_v1 = vsub.f32 1.5, %v3342_v29  ;;  %v3140_v24 = vmax.f32 %v3115_v36, 0.0  ;;  %v3488_v19 = vmul.f32 %v7284_v49, %v3462_v45 }
 0x5a9   :  { %3827 = vst.msk [vmem:[%s7549_s3 + $0x38] sm:$0xff] %vm3819_vm3, %v3773_v8  ;;  %v3352_v53 = vmul.f32 0.5, %v3351_v5  ;;  %v3638_v56 = vadd.f32 %v7645_v11, %v3513_v7 }
 0x5aa   :  { %v3344_v43 = vmul.f32 %v7256_v34, %v3343_v1  ;;  %v3190_v2 = vadd.f32 1e-05, %v3140_v24  ;;  %v3514_v30 = vadd.f32 %v6931_v55, %v3488_v19  ;;  %v3163_v55 = vsub.f32 %v6988_v13, %v7233_v52  ;;  %v7332_v1 = vld [vmem:[%s7548_s2 + $0xb] ss:$0 sm:$0xff] }
 0x5ab   :  { %v3027_v48 = vpop.xlane.xlu0 %3026  ;;  %v3353_v26 = vsub.f32 1.5, %v3352_v53  ;;  %v3663_v51 = vmax.f32 %v3638_v56, 0.0  ;;  %v7319_v13 = vmul.f32 %v2905_v25, %v6087_v9 }
 0x5ac   :  { %v3348_v39 = vsel %vm7300_vm14, %v7256_v34, %v3344_v43  ;;  %4252 = vrsqrt.f32 %v3190_v2  ;;  %v3066_v54 = vmul.f32 %v3027_v48, %v6087_v9  ;;  %v3639_v20 = vadd.f32 %v6825_v0, %v3514_v30 }
 0x5ad   :  { %4254 = vrsqrt.f32 %v7291_v28  ;;  %v3354_v34 = vmul.f32 %v4251_v33, %v3353_v26  ;;  %v3463_v40 = vmul.f32 %v3348_v39, %v3163_v55  ;;  %v7339_v43 = vmul.f32 %v2911_v42, %v6087_v9 }
 0x5ae   :  { %v3116_v46 = vsub.f32 %v3066_v54, %v3091_v22  ;;  %v3664_v10 = vmax.f32 %v3639_v20, 0.0  ;;  %vm3365_vm6 = vweird.f32 %v3190_v2 }
 0x5af   :  { %v3358_v41 = vsel %vm3357_vm4, %v4251_v33, %v3354_v34  ;;  %v3489_v44 = vmul.f32 %v7284_v49, %v3463_v40  ;;  %v3092_v33 = vmul.f32 %v7319_v13, %v7319_v13  ;;  %v3094_v55 = vmul.f32 %v7339_v43, %v7339_v43 }
 0x5b0   :  { %v3464_v52 = vmul.f32 %v3358_v41, %v3164_v12  ;;  %v3141_v47 = vmax.f32 %v3116_v46, 0.0  ;;  %v3682_v0 = vpack.c.bf16 %v3664_v10, %v3663_v51 }
 0x5b1   :  { %v3515_v24 = vadd.f32 %v7332_v1, %v3489_v44 }
 0x5b2   :  { %v4253_v35 = vpop.eup %4252  ;;  %v3490_v38 = vmul.f32 %v7284_v49, %v3464_v52  ;;  %v3191_v29 = vadd.f32 1e-05, %v3141_v47  ;;  %4011 = vmatmul.msk.bf16.gmra.mxu0 %vm121_vm0, %v3682_v0 }
 0x5b3   :  { %v3360_v50 = vmul.f32 %v4253_v35, %v3190_v2  ;;  %v3030_v17 = vpop.xlane.xlu0 %3029  ;;  %v7324_v45 = vpop.eup %4254  ;;  %vm3366_vm5 = vweird.f32 %v4253_v35  ;;  %v3640_v26 = vadd.f32 %v6822_v3, %v3515_v24  ;;  %v7353_v3 = vmul.f32 %v2917_v37, %v6087_v9 }
 0x5b4   :  { %v3067_v36 = vmul.f32 %v3030_v17, %v6087_v9  ;;  %4256 = vrsqrt.f32 %v3191_v29  ;;  %v3516_v8 = vadd.f32 %v7332_v1, %v3490_v38  ;;  %v3390_v19 = vmul.f32 %v7324_v45, %v7291_v28  ;;  %vm3367_vm7 = vmor %vm3365_vm6, %vm3366_vm5  ;;  %v3042_v2 = vpop.xlane.xlu2 %3041 }
 0x5b5   :  { %v3361_v32 = vmul.f32 %v4253_v35, %v3360_v50  ;;  %v3665_v46 = vmax.f32 %v3640_v26, 0.0  ;;  %v3071_v41 = vmul.f32 %v3042_v2, %v6087_v9  ;;  %vm3375_vm1 = vweird.f32 %v3191_v29 }
 0x5b6   :  { %v3117_v7 = vsub.f32 %v3067_v36, %v3092_v33  ;;  %v3641_v59 = vadd.f32 %v7207_v18, %v3516_v8  ;;  %v3391_v22 = vmul.f32 %v7324_v45, %v3390_v19  ;;  %v3165_v18 = vsub.f32 %v7067_v58, %v7261_v16 }
 0x5b7   :  { %v3362_v5 = vmul.f32 0.5, %v3361_v32  ;;  %v3096_v16 = vmul.f32 %v7353_v3, %v7353_v3  ;;  %v3166_v32 = vsub.f32 %v7020_v15, %v7289_v27  ;;  %vm3396_vm10 = vweird.f32 %v7324_v45 }
 0x5b8   :  { %v3142_v53 = vmax.f32 %v3117_v7, 0.0  ;;  %v3666_v20 = vmax.f32 %v3641_v59, 0.0  ;;  %v3392_v51 = vmul.f32 0.5, %v3391_v22  ;;  %vm7379_vm13 = vmor %vm3395_vm12, %vm3396_vm10 }
 0x5b9   :  { %v3363_v30 = vsub.f32 1.5, %v3362_v5  ;;  %v3121_v8 = vsub.f32 %v3071_v41, %v3096_v16 }
 0x5ba   :  { %v7342_v48 = vadd.f32 1e-05, %v3142_v53  ;;  %v4257_v11 = vpop.eup %4256  ;;  %v3683_v47 = vpack.c.bf16 %v3666_v20, %v3665_v46  ;;  %v3393_v33 = vsub.f32 1.5, %v3392_v51 }
 0x5bb   :  { %v3364_v56 = vmul.f32 %v4253_v35, %v3363_v30  ;;  %v3036_v39 = vpop.xlane.xlu0 %3035  ;;  %v3370_v42 = vmul.f32 %v4257_v11, %v3191_v29  ;;  %vm3376_vm8 = vweird.f32 %v4257_v11  ;;  %v3146_v27 = vmax.f32 %v3121_v8, 0.0 }
 0x5bc   :  { %4258 = vrsqrt.f32 %v7342_v48  ;;  %v3069_v54 = vmul.f32 %v3036_v39, %v6087_v9  ;;  %vm3377_vm9 = vmor %vm3375_vm1, %vm3376_vm8  ;;  %v3394_v59 = vmul.f32 %v7324_v45, %v3393_v33  ;;  %vm3385_vm14 = vweird.f32 %v7342_v48  ;;  %v3045_v20 = vpop.xlane.xlu2 %3044 }
 0x5bd   :  { %v3368_v25 = vsel %vm3367_vm7, %v4253_v35, %v3364_v56  ;;  %v3371_v12 = vmul.f32 %v4257_v11, %v3370_v42  ;;  %v3039_v35 = vpop.xlane.xlu1 %3038  ;;  %v3072_v51 = vmul.f32 %v3045_v20, %v6087_v9 }
 0x5be   :  { %v3465_v34 = vmul.f32 %v3368_v25, %v3165_v18  ;;  %v3119_v40 = vsub.f32 %v3069_v54, %v3094_v55  ;;  %v3070_v5 = vmul.f32 %v3039_v35, %v6087_v9  ;;  %v3167_v54 = vsub.f32 %v7060_v6, %v7319_v13 }
 0x5bf   :  { %v3372_v10 = vmul.f32 0.5, %v3371_v12  ;;  %v3168_v6 = vsub.f32 %v7030_v4, %v7247_v57 }
 0x5c0   :  { %v3144_v52 = vmax.f32 %v3119_v40, 0.0  ;;  %v3491_v17 = vmul.f32 %v7284_v49, %v3465_v34  ;;  %v7393_v34 = vadd.f32 1e-05, %v3146_v27 }
 0x5c1   :  { %v3373_v58 = vsub.f32 1.5, %v3372_v10 }
 0x5c2   :  { %v4259_v0 = vpop.eup %4258  ;;  %v7359_v38 = vadd.f32 1e-05, %v3144_v52  ;;  %4012 = vmatmul.msk.bf16.gmra.mxu0 %vm121_vm0, %v3683_v47  ;;  %v3517_v29 = vadd.f32 %v7332_v1, %v3491_v17  ;;  %vm3425_vm12 = vweird.f32 %v7393_v34 }
 0x5c3   :  { %v3380_v44 = vmul.f32 %v4259_v0, %v7342_v48  ;;  %v2914_v50 = vpop.xlane.xlu0 %2913  ;;  %v3374_v37 = vmul.f32 %v4257_v11, %v3373_v58  ;;  %vm3386_vm11 = vweird.f32 %v4259_v0  ;;  %v3398_v48 = vsel %vm7379_vm13, %v7324_v45, %v3394_v59 }
 0x5c4   :  { %v7364_v36 = vmul.f32 %v2914_v50, %v6087_v9  ;;  %4260 = vrsqrt.f32 %v7359_v38  ;;  %v3642_v25 = vadd.f32 %v7187_v61, %v3517_v29  ;;  %vm3387_vm15 = vmor %vm3385_vm14, %vm3386_vm11  ;;  %v3468_v47 = vmul.f32 %v3398_v48, %v3168_v6 }
 0x5c5   :  { %v3381_v7 = vmul.f32 %v4259_v0, %v3380_v44  ;;  %v3378_v24 = vsel %vm3377_vm9, %v4257_v11, %v3374_v37  ;;  %v3588_v8 = vpop.permute.xlu1 %3587  ;;  %vm3405_vm5 = vweird.f32 %v7359_v38 }
 0x5c6   :  { %v3095_v19 = vmul.f32 %v7364_v36, %v7364_v36  ;;  %v3466_v53 = vmul.f32 %v3378_v24, %v3166_v32  ;;  %v3667_v41 = vmax.f32 %v3642_v25, 0.0  ;;  %v3494_v16 = vmul.f32 %v7284_v49, %v3468_v47  ;;  %v3590_v32 = vpop.permute.xlu2 %3589 }
 0x5c7   :  { %v3382_v30 = vmul.f32 0.5, %v3381_v7  ;;  %v3169_v25 = vsub.f32 %v7052_v23, %v7339_v43 }
 0x5c8   :  { %v3120_v15 = vsub.f32 %v3070_v5, %v3095_v19  ;;  %v3492_v39 = vmul.f32 %v7284_v49, %v3466_v53  ;;  %v3520_v7 = vadd.f32 %v7332_v1, %v3494_v16 }
 0x5c9   :  { %v3383_v56 = vsub.f32 1.5, %v3382_v30 }
 0x5ca   :  { %v3145_v11 = vmax.f32 %v3120_v15, 0.0  ;;  %v7377_v26 = vpop.eup %4260  ;;  %v3518_v18 = vadd.f32 %v7332_v1, %v3492_v39  ;;  %v3645_v29 = vadd.f32 %v3590_v32, %v3520_v7  ;;  %v3171_v7 = vsub.f32 %v7075_v60, %v7353_v3 }
 0x5cb   :  { %v3384_v55 = vmul.f32 %v4259_v0, %v3383_v56  ;;  %v2920_v42 = vpop.xlane.xlu0 %2919  ;;  %v3400_v28 = vmul.f32 %v7377_v26, %v7359_v38  ;;  %vm3406_vm2 = vweird.f32 %v7377_v26 }
 0x5cc   :  { %v3195_v2 = vadd.f32 1e-05, %v3145_v11  ;;  %v7391_v12 = vmul.f32 %v2920_v42, %v6087_v9  ;;  %v3643_v61 = vadd.f32 %v7204_v14, %v3518_v18  ;;  %vm7419_vm6 = vmor %vm3405_vm5, %vm3406_vm2 }
 0x5cd   :  { %v3388_v40 = vsel %vm3387_vm15, %v4259_v0, %v3384_v55  ;;  %v3401_v46 = vmul.f32 %v7377_v26, %v3400_v28  ;;  %v3170_v55 = vsub.f32 %v7070_v62, %v7364_v36 }
 0x5ce   :  { %v3467_v13 = vmul.f32 %v3388_v40, %v3167_v54  ;;  %4262 = vrsqrt.f32 %v3195_v2  ;;  %v3097_v10 = vmul.f32 %v7391_v12, %v7391_v12  ;;  %v3668_v52 = vmax.f32 %v3643_v61, 0.0 }
 0x5cf   :  { %4264 = vrsqrt.f32 %v7393_v34  ;;  %v3402_v58 = vmul.f32 0.5, %v3401_v46  ;;  %vm3415_vm7 = vweird.f32 %v3195_v2  ;;  %v3670_v54 = vmax.f32 %v3645_v29, 0.0 }
 0x5d0   :  { %v3493_v45 = vmul.f32 %v7284_v49, %v3467_v13  ;;  %v3122_v14 = vsub.f32 %v3072_v51, %v3097_v10  ;;  %v3684_v0 = vpack.c.bf16 %v3668_v52, %v3667_v41 }
 0x5d1   :  { %v3403_v17 = vsub.f32 1.5, %v3402_v58 }
 0x5d2   :  { %v3147_v4 = vmax.f32 %v3122_v14, 0.0  ;;  %4013 = vmatmul.msk.bf16.gmra.mxu0 %vm121_vm0, %v3684_v0  ;;  %v3519_v35 = vadd.f32 %v7332_v1, %v3493_v45 }
 0x5d3   :  { %v3404_v30 = vmul.f32 %v7377_v26, %v3403_v17 }
 0x5d4   :  { %v4263_v57 = vpop.eup %4262  ;;  %v3197_v50 = vadd.f32 1e-05, %v3147_v4  ;;  %v3644_v5 = vadd.f32 %v3588_v8, %v3519_v35 }
 0x5d5   :  { %v3410_v44 = vmul.f32 %v4263_v57, %v3195_v2  ;;  %v7410_v33 = vpop.eup %4264  ;;  %vm3416_vm4 = vweird.f32 %v4263_v57  ;;  %v3408_v42 = vsel %vm7419_vm6, %v7377_v26, %v3404_v30 }
 0x5d6   :  { %4266 = vrsqrt.f32 %v3197_v50  ;;  %v3420_v19 = vmul.f32 %v7410_v33, %v7393_v34  ;;  %v3669_v56 = vmax.f32 %v3644_v5, 0.0  ;;  %vm3417_vm8 = vmor %vm3415_vm7, %vm3416_vm4  ;;  %v3469_v40 = vmul.f32 %v3408_v42, %v3169_v25 }
 0x5d7   :  { %v3411_v37 = vmul.f32 %v4263_v57, %v3410_v44  ;;  %vm3426_vm9 = vweird.f32 %v7410_v33  ;;  %vm3435_vm10 = vweird.f32 %v3197_v50 }
 0x5d8   :  { %v3421_v22 = vmul.f32 %v7410_v33, %v3420_v19  ;;  %v3685_v48 = vpack.c.bf16 %v3670_v54, %v3669_v56  ;;  %v3495_v46 = vmul.f32 %v7284_v49, %v3469_v40  ;;  %vm3427_vm13 = vmor %vm3425_vm12, %vm3426_vm9 }
 0x5d9   :  { %v3412_v24 = vmul.f32 0.5, %v3411_v37  ;;  %v3775_v53 = vpop.f32.mrf.mxu0 }
 0x5da   :  { %v3776_v15 = vadd.f32 %v7145_v21, %v3775_v53  ;;  %v3422_v61 = vmul.f32 0.5, %v3421_v22  ;;  %v3521_v47 = vadd.f32 %v7332_v1, %v3495_v46 }
 0x5db   :  { %v3413_v59 = vsub.f32 1.5, %v3412_v24 }
 0x5dc   :  { %v4267_v27 = vpop.eup %4266  ;;  %3828 = vst.msk [vmem:[%s7549_s3 + $0x40] sm:$0xff] %vm3819_vm3, %v3776_v15  ;;  %v3423_v51 = vsub.f32 1.5, %v3422_v61 }
 0x5dd   :  { %v3414_v11 = vmul.f32 %v4263_v57, %v3413_v59  ;;  %v3430_v38 = vmul.f32 %v4267_v27, %v3197_v50  ;;  %vm3436_vm1 = vweird.f32 %v4267_v27  ;;  %v3172_v50 = vsub.f32 %v7094_v31, %v7391_v12 }
 0x5de   :  { %v3592_v18 = vpop.permute.xlu0 %3591  ;;  %v3424_v0 = vmul.f32 %v7410_v33, %v3423_v51  ;;  %vm7448_vm11 = vmor %vm3435_vm10, %vm3436_vm1 }
 0x5df   :  { %v3418_v20 = vsel %vm3417_vm8, %v4263_v57, %v3414_v11  ;;  %v3431_v2 = vmul.f32 %v4267_v27, %v3430_v38  ;;  %v3646_v4 = vadd.f32 %v3592_v18, %v3521_v47 }
 0x5e0   :  { %v3470_v28 = vmul.f32 %v3418_v20, %v3170_v55  ;;  %v3428_v8 = vsel %vm3427_vm13, %v7410_v33, %v3424_v0 }
 0x5e1   :  { %v3432_v6 = vmul.f32 0.5, %v3431_v2  ;;  %v3777_v13 = vpop.f32.mrf.mxu0  ;;  %v3671_v24 = vmax.f32 %v3646_v4, 0.0  ;;  %v3471_v53 = vmul.f32 %v3428_v8, %v3171_v7 }
 0x5e2   :  { %v3496_v62 = vmul.f32 %v7284_v49, %v3470_v28  ;;  %v3778_v36 = vadd.f32 %v7145_v21, %v3777_v13  ;;  %4014 = vmatmul.msk.bf16.gmra.mxu0 %vm121_vm0, %v3685_v48 }
 0x5e3   :  { %v3433_v26 = vsub.f32 1.5, %v3432_v6  ;;  %v2923_v23 = vpop.xlane.xlu1 %2922  ;;  %v3497_v33 = vmul.f32 %v7284_v49, %v3471_v53 }
 0x5e4   :  { %3829 = vst.msk [vmem:[%s7549_s3 + $0x48] sm:$0xff] %vm3819_vm3, %v3778_v36  ;;  %v3522_v43 = vadd.f32 %v7332_v1, %v3496_v62  ;;  %v2948_v52 = vmul.f32 %v2923_v23, %v6087_v9 }
 0x5e5   :  { %v3434_v41 = vmul.f32 %v4267_v27, %v3433_v26  ;;  %v3523_v59 = vadd.f32 %v7332_v1, %v3497_v33 }
 0x5e6   :  { %v3594_v10 = vpop.permute.xlu0 %3593  ;;  %v3098_v44 = vmul.f32 %v2948_v52, %v2948_v52  ;;  %v3173_v54 = vsub.f32 %v7175_v63, %v2948_v52 }
 0x5e7   :  { %v3647_v45 = vadd.f32 %v3594_v10, %v3522_v43  ;;  %v3438_v35 = vsel %vm7448_vm11, %v4267_v27, %v3434_v41 }
 0x5e8   :  { %v3472_v5 = vmul.f32 %v3438_v35, %v3172_v50 }
 0x5e9   :  { %v3780_v14 = vpop.f32.mrf.mxu0  ;;  %v3672_v37 = vmax.f32 %v3647_v45, 0.0 }
 0x5ea   :  { %v3781_v57 = vadd.f32 %v7145_v21, %v3780_v14  ;;  %v3498_v29 = vmul.f32 %v7284_v49, %v3472_v5 }
 0x5eb   :  { %v3686_v19 = vpack.c.bf16 %v3672_v37, %v3671_v24 }
 0x5ec   :  { %v3048_v16 = vpop.xlane.xlu2 %3047  ;;  %3830 = vst.msk [vmem:[%s7549_s3 + $0x50] sm:$0xff] %vm3819_vm3, %v3781_v57  ;;  %v3524_v3 = vadd.f32 %v7332_v1, %v3498_v29 }
 0x5ed   :  { %v3073_v17 = vmul.f32 %v3048_v16, %v6087_v9 }
 0x5ee   :  { %v3596_v34 = vpop.permute.xlu0 %3595 }
 0x5ef   :  { %v3123_v32 = vsub.f32 %v3073_v17, %v3098_v44  ;;  %v3648_v39 = vadd.f32 %v3596_v34, %v3523_v59 }
 0x5f1   :  { %v3148_v9 = vmax.f32 %v3123_v32, 0.0  ;;  %v3782_v31 = vpop.f32.mrf.mxu0  ;;  %v3673_v38 = vmax.f32 %v3648_v39, 0.0 }
 0x5f2   :  { %v3783_v12 = vadd.f32 %v7145_v21, %v3782_v31  ;;  %4015 = vmatmul.msk.bf16.gmra.mxu0 %vm121_vm0, %v3686_v19 }
 0x5f3   :  { %v3198_v30 = vadd.f32 1e-05, %v3148_v9 }
 0x5f4   :  { %3831 = vst.msk [vmem:[%s7549_s3 + $0x58] sm:$0xff] %vm3819_vm3, %v3783_v12 }
 0x5f5   :  { %4268 = vrsqrt.f32 %v3198_v30  ;;  %vm3445_vm15 = vweird.f32 %v3198_v30 }
 0x5f6   :  { %v3598_v60 = vpop.permute.xlu0 %3597 }
 0x5f7   :  { %v3649_v15 = vadd.f32 %v3598_v60, %v3524_v3 }
 0x5f9   :  { %v3674_v22 = vmax.f32 %v3649_v15, 0.0 }
 0x5fb   :  { %v4269_v27 = vpop.eup %4268  ;;  %v3687_v18 = vpack.c.bf16 %v3674_v22, %v3673_v38  ;;  %v3600_v40 = vpop.permute.xlu1 %3599 }
 0x5fc   :  { %v3440_v56 = vmul.f32 %v4269_v27, %v3198_v30  ;;  %vm3446_vm14 = vweird.f32 %v4269_v27 }
 0x5fd   :  { %vm3447_vm2 = vmor %vm3445_vm15, %vm3446_vm14 }
 0x5fe   :  { %v3441_v11 = vmul.f32 %v4269_v27, %v3440_v56 }
 0x600   :  { %v3442_v55 = vmul.f32 0.5, %v3441_v11 }
 0x602   :  { %v3443_v42 = vsub.f32 1.5, %v3442_v55  ;;  %4016 = vmatmul.msk.bf16.gmra.mxu0 %vm121_vm0, %v3687_v18 }
 0x604   :  { %v3444_v25 = vmul.f32 %v4269_v27, %v3443_v42 }
 0x606   :  { %v3448_v20 = vsel %vm3447_vm2, %v4269_v27, %v3444_v25 }
 0x607   :  { %v3473_v28 = vmul.f32 %v3448_v20, %v3173_v54 }
 0x609   :  { %v3499_v2 = vmul.f32 %v7284_v49, %v3473_v28 }
 0x60b   :  { %v3525_v48 = vadd.f32 %v7332_v1, %v3499_v2 }
 0x60d   :  { %v3650_v61 = vadd.f32 %v3600_v40, %v3525_v48 }
 0x60f   :  { %v3675_v6 = vmax.f32 %v3650_v61, 0.0 }
 0x611   :  { %v3688_v13 = vpack.c.bf16 %v3675_v6, %v3675_v6 }
 0x613   :  { %4017 = vmatmul.msk.bf16.gmra.mxu0 %vm121_vm0, %v3688_v13 }
 0x62f   :  { %v3785_v62 = vpop.f32.mrf.mxu0 }
 0x630   :  { %v3786_v36 = vadd.f32 %v7145_v21, %v3785_v62 }
 0x632   :  { %3832 = vst.msk [vmem:[%s7549_s3 + $0x60] sm:$0xff] %vm3819_vm3, %v3786_v36 }
 0x637   :  { %v3787_v63 = vpop.f32.mrf.mxu0 }
 0x638   :  { %v3788_v26 = vadd.f32 %v7145_v21, %v3787_v63 }
 0x63a   :  { %3833 = vst.msk [vmem:[%s7549_s3 + $0x68] sm:$0xff] %vm3819_vm3, %v3788_v26 }
 0x63f   :  { %v3790_v49 = vpop.f32.mrf.mxu0 }
 0x640   :  { %v3791_v1 = vadd.f32 %v7145_v21, %v3790_v49 }
 0x642   :  { %3834 = vst.msk [vmem:[%s7549_s3 + $0x70] sm:$0xff] %vm3819_vm3, %v3791_v1 }
 0x647   :  { %v3792_v46 = vpop.f32.mrf.mxu0 }
 0x648   :  { %v3793_v23 = vadd.f32 %v7145_v21, %v3792_v46 }
 0x64a   :  { %3835 = vst.msk [vmem:[%s7549_s3 + $0x78] sm:$0xff] %vm3819_vm3, %v3793_v23 }
 0x64f   :  { %v3795_v43 = vpop.f32.mrf.mxu0 }
 0x650   :  { %v3796_v51 = vadd.f32 %v7145_v21, %v3795_v43 }
 0x652   :  { %3836 = vst.msk [vmem:[%s7549_s3 + $0x80] sm:$0xff] %vm3819_vm3, %v3796_v51 }
 0x657   :  { %v3797_v10 = vpop.f32.mrf.mxu0 }
 0x658   :  { %v3798_v41 = vadd.f32 %v7145_v21, %v3797_v10 }
 0x65a   :  { %3837 = vst.msk [vmem:[%s7549_s3 + $0x88] sm:$0xff] %vm3819_vm3, %v3798_v41 }
 0x65f   :  { %v3800_v52 = vpop.f32.mrf.mxu0 }
 0x660   :  { %v3801_v47 = vadd.f32 %v7145_v21, %v3800_v52 }
 0x662   :  { %3838 = vst.msk [vmem:[%s7549_s3 + $0x90] sm:$0xff] %vm3819_vm3, %v3801_v47 }
 0x667   :  { %v3802_v45 = vpop.f32.mrf.mxu0 }
 0x668   :  { %v3803_v14 = vadd.f32 %v7145_v21, %v3802_v45 }
 0x66a   :  { %3839 = vst.msk [vmem:[%s7549_s3 + $0x98] sm:$0xff] %vm3819_vm3, %v3803_v14 }
 0x66f   :  { %v3805_v0 = vpop.f32.mrf.mxu0 }
 0x670   :  { %v3806_v58 = vadd.f32 %v7145_v21, %v3805_v0 }
 0x672   :  { %3840 = vst.msk [vmem:[%s7549_s3 + $0xa0] sm:$0xff] %vm3819_vm3, %v3806_v58 }
 0x677   :  { %v3807_v4 = vpop.f32.mrf.mxu0 }
 0x678   :  { %v3808_v57 = vadd.f32 %v7145_v21, %v3807_v4 }
 0x67a   :  { %3841 = vst.msk [vmem:[%s7549_s3 + $0xa8] sm:$0xff] %vm3819_vm3, %v3808_v57 }
 0x67f   :  { %v3810_v16 = vpop.f32.mrf.mxu0 }
 0x680   :  { %v3811_v35 = vadd.f32 %v7145_v21, %v3810_v16 }
 0x682   :  { %3842 = vst.msk [vmem:[%s7549_s3 + $0xb0] sm:$0xff] %vm3819_vm3, %v3811_v35 }
 0x687   :  { %v3812_v44 = vpop.f32.mrf.mxu0 }
 0x688   :  { %v3813_v17 = vadd.f32 %v7145_v21, %v3812_v44 }
 0x68a   :  { %3843 = vst.msk [vmem:[%s7549_s3 + $0xb8] sm:$0xff] %vm3819_vm3, %v3813_v17 }
 0x690   :  { %v3815_v50 = vpop.f32.mrf.mxu0 }
 0x691   :  { %v3816_v37 = vadd.f32 %v7145_v21, %v3815_v50 }
 0x693   :  { %3844 = vst.msk [vmem:[%s7549_s3 + $0xc0] sm:$0xff] %vm3819_vm3, %v3816_v37 }
 0x698   :  { %v3817_v32 = vpop.f32.mrf.mxu0 }

</bundles_post_ra>
